<compile_context>
chip_gen: v7x
topology: tpu7x:2x2x1
jax: 0.10.0
libtpu: 0.0.40
codegen_flags: <defaults>
</compile_context>

<pallas_src>
import functools

import jax
import jax.numpy as jnp
from jax.experimental import pallas as pl
from jax.experimental.pallas import tpu as pltpu


def _round_up(x: int, m: int) -> int:
  return ((x + m - 1) // m) * m


_SQRT_HALF = 0.7071067811865476


def _erf_f32(x):
  """erf via Abramowitz & Stegun 7.1.26 (max abs error ~1.5e-7).

  Uses only VPU mul/add/div/select and one EUP exp, so it lowers robustly in
  Mosaic and keeps the epilogue off a long VALU polynomial chain.
  """
  p = 0.3275911
  a1, a2, a3, a4, a5 = (0.254829592, -0.284496736, 1.421413741,
                        -1.453152027, 1.061405429)
  ax = jnp.abs(x)
  t = 1.0 / (1.0 + p * ax)
  poly = ((((a5 * t + a4) * t + a3) * t + a2) * t + a1) * t
  e = 1.0 - poly * jnp.exp(-(ax * ax))
  return jnp.where(x < 0, -e, e)


def _gelu_exact(x):
  """Exact (erf-based) GELU matching PyTorch nn.GELU() (non-approximate)."""
  return 0.5 * x * (1.0 + _erf_f32(x * _SQRT_HALF))


def _double_conv_kernel(x_ref, w1_ref, b1_ref, w2_ref, b2_ref, o_ref, h_ref,
                        *, K, L1p, L2p):
  """One batch group per grid step; batch is packed along the lane axis.

  x_ref : (1, Lp, B*Cin)      input (zero-padded along L), compute dtype
  w1_ref: (K*B*Cin, B*Cout)   conv1 weights, block-diag im2col, BN1 scale folded
  b1_ref: (1, B*Cout)         BN1 shift (f32)
  w2_ref: (K*B*Cout, B*Cout)  conv2 weights, block-diag im2col, BN2 scale folded
  b2_ref: (1, B*Cout)         BN2 shift (f32)
  o_ref : (1, L2p, B*Cout)    output (f32, lane-dense)
  h_ref : (L1p, B*Cout)       f32 VMEM scratch for the conv1 activation
  """
  x = x_ref[0]                                            # (Lp, B*Cin)

  # ---- Conv1 (stride 1, valid): ONE im2col MXU matmul for the whole group --
  # cols1[m, k*(B*Cin) + b*Cin + i] = x[b, m+k, i]
  cols1 = jnp.concatenate([x[k:k + L1p, :] for k in range(K)], axis=-1)
  h = jnp.dot(cols1, w1_ref[...], preferred_element_type=jnp.float32)

  # ---- BN1 shift (scale already folded into w1) + GELU -> f32 scratch ------
  h_ref[...] = _gelu_exact(h + b1_ref[...])

  # ---- Conv2 (stride 2, valid): 2 strided reads (even/odd row planes) + K
  #      contiguous slices, then ONE im2col MXU matmul ------------------------
  n_half = L2p + (K - 1) // 2
  h_even = h_ref[pl.ds(0, n_half, stride=2), :]           # rows 0, 2, 4, ...
  h_odd = h_ref[pl.ds(1, n_half, stride=2), :]            # rows 1, 3, 5, ...
  planes = (h_even, h_odd)
  # cols2[l, k*(B*Cout) + b*Cout + j] = gelu_h[b, 2*l + k, j]
  cols2 = jnp.concatenate(
      [planes[k % 2][k // 2:k // 2 + L2p, :] for k in range(K)], axis=-1)
  y = jnp.dot(cols2.astype(w2_ref.dtype), w2_ref[...],
              preferred_element_type=jnp.float32)

  # ---- BN2 shift + GELU -> lane-dense output --------------------------------
  o_ref[0] = _gelu_exact(y + b2_ref[...]).astype(o_ref.dtype)


def _vmem_capacity_bytes() -> int:
  try:
    info = pltpu.get_tpu_info()
    for attr in ("vmem_capacity_bytes", "vmem_size_bytes", "vmem_bytes"):
      v = getattr(info, attr, None)
      if v:
        return int(v)
  except Exception:  # pragma: no cover - conservative fallback
    pass
  return 64 * 1024 * 1024  # v7x-sized conservative fallback


def _default_compute_dtype():
  try:
    kind = jax.devices()[0].device_kind.lower()
  except Exception:  # pragma: no cover
    return jnp.float32
  if any(tag in kind for tag in ("v6", "v7", "tpu7")):
    return jnp.bfloat16  # fast MXU path on v6e/v7x; epilogue stays f32
  return jnp.float32


def _choose_batch_block(N, Cin, Cout, K, Lp, L1p, L2p, in_bytes, w_bytes,
                        budget):
  """Pick the per-step batch group size B."""
  b = max(1, -(-128 // Cout))                 # lane-dense output: B*Cout >= 128

  def step_bytes(bb):
    wts = (K * bb * Cin + K * bb * Cout) * (bb * Cout) * w_bytes
    io = Lp * bb * Cin * in_bytes + L2p * bb * Cout * 4
    return 2 * (wts + io) + L1p * bb * Cout * 4   # 2x-buffered io/weights + scratch

  while (b * 2 <= 32                          # block-diag weights grow O(B^2), MXU waste O(B)
         and step_bytes(b * 2) <= budget      # fits the per-device VMEM budget
         and -(-N // (b * 2)) >= 2):          # keep >= 2 grid steps (v7x dual TensorCore)
    b *= 2
  return b


def double_conv_block(x_nlc, w1_kio, scale1, shift1, w2_kio, scale2, shift2,
                      *, batch_block=None, compute_dtype=None):
  """Eval-mode DoubleConvBlock forward.

  x_nlc: (N, L, Cin) float -> returns (N, L2, Cout) float32 in NLC layout.
  w*_kio: conv weights in (K, C_in, C_out) layout; scale*/shift*: folded
  eval-mode BatchNorm (gamma/sqrt(var+eps), beta with running mean 0).
  """
  N, L, Cin = x_nlc.shape
  K, _, Cout = w1_kio.shape
  if compute_dtype is None:
    compute_dtype = _default_compute_dtype()

  L1 = L - K + 1                 # conv1, stride 1, valid
  L2 = (L1 - K) // 2 + 1         # conv2, stride 2, valid

  # Sublane padding (multiples of 8): padded rows are computed on zero-padded
  # input and sliced off afterwards; makes tiles aligned and stores unmasked.
  L2p = _round_up(L2, 8)
  L1p = _round_up(max(L1, 2 * (L2p + (K - 1) // 2)), 8)
  Lp = L1p + K - 1

  in_bytes = jnp.dtype(compute_dtype).itemsize
  w_bytes = in_bytes
  vmem_cap = _vmem_capacity_bytes()
  if batch_block is None:
    B = _choose_batch_block(N, Cin, Cout, K, Lp, L1p, L2p, in_bytes, w_bytes,
                            budget=vmem_cap // 2)
  else:
    B = max(1, int(batch_block))
  G = -(-N // B)
  Np = G * B

  # ---- Wrapper-side layout plumbing: pack batch onto the lane axis ----------
  x = x_nlc.astype(compute_dtype)
  x = jnp.pad(x, ((0, Np - N), (0, Lp - L), (0, 0)))
  x = x.reshape(G, B, Lp, Cin).transpose(0, 2, 1, 3).reshape(G, Lp, B * Cin)

  # Fold BN scale into the conv weights (exact, linear), then build the
  # block-diagonal im2col weights:
  #   W_bd[(k, b, c_in), (b', c_out)] = W[k, c_in, c_out] * (b == b')
  eye_b = jnp.eye(B, dtype=jnp.float32)
  w1s = w1_kio.astype(jnp.float32) * scale1.reshape(1, 1, Cout)
  w2s = w2_kio.astype(jnp.float32) * scale2.reshape(1, 1, Cout)
  w1_bd = jnp.einsum("kij,ab->kaibj", w1s, eye_b).reshape(K * B * Cin, B * Cout)
  w2_bd = jnp.einsum("kij,ab->kaibj", w2s, eye_b).reshape(K * B * Cout, B * Cout)
  w1_bd = w1_bd.astype(compute_dtype)
  w2_bd = w2_bd.astype(compute_dtype)
  b1 = jnp.tile(shift1.astype(jnp.float32), B).reshape(1, B * Cout)
  b2 = jnp.tile(shift2.astype(jnp.float32), B).reshape(1, B * Cout)

  kernel = functools.partial(_double_conv_kernel, K=K, L1p=L1p, L2p=L2p)

  flops = 2 * G * (L1p * (K * B * Cin) * (B * Cout)
                   + L2p * (K * B * Cout) * (B * Cout))
  transcendentals = G * (L1p + L2p) * B * Cout
  bytes_accessed = (G * (Lp * B * Cin * in_bytes + L2p * B * Cout * 4)
                    + (int(w1_bd.size) + int(w2_bd.size)) * w_bytes
                    + (int(b1.size) + int(b2.size)) * 4)

  out = pl.pallas_call(
      kernel,
      out_shape=jax.ShapeDtypeStruct((G, L2p, B * Cout), jnp.float32),
      grid_spec=pltpu.PrefetchScalarGridSpec(
          num_scalar_prefetch=0,
          grid=(G,),
          in_specs=[
              pl.BlockSpec((1, Lp, B * Cin), lambda g: (g, 0, 0)),
              pl.BlockSpec((K * B * Cin, B * Cout), lambda g: (0, 0)),
              pl.BlockSpec((1, B * Cout), lambda g: (0, 0)),
              pl.BlockSpec((K * B * Cout, B * Cout), lambda g: (0, 0)),
              pl.BlockSpec((1, B * Cout), lambda g: (0, 0)),
          ],
          out_specs=pl.BlockSpec((1, L2p, B * Cout), lambda g: (g, 0, 0)),
          scratch_shapes=[pltpu.VMEM((L1p, B * Cout), jnp.float32)],
      ),
      compiler_params=pltpu.CompilerParams(
          dimension_semantics=("parallel",),
          vmem_limit_bytes=min(vmem_cap * 3 // 4, 96 * 1024 * 1024)),
      cost_estimate=pl.CostEstimate(
          flops=int(flops),
          transcendentals=int(transcendentals),
          bytes_accessed=int(bytes_accessed)),
  )(x, w1_bd, b1, w2_bd, b2)

  # Undo lane packing: (G, L2p, B*Cout) -> (N, L2, Cout).
  out = out[:, :L2, :].reshape(G, L2, B, Cout).transpose(0, 2, 1, 3)
  return out.reshape(Np, L2, Cout)[:N]


def _reference(x_ncl, w1_oik, g1, be1, w2_oik, g2, be2, eps=1e-5):
  """Pure-JAX reference of the eval-mode PyTorch forward (NCL layout)."""
  dn = ("NCH", "OIH", "NCH")
  y = jax.lax.conv_general_dilated(x_ncl, w1_oik, (1,), "VALID",
                                   dimension_numbers=dn)
  y = y / jnp.sqrt(1.0 + eps) * g1[None, :, None] + be1[None, :, None]
  y = jax.nn.gelu(y, approximate=False)
  y = jax.lax.conv_general_dilated(y, w2_oik, (2,), "VALID",
                                   dimension_numbers=dn)
  y = y / jnp.sqrt(1.0 + eps) * g2[None, :, None] + be2[None, :, None]
  y = jax.nn.gelu(y, approximate=False)
  return y


def _rel_l2(a, b):
  num = jnp.sqrt(jnp.sum((a - b).astype(jnp.float32) ** 2))
  den = jnp.sqrt(jnp.sum(b.astype(jnp.float32) ** 2)) + 1e-30
  return float(num / den)


if __name__ == "__main__":
  # Small shapes consistent with DoubleConvBlock (seisLM-style 1D U-Net block).
  N, Cin, Cout, K, L = 4, 4, 32, 7, 128
  eps = 1e-5  # PyTorch BatchNorm1d default

  key = jax.random.PRNGKey(0)
  kx, kw1, kw2, kg1, kb1, kg2, kb2 = jax.random.split(key, 7)

  # Input in PyTorch NCL layout; conv weights in (out, in, kernel) layout.
  x_ncl = jax.random.normal(kx, (N, Cin, L), dtype=jnp.float32)
  w1_oik = jax.random.normal(kw1, (Cout, Cin, K), dtype=jnp.float32) * 0.2
  w2_oik = jax.random.normal(kw2, (Cout, Cout, K), dtype=jnp.float32) * 0.1

  # BatchNorm affine params; running stats at fresh init: mean=0, var=1.
  gamma1 = 1.0 + 0.1 * jax.random.normal(kg1, (Cout,), dtype=jnp.float32)
  beta1 = 0.1 * jax.random.normal(kb1, (Cout,), dtype=jnp.float32)
  gamma2 = 1.0 + 0.1 * jax.random.normal(kg2, (Cout,), dtype=jnp.float32)
  beta2 = 0.1 * jax.random.normal(kb2, (Cout,), dtype=jnp.float32)

  # Eval-mode BatchNorm folded into per-channel scale/shift.
  scale1 = gamma1 / jnp.sqrt(1.0 + eps)
  shift1 = beta1
  scale2 = gamma2 / jnp.sqrt(1.0 + eps)
  shift2 = beta2

  # Layout conversion for the kernel wrapper: NCL -> NLC, OIK -> KIO.
  x_nlc = jnp.transpose(x_ncl, (0, 2, 1))
  w1_kio = jnp.transpose(w1_oik, (2, 1, 0))
  w2_kio = jnp.transpose(w2_oik, (2, 1, 0))

  y_ref = jax.block_until_ready(
      _reference(x_ncl, w1_oik, gamma1, beta1, w2_oik, gamma2, beta2, eps))

  # --- f32 MXU operands ------------------------------------------------------
  y32 = double_conv_block(x_nlc, w1_kio, scale1, shift1, w2_kio, scale2,
                          shift2, compute_dtype=jnp.float32)
  y32 = jax.block_until_ready(jnp.transpose(y32, (0, 2, 1)))
  assert y32.shape == y_ref.shape, (y32.shape, y_ref.shape)
  assert _rel_l2(y32, y_ref) < 2e-2, _rel_l2(y32, y_ref)

  # --- bf16 MXU operands (f32 accumulation, f32 BN+GELU epilogue) ------------
  y16 = double_conv_block(x_nlc, w1_kio, scale1, shift1, w2_kio, scale2,
                          shift2, compute_dtype=jnp.bfloat16)
  y16 = jax.block_until_ready(jnp.transpose(y16, (0, 2, 1)))
  assert y16.shape == y_ref.shape, (y16.shape, y_ref.shape)
  assert _rel_l2(y16, y_ref) < 5e-2, _rel_l2(y16, y_ref)

  print("KERNEL_OK")
</pallas_src>

<mosaic_0001>
module attributes {stable_mosaic.version = 11 : i64} {
  func.func @_double_conv_kernel(%arg0: i32, %arg1: memref<1x142x16xf32, #tpu.memory_space<vmem>>, %arg2: memref<112x128xf32, #tpu.memory_space<vmem>>, %arg3: memref<1x128xf32, #tpu.memory_space<vmem>>, %arg4: memref<896x128xf32, #tpu.memory_space<vmem>>, %arg5: memref<1x128xf32, #tpu.memory_space<vmem>>, %arg6: memref<1x64x128xf32, #tpu.memory_space<vmem>>, %arg7: memref<136x128xf32, #tpu.memory_space<vmem>>) attributes {dimension_semantics = [#tpu.dimension_semantics<parallel>], iteration_bounds = array<i64: 1>, scalar_prefetch = 0 : i64, scratch_operands = 1 : i64, tpu.core_type = #tpu.core_type<tc>, window_params = [{transform_indices = @transform_0, window_bounds = array<i64: 1, 142, 16>}, {pipeline_mode = #tpu.pipeline_mode<synchronous>, transform_indices = @transform_1, window_bounds = array<i64: 112, 128>}, {pipeline_mode = #tpu.pipeline_mode<synchronous>, transform_indices = @transform_2, window_bounds = array<i64: 1, 128>}, {pipeline_mode = #tpu.pipeline_mode<synchronous>, transform_indices = @transform_3, window_bounds = array<i64: 896, 128>}, {pipeline_mode = #tpu.pipeline_mode<synchronous>, transform_indices = @transform_4, window_bounds = array<i64: 1, 128>}, {transform_indices = @transform_5, window_bounds = array<i64: 1, 64, 128>}]} {
    %c0 = arith.constant 0 : index
    %c0_0 = arith.constant 0 : index
    %c0_1 = arith.constant 0 : index
    %0 = vector.load %arg1[%c0, %c0_0, %c0_1] : memref<1x142x16xf32, #tpu.memory_space<vmem>>, vector<1x142x16xf32>
    %1 = vector.shape_cast %0 : vector<1x142x16xf32> to vector<142x16xf32>
    %2 = vector.extract_strided_slice %1 {offsets = [0, 0], sizes = [136, 16], strides = [1, 1]} : vector<142x16xf32> to vector<136x16xf32>
    %3 = vector.extract_strided_slice %1 {offsets = [1, 0], sizes = [136, 16], strides = [1, 1]} : vector<142x16xf32> to vector<136x16xf32>
    %4 = vector.extract_strided_slice %1 {offsets = [2, 0], sizes = [136, 16], strides = [1, 1]} : vector<142x16xf32> to vector<136x16xf32>
    %5 = vector.extract_strided_slice %1 {offsets = [3, 0], sizes = [136, 16], strides = [1, 1]} : vector<142x16xf32> to vector<136x16xf32>
    %6 = vector.extract_strided_slice %1 {offsets = [4, 0], sizes = [136, 16], strides = [1, 1]} : vector<142x16xf32> to vector<136x16xf32>
    %7 = vector.extract_strided_slice %1 {offsets = [5, 0], sizes = [136, 16], strides = [1, 1]} : vector<142x16xf32> to vector<136x16xf32>
    %8 = vector.extract_strided_slice %1 {offsets = [6, 0], sizes = [136, 16], strides = [1, 1]} : vector<142x16xf32> to vector<136x16xf32>
    %9 = tpu.concatenate %2, %3, %4, %5, %6, %7, %8 in 1 : vector<136x16xf32>, vector<136x16xf32>, vector<136x16xf32>, vector<136x16xf32>, vector<136x16xf32>, vector<136x16xf32>, vector<136x16xf32> -> vector<136x112xf32>
    %c0_2 = arith.constant 0 : index
    %c0_3 = arith.constant 0 : index
    %10 = vector.load %arg2[%c0_2, %c0_3] : memref<112x128xf32, #tpu.memory_space<vmem>>, vector<112x128xf32>
    %cst = arith.constant dense<0.000000e+00> : vector<136x128xf32>
    %11 = tpu.matmul %9, %10, %cst {dimension_numbers = #tpu.dot_dimension_numbers<[1], [0], [0], [1], [0, 0, 1, 1], [], []>} : vector<136x112xf32>, vector<112x128xf32>, vector<136x128xf32> -> vector<136x128xf32>
    %c0_4 = arith.constant 0 : index
    %c0_5 = arith.constant 0 : index
    %12 = vector.load %arg3[%c0_4, %c0_5] : memref<1x128xf32, #tpu.memory_space<vmem>>, vector<1x128xf32>
    %13 = vector.broadcast %12 : vector<1x128xf32> to vector<136x128xf32>
    %14 = arith.addf %11, %13 : vector<136x128xf32>
    %cst_6 = arith.constant 5.000000e-01 : f32
    %15 = vector.broadcast %cst_6 : f32 to vector<136x128xf32>
    %16 = arith.mulf %15, %14 : vector<136x128xf32>
    %cst_7 = arith.constant 0.707106769 : f32
    %17 = vector.broadcast %cst_7 : f32 to vector<136x128xf32>
    %18 = arith.mulf %14, %17 : vector<136x128xf32>
    %19 = math.absf %18 : vector<136x128xf32>
    %cst_8 = arith.constant 0.327591091 : f32
    %20 = vector.broadcast %cst_8 : f32 to vector<136x128xf32>
    %21 = arith.mulf %20, %19 : vector<136x128xf32>
    %cst_9 = arith.constant 1.000000e+00 : f32
    %22 = vector.broadcast %cst_9 : f32 to vector<136x128xf32>
    %23 = arith.addf %22, %21 : vector<136x128xf32>
    %cst_10 = arith.constant 1.000000e+00 : f32
    %24 = vector.broadcast %cst_10 : f32 to vector<136x128xf32>
    %25 = arith.divf %24, %23 : vector<136x128xf32>
    %cst_11 = arith.constant 1.06140542 : f32
    %26 = vector.broadcast %cst_11 : f32 to vector<136x128xf32>
    %27 = arith.mulf %26, %25 : vector<136x128xf32>
    %cst_12 = arith.constant -1.45315206 : f32
    %28 = vector.broadcast %cst_12 : f32 to vector<136x128xf32>
    %29 = arith.addf %27, %28 : vector<136x128xf32>
    %30 = arith.mulf %29, %25 : vector<136x128xf32>
    %cst_13 = arith.constant 1.42141378 : f32
    %31 = vector.broadcast %cst_13 : f32 to vector<136x128xf32>
    %32 = arith.addf %30, %31 : vector<136x128xf32>
    %33 = arith.mulf %32, %25 : vector<136x128xf32>
    %cst_14 = arith.constant -0.284496725 : f32
    %34 = vector.broadcast %cst_14 : f32 to vector<136x128xf32>
    %35 = arith.addf %33, %34 : vector<136x128xf32>
    %36 = arith.mulf %35, %25 : vector<136x128xf32>
    %cst_15 = arith.constant 0.254829586 : f32
    %37 = vector.broadcast %cst_15 : f32 to vector<136x128xf32>
    %38 = arith.addf %36, %37 : vector<136x128xf32>
    %39 = arith.mulf %38, %25 : vector<136x128xf32>
    %40 = arith.mulf %19, %19 : vector<136x128xf32>
    %cst_16 = arith.constant 0.000000e+00 : f32
    %41 = vector.broadcast %cst_16 : f32 to vector<136x128xf32>
    %42 = arith.subf %41, %40 : vector<136x128xf32>
    %43 = math.exp %42 : vector<136x128xf32>
    %44 = arith.mulf %39, %43 : vector<136x128xf32>
    %cst_17 = arith.constant 1.000000e+00 : f32
    %45 = vector.broadcast %cst_17 : f32 to vector<136x128xf32>
    %46 = arith.subf %45, %44 : vector<136x128xf32>
    %cst_18 = arith.constant 0.000000e+00 : f32
    %47 = vector.broadcast %cst_18 : f32 to vector<136x128xf32>
    %48 = arith.cmpf olt, %18, %47 : vector<136x128xf32>
    %cst_19 = arith.constant 0.000000e+00 : f32
    %49 = vector.broadcast %cst_19 : f32 to vector<136x128xf32>
    %50 = arith.subf %49, %46 : vector<136x128xf32>
    %51 = arith.select %48, %50, %46 : vector<136x128xi1>, vector<136x128xf32>
    %cst_20 = arith.constant 1.000000e+00 : f32
    %52 = vector.broadcast %cst_20 : f32 to vector<136x128xf32>
    %53 = arith.addf %52, %51 : vector<136x128xf32>
    %54 = arith.mulf %16, %53 : vector<136x128xf32>
    %c0_21 = arith.constant 0 : index
    %c0_22 = arith.constant 0 : index
    %55 = vector.load %arg7[%c0_21, %c0_22] : memref<136x128xf32, #tpu.memory_space<vmem>>, vector<136x128xf32>
    tpu.vector_store %arg7[%c0_21, %c0_22], %54 {strides = array<i32>} : memref<136x128xf32, #tpu.memory_space<vmem>>, vector<136x128xf32>,
    %c0_23 = arith.constant 0 : index
    %c0_24 = arith.constant 0 : index
    %56 = tpu.strided_load %arg7[%c0_23, %c0_24] {strides = array<i32: 2, 1>} : memref<136x128xf32, #tpu.memory_space<vmem>>, vector<67x128xf32>
    %c1 = arith.constant 1 : index
    %c0_25 = arith.constant 0 : index
    %57 = tpu.strided_load %arg7[%c1, %c0_25] {strides = array<i32: 2, 1>} : memref<136x128xf32, #tpu.memory_space<vmem>>, vector<67x128xf32>
    %58 = vector.extract_strided_slice %56 {offsets = [0, 0], sizes = [64, 128], strides = [1, 1]} : vector<67x128xf32> to vector<64x128xf32>
    %59 = vector.extract_strided_slice %57 {offsets = [0, 0], sizes = [64, 128], strides = [1, 1]} : vector<67x128xf32> to vector<64x128xf32>
    %60 = vector.extract_strided_slice %56 {offsets = [1, 0], sizes = [64, 128], strides = [1, 1]} : vector<67x128xf32> to vector<64x128xf32>
    %61 = vector.extract_strided_slice %57 {offsets = [1, 0], sizes = [64, 128], strides = [1, 1]} : vector<67x128xf32> to vector<64x128xf32>
    %62 = vector.extract_strided_slice %56 {offsets = [2, 0], sizes = [64, 128], strides = [1, 1]} : vector<67x128xf32> to vector<64x128xf32>
    %63 = vector.extract_strided_slice %57 {offsets = [2, 0], sizes = [64, 128], strides = [1, 1]} : vector<67x128xf32> to vector<64x128xf32>
    %64 = vector.extract_strided_slice %56 {offsets = [3, 0], sizes = [64, 128], strides = [1, 1]} : vector<67x128xf32> to vector<64x128xf32>
    %65 = tpu.concatenate %58, %59, %60, %61, %62, %63, %64 in 1 : vector<64x128xf32>, vector<64x128xf32>, vector<64x128xf32>, vector<64x128xf32>, vector<64x128xf32>, vector<64x128xf32>, vector<64x128xf32> -> vector<64x896xf32>
    %c0_26 = arith.constant 0 : index
    %c0_27 = arith.constant 0 : index
    %66 = vector.load %arg4[%c0_26, %c0_27] : memref<896x128xf32, #tpu.memory_space<vmem>>, vector<896x128xf32>
    %cst_28 = arith.constant dense<0.000000e+00> : vector<64x128xf32>
    %67 = tpu.matmul %65, %66, %cst_28 {dimension_numbers = #tpu.dot_dimension_numbers<[1], [0], [0], [1], [0, 0, 1, 1], [], []>} : vector<64x896xf32>, vector<896x128xf32>, vector<64x128xf32> -> vector<64x128xf32>
    %c0_29 = arith.constant 0 : index
    %c0_30 = arith.constant 0 : index
    %68 = vector.load %arg5[%c0_29, %c0_30] : memref<1x128xf32, #tpu.memory_space<vmem>>, vector<1x128xf32>
    %69 = vector.broadcast %68 : vector<1x128xf32> to vector<64x128xf32>
    %70 = arith.addf %67, %69 : vector<64x128xf32>
    %cst_31 = arith.constant 5.000000e-01 : f32
    %71 = vector.broadcast %cst_31 : f32 to vector<64x128xf32>
    %72 = arith.mulf %71, %70 : vector<64x128xf32>
    %cst_32 = arith.constant 0.707106769 : f32
    %73 = vector.broadcast %cst_32 : f32 to vector<64x128xf32>
    %74 = arith.mulf %70, %73 : vector<64x128xf32>
    %75 = math.absf %74 : vector<64x128xf32>
    %cst_33 = arith.constant 0.327591091 : f32
    %76 = vector.broadcast %cst_33 : f32 to vector<64x128xf32>
    %77 = arith.mulf %76, %75 : vector<64x128xf32>
    %cst_34 = arith.constant 1.000000e+00 : f32
    %78 = vector.broadcast %cst_34 : f32 to vector<64x128xf32>
    %79 = arith.addf %78, %77 : vector<64x128xf32>
    %cst_35 = arith.constant 1.000000e+00 : f32
    %80 = vector.broadcast %cst_35 : f32 to vector<64x128xf32>
    %81 = arith.divf %80, %79 : vector<64x128xf32>
    %cst_36 = arith.constant 1.06140542 : f32
    %82 = vector.broadcast %cst_36 : f32 to vector<64x128xf32>
    %83 = arith.mulf %82, %81 : vector<64x128xf32>
    %cst_37 = arith.constant -1.45315206 : f32
    %84 = vector.broadcast %cst_37 : f32 to vector<64x128xf32>
    %85 = arith.addf %83, %84 : vector<64x128xf32>
    %86 = arith.mulf %85, %81 : vector<64x128xf32>
    %cst_38 = arith.constant 1.42141378 : f32
    %87 = vector.broadcast %cst_38 : f32 to vector<64x128xf32>
    %88 = arith.addf %86, %87 : vector<64x128xf32>
    %89 = arith.mulf %88, %81 : vector<64x128xf32>
    %cst_39 = arith.constant -0.284496725 : f32
    %90 = vector.broadcast %cst_39 : f32 to vector<64x128xf32>
    %91 = arith.addf %89, %90 : vector<64x128xf32>
    %92 = arith.mulf %91, %81 : vector<64x128xf32>
    %cst_40 = arith.constant 0.254829586 : f32
    %93 = vector.broadcast %cst_40 : f32 to vector<64x128xf32>
    %94 = arith.addf %92, %93 : vector<64x128xf32>
    %95 = arith.mulf %94, %81 : vector<64x128xf32>
    %96 = arith.mulf %75, %75 : vector<64x128xf32>
    %cst_41 = arith.constant 0.000000e+00 : f32
    %97 = vector.broadcast %cst_41 : f32 to vector<64x128xf32>
    %98 = arith.subf %97, %96 : vector<64x128xf32>
    %99 = math.exp %98 : vector<64x128xf32>
    %100 = arith.mulf %95, %99 : vector<64x128xf32>
    %cst_42 = arith.constant 1.000000e+00 : f32
    %101 = vector.broadcast %cst_42 : f32 to vector<64x128xf32>
    %102 = arith.subf %101, %100 : vector<64x128xf32>
    %cst_43 = arith.constant 0.000000e+00 : f32
    %103 = vector.broadcast %cst_43 : f32 to vector<64x128xf32>
    %104 = arith.cmpf olt, %74, %103 : vector<64x128xf32>
    %cst_44 = arith.constant 0.000000e+00 : f32
    %105 = vector.broadcast %cst_44 : f32 to vector<64x128xf32>
    %106 = arith.subf %105, %102 : vector<64x128xf32>
    %107 = arith.select %104, %106, %102 : vector<64x128xi1>, vector<64x128xf32>
    %cst_45 = arith.constant 1.000000e+00 : f32
    %108 = vector.broadcast %cst_45 : f32 to vector<64x128xf32>
    %109 = arith.addf %108, %107 : vector<64x128xf32>
    %110 = arith.mulf %72, %109 : vector<64x128xf32>
    %c0_46 = arith.constant 0 : index
    %c0_47 = arith.constant 0 : index
    %c0_48 = arith.constant 0 : index
    %111 = vector.load %arg6[%c0_46, %c0_47, %c0_48] : memref<1x64x128xf32, #tpu.memory_space<vmem>>, vector<1x64x128xf32>
    %112 = vector.shape_cast %111 : vector<1x64x128xf32> to vector<64x128xf32>
    %113 = vector.shape_cast %110 : vector<64x128xf32> to vector<1x64x128xf32>
    tpu.vector_store %arg6[%c0_46, %c0_47, %c0_48], %113 {strides = array<i32>} : memref<1x64x128xf32, #tpu.memory_space<vmem>>, vector<1x64x128xf32>,
    return
  }
  func.func @transform_0(%arg0: i32) -> (i32, i32, i32) {
    %c0_i32 = arith.constant 0 : i32
    %c0_i32_0 = arith.constant 0 : i32
    %c0_i32_1 = arith.constant 0 : i32
    return %arg0, %c0_i32, %c0_i32_0 : i32, i32, i32
  }
  func.func @transform_1(%arg0: i32) -> (i32, i32) {
    %c0_i32 = arith.constant 0 : i32
    %c0_i32_0 = arith.constant 0 : i32
    %c0_i32_1 = arith.constant 0 : i32
    return %c0_i32, %c0_i32_0 : i32, i32
  }
  func.func @transform_2(%arg0: i32) -> (i32, i32) {
    %c0_i32 = arith.constant 0 : i32
    %c0_i32_0 = arith.constant 0 : i32
    %c0_i32_1 = arith.constant 0 : i32
    return %c0_i32, %c0_i32_0 : i32, i32
  }
  func.func @transform_3(%arg0: i32) -> (i32, i32) {
    %c0_i32 = arith.constant 0 : i32
    %c0_i32_0 = arith.constant 0 : i32
    %c0_i32_1 = arith.constant 0 : i32
    return %c0_i32, %c0_i32_0 : i32, i32
  }
  func.func @transform_4(%arg0: i32) -> (i32, i32) {
    %c0_i32 = arith.constant 0 : i32
    %c0_i32_0 = arith.constant 0 : i32
    %c0_i32_1 = arith.constant 0 : i32
    return %c0_i32, %c0_i32_0 : i32, i32
  }
  func.func @transform_5(%arg0: i32) -> (i32, i32, i32) {
    %c0_i32 = arith.constant 0 : i32
    %c0_i32_0 = arith.constant 0 : i32
    %c0_i32_1 = arith.constant 0 : i32
    return %arg0, %c0_i32, %c0_i32_0 : i32, i32, i32
  }
}

</mosaic_0001>

<bundles_post_ra>
// kernel: tpu_custom_call.1
= control target key start
LH: loop header
LB: loop body
LE: loop exit
PB: predicated region body
PF: predicated region fallthrough
CT: control target
= control target key end

     0   :  { %10 = vsyncpa [#allocation4], 0  ;;  %s4339_s0 = inlined_call_operand.vmem [shape: f32[1,142,16], index: 0, kind: input, shape index: {}]   ;;  %s4340_s1 = inlined_call_operand.vmem [shape: f32[112,128], index: 1, kind: input, shape index: {}]   ;;  %s4341_s2 = inlined_call_operand.vmem [shape: f32[1,128], index: 2, kind: input, shape index: {}]   ;;  %s4342_s3 = inlined_call_operand.hbm [shape: f32[896,128], index: 3, kind: input, shape index: {}]   ;;  %s4343_s4 = inlined_call_operand.vmem [shape: f32[1,128], index: 4, kind: input, shape index: {}]   ;;  %s4344_s5 = inlined_call_operand.hbm [shape: f32[1,64,128], index: 5, kind: output, shape index: {}]  }
   0x1   :  { %11 = vsyncpa [#allocation5], 0  ;;  %s3034_s18 = smov [#allocation3]   ;;  %s2986_s22 = scalar_lea.hbm %s4342_s3, 14336 }
   0x2   :  { %s23_s19 = sshll.u32 %s3034_s18, 4  ;;  %p2987_p0 = scmp.ne.s32.totalorder %s4342_s3, %s2986_s22  ;;  %s24_s19 = int_to_ptr.vmem [resolvable:$true] %s23_s19 }
   0x3   :  { %p2990_p1 = scmp.lt.u32.totalorder %s2986_s22, %s4342_s3 }
   0x5   :  { %p2992_p2 = pnand %p2990_p1, %p2987_p0 }
   0x7   :  { %2995 = shalt.err (!%p2992_p2)
}
   0x8   :  { %s2996_s27 = scalar_lea.vmem %s24_s19, 14336  ;;  %p3001_p4 = scmp.lt.s32.totalorder %s24_s19, %s24_s19 }
   0x9   :  { %p2997_p3 = scmp.ne.s32.totalorder %s24_s19, %s2996_s27  ;;  %p3002_p5 = scmp.lt.s32.totalorder %s2996_s27, %s2996_s27 }
   0xb   :  { %p3003_p6 = por %p3002_p5, %p3001_p4 }
   0xd   :  { %p3004_p7 = pnand %p3003_p6, %p2997_p3 }
   0xf   :  { %3007 = shalt.err (!%p3004_p7)
}
  0x10   :  { %s3035_s28 = smov 128   ;;  %s3036_s29 = smov 8  }
  0x11   :  { %29 = dma.hbm_to_vmem [thread:$0]  %s4342_s3, 14336, %s24_s19, [#allocation4], %s3035_s28, %s3035_s28, %s3036_s29  }
  0x12   :  { %3030 = dma.done.wait [#allocation4], 14336  }
  0x13   :  { %3031 = vsyncadd [#allocation4], 4294952960  ;;  %v3037_v0 = vmov 0.0|0.0   ;;  %v3096_v1 = vld [vmem:[%s4339_s0] sm:$0xff]  ;;  %v3101_v2 = vld [vmem:[%s4339_s0 + $0x8] sm:$0xff]  ;;  %vm245_vm0 = vcmask 1044480  }
  0x14   :  { %2723 = vmatprep.subr.bf16.mxu0 %v3037_v0  ;;  %vm71_vm1 = vcmask 1046528   ;;  %vm332_vm2 = vcmask 1043456   ;;  %vm158_vm3 = vcmask 1045504   ;;  %v246_v3 = vrot.slane %v3096_v1, 3  ;;  %v3114_v11 = vld [vmem:[%s4339_s0 + $0x10] sm:$0xff]  ;;  %s3038_s12 = smov 48  }
  0x15   :  { %v247_v4 = vrot.slane %v3101_v2, 3  ;;  %v72_v5 = vrot.slane %v3096_v1, 1  ;;  %v73_v6 = vrot.slane %v3101_v2, 1  ;;  %v333_v7 = vrot.slane %v3096_v1, 4  ;;  %s3039_s13 = smov 16   ;;  %s3040_s14 = smov 64  }
  0x16   :  { %v334_v8 = vrot.slane %v3101_v2, 4  ;;  %v159_v9 = vrot.slane %v3096_v1, 2  ;;  %v160_v10 = vrot.slane %v3101_v2, 2  ;;  %v420_v14 = vrot.slane %v3096_v1, 5  ;;  %s3041_s15 = smov 32   ;;  %s3042_s16 = smov 80  }
  0x17   :  { %v248_v12 = vsel %vm245_vm0, %v246_v3, %v247_v4  ;;  %v74_v13 = vsel %vm71_vm1, %v72_v5, %v73_v6  ;;  %v421_v17 = vrot.slane %v3101_v2, 5  ;;  %v75_v18 = vrot.slane %v3114_v11, 1  ;;  %v3141_v28 = vld [vmem:[%s4339_s0 + $0x18] sm:$0xff]  ;;  %s3043_s19 = smov 96   ;;  %v701_v37 = vld [vmem:[%s4340_s1] sm:$0xff]  ;;  %v702_v38 = vld [vmem:[%s4340_s1 + $0x8] sm:$0xff] }
  0x18   :  { %281 = vrot.lane.b32.xlu1 %v248_v12, %s3038_s12  ;;  %107 = vrot.lane.b32.xlu0 %v74_v13, %s3039_s13  ;;  %v335_v15 = vsel %vm332_vm2, %v333_v7, %v334_v8  ;;  %v161_v16 = vsel %vm158_vm3, %v159_v9, %v160_v10  ;;  %vm419_vm4 = vcmask 1042432   ;;  %v507_v19 = vrot.slane %v3096_v1, 6  ;;  %v3170_v43 = vld [vmem:[%s4339_s0 + $0x20] sm:$0xff]  ;;  %v703_v44 = vld [vmem:[%s4340_s1 + $0x10] sm:$0xff] }
  0x19   :  { %v422_v20 = vsel %vm419_vm4, %v420_v14, %v421_v17  ;;  %v76_v21 = vsel %vm71_vm1, %v73_v6, %v75_v18  ;;  %v508_v22 = vrot.slane %v3101_v2, 6  ;;  %v162_v23 = vrot.slane %v3114_v11, 2  ;;  %v704_v45 = vld [vmem:[%s4340_s1 + $0x18] sm:$0xff]  ;;  %v705_v52 = vld [vmem:[%s4340_s1 + $0x20] sm:$0xff]  ;;  %v706_v53 = vld [vmem:[%s4340_s1 + $0x28] sm:$0xff] }
  0x1a   :  { %vm506_vm5 = vcmask 1041408   ;;  %v336_v26 = vrot.slane %v3114_v11, 4  ;;  %v249_v27 = vrot.slane %v3114_v11, 3  ;;  %v423_v31 = vrot.slane %v3114_v11, 5  ;;  %v707_v59 = vld [vmem:[%s4340_s1 + $0x30] sm:$0xff]  ;;  %v708_v60 = vld [vmem:[%s4340_s1 + $0x38] sm:$0xff] }
  0x1b   :  { %v509_v24 = vsel %vm506_vm5, %v507_v19, %v508_v22  ;;  %v163_v25 = vsel %vm158_vm3, %v160_v10, %v162_v23  ;;  %v77_v32 = vrot.slane %v3141_v28, 1  ;;  %v510_v35 = vrot.slane %v3114_v11, 6  ;;  %v3215_v6 = vld [vmem:[%s4339_s0 + $0x28] sm:$0xff]  ;;  %v709_v7 = vld [vmem:[%s4340_s1 + $0x40] sm:$0xff] }
  0x1c   :  { %368 = vrot.lane.b32.xlu1 %v335_v15, %s3040_s14  ;;  %194 = vrot.lane.b32.xlu0 %v161_v16, %s3041_s15  ;;  %v337_v29 = vsel %vm332_vm2, %v334_v8, %v336_v26  ;;  %v250_v30 = vsel %vm245_vm0, %v247_v4, %v249_v27  ;;  %v424_v33 = vsel %vm419_vm4, %v421_v17, %v423_v31  ;;  %v164_v36 = vrot.slane %v3141_v28, 2  ;;  %v710_v8 = vld [vmem:[%s4340_s1 + $0x48] sm:$0xff]  ;;  %v711_v15 = vld [vmem:[%s4340_s1 + $0x50] sm:$0xff] }
  0x1d   :  { %v78_v34 = vsel %vm71_vm1, %v75_v18, %v77_v32  ;;  %v511_v39 = vsel %vm506_vm5, %v508_v22, %v510_v35  ;;  %v338_v41 = vrot.slane %v3141_v28, 4  ;;  %v251_v42 = vrot.slane %v3141_v28, 3  ;;  %v712_v16 = vld [vmem:[%s4340_s1 + $0x58] sm:$0xff]  ;;  %v713_v22 = vld [vmem:[%s4340_s1 + $0x60] sm:$0xff] }
  0x1e   :  { %v165_v40 = vsel %vm158_vm3, %v162_v23, %v164_v36  ;;  %v2724_v46 = vpack.c.bf16 %v702_v38, %v701_v37  ;;  %v425_v47 = vrot.slane %v3141_v28, 5  ;;  %v79_v50 = vrot.slane %v3170_v43, 1  ;;  %v714_v23 = vld [vmem:[%s4340_s1 + $0x68] sm:$0xff] }
  0x1f   :  { %v339_v48 = vsel %vm332_vm2, %v336_v26, %v338_v41  ;;  %v252_v49 = vsel %vm245_vm0, %v249_v27, %v251_v42  ;;  %v2727_v51 = vpack.c.bf16 %v704_v45, %v703_v44  ;;  %v512_v54 = vrot.slane %v3141_v28, 6 }
  0x20   :  { %455 = vrot.lane.b32.xlu1 %v422_v20, %s3042_s16  ;;  %109 = vrot.lane.b32.xlu0 %v76_v21, %s3039_s13  ;;  %v426_v55 = vsel %vm419_vm4, %v423_v31, %v425_v47  ;;  %v80_v56 = vsel %vm71_vm1, %v77_v32, %v79_v50  ;;  %v166_v57 = vrot.slane %v3170_v43, 2  ;;  %v2730_v58 = vpack.c.bf16 %v706_v53, %v705_v52 }
  0x21   :  { %2725 = vmatpush3.bf16.msra.mxu0 %v2724_v46  ;;  %v340_v61 = vrot.slane %v3170_v43, 4  ;;  %v513_v62 = vsel %vm506_vm5, %v510_v35, %v512_v54  ;;  %v253_v3 = vrot.slane %v3170_v43, 3  ;;  %v2733_v4 = vpack.c.bf16 %v708_v60, %v707_v59 }
  0x22   :  { %2726 = vmatprep.subr.bf16.mxu0 %v3037_v0  ;;  %v167_v63 = vsel %vm158_vm3, %v164_v36, %v166_v57  ;;  %vm3044_vm6 = vmmov 0   ;;  %v3045_v5 = vmov 0.0   ;;  %v427_v12 = vrot.slane %v3170_v43, 5 }
  0x23   :  { %2628 = vmatprep.mubr.msk.f32.mxu0 %vm3044_vm6, %v3045_v5  ;;  %v341_v9 = vsel %vm332_vm2, %v338_v41, %v340_v61  ;;  %v254_v10 = vsel %vm245_vm0, %v251_v42, %v253_v3  ;;  %v81_v13 = vrot.slane %v3215_v6, 1  ;;  %v2736_v14 = vpack.c.bf16 %v710_v8, %v709_v7  ;;  %v3283_v42 = vld [vmem:[%s4339_s0 + $0x38] sm:$0xff] }
  0x24   :  { %542 = vrot.lane.b32.xlu1 %v509_v24, %s3043_s19  ;;  %196 = vrot.lane.b32.xlu0 %v163_v25, %s3041_s15  ;;  %v514_v17 = vrot.slane %v3170_v43, 6  ;;  %v428_v18 = vsel %vm419_vm4, %v425_v47, %v427_v12  ;;  %v168_v20 = vrot.slane %v3215_v6, 2  ;;  %v2739_v21 = vpack.c.bf16 %v712_v16, %v711_v15 }
  0x25   :  { %2728 = vmatpush3.bf16.msra.mxu0 %v2727_v51  ;;  %v82_v19 = vsel %vm71_vm1, %v79_v50, %v81_v13  ;;  %v342_v24 = vrot.slane %v3215_v6, 4  ;;  %v255_v27 = vrot.slane %v3215_v6, 3  ;;  %v516_v36 = vrot.slane %v3215_v6, 6 }
  0x26   :  { %2729 = vmatprep.subr.bf16.mxu0 %v3037_v0  ;;  %v515_v25 = vsel %vm506_vm5, %v512_v54, %v514_v17  ;;  %v169_v26 = vsel %vm158_vm3, %v166_v57, %v168_v20  ;;  %v85_v47 = vrot.slane %v3283_v42, 1  ;;  %v172_v51 = vrot.slane %v3283_v42, 2 }
  0x27   :  { %v343_v31 = vsel %vm332_vm2, %v340_v61, %v342_v24  ;;  %v256_v32 = vsel %vm245_vm0, %v253_v3, %v255_v27  ;;  %v517_v38 = vsel %vm506_vm5, %v514_v17, %v516_v36  ;;  %v346_v54 = vrot.slane %v3283_v42, 4 }
  0x28   :  { %370 = vrot.lane.b32.xlu1 %v337_v29, %s3040_s14  ;;  %283 = vrot.lane.b32.xlu0 %v250_v30, %s3038_s12  ;;  %v2742_v29 = vpack.c.bf16 %v714_v23, %v713_v22  ;;  %v3259_v30 = vld [vmem:[%s4339_s0 + $0x30] sm:$0xff]  ;;  %v433_v59 = vrot.slane %v3283_v42, 5  ;;  %vm593_vm7 = vcmask 130048   ;;  %vm611_vm8 = vcmask 261120  }
  0x29   :  { %2731 = vmatpush3.bf16.msra.mxu0 %v2730_v58  ;;  %v170_v37 = vrot.slane %v3259_v30, 2  ;;  %v257_v41 = vrot.slane %v3259_v30, 3  ;;  %v431_v46 = vrot.slane %v3259_v30, 5  ;;  %v518_v50 = vrot.slane %v3259_v30, 6 }
  0x2a   :  { %2732 = vmatprep.subr.bf16.mxu0 %v3037_v0  ;;  %vm629_vm9 = vcmask 392192   ;;  %vm647_vm10 = vcmask 523264   ;;  %vm665_vm11 = vcmask 654336   ;;  %vm683_vm12 = vcmask 785408  }
  0x2b   :  { %v258_v45 = vsel %vm245_vm0, %v255_v27, %v257_v41  ;;  %v519_v52 = vsel %vm506_vm5, %v516_v36, %v518_v50  ;;  %v173_v53 = vsel %vm158_vm3, %v170_v37, %v172_v51  ;;  %v434_v61 = vsel %vm419_vm4, %v431_v46, %v433_v59 }
  0x2c   :  { %457 = vrot.lane.b32.xlu1 %v424_v33, %s3042_s16  ;;  %111 = vrot.lane.b32.xlu0 %v78_v34, %s3039_s13  ;;  %v429_v33 = vrot.slane %v3215_v6, 5  ;;  %v83_v34 = vrot.slane %v3259_v30, 1  ;;  %vm722_vm13 = vcmask 916480  }
  0x2d   :  { %2734 = vmatpush3.bf16.msra.mxu0 %v2733_v4 }
  0x2e   :  { %2735 = vmatprep.subr.bf16.mxu0 %v3037_v0  ;;  %v430_v35 = vsel %vm419_vm4, %v427_v12, %v429_v33 }
  0x30   :  { %544 = vrot.lane.b32.xlu1 %v511_v39, %s3043_s19  ;;  %198 = vrot.lane.b32.xlu0 %v165_v40, %s3041_s15  ;;  %v171_v39 = vsel %vm158_vm3, %v168_v20, %v170_v37  ;;  %v344_v40 = vrot.slane %v3259_v30, 4 }
  0x31   :  { %2737 = vmatpush3.bf16.msra.mxu0 %v2736_v14 }
  0x32   :  { %2738 = vmatprep.subr.bf16.mxu0 %v3037_v0  ;;  %v345_v44 = vsel %vm332_vm2, %v342_v24, %v344_v40  ;;  %v347_v57 = vsel %vm332_vm2, %v344_v40, %v346_v54  ;;  %v3352_v24 = vld [vmem:[%s4339_s0 + $0x50] sm:$0xff] }
  0x33   :  { %v352_v36 = vrot.slane %v3352_v24, 4  ;;  %v265_v37 = vrot.slane %v3352_v24, 3 }
  0x34   :  { %372 = vrot.lane.b32.xlu1 %v339_v48, %s3040_s14  ;;  %285 = vrot.lane.b32.xlu0 %v252_v49, %s3038_s12  ;;  %v432_v48 = vsel %vm419_vm4, %v429_v33, %v431_v46  ;;  %v86_v49 = vsel %vm71_vm1, %v83_v34, %v85_v47 }
  0x35   :  { %2740 = vmatpush3.bf16.msra.mxu0 %v2739_v21 }
  0x36   :  { %2741 = vmatprep.subr.bf16.mxu0 %v3037_v0  ;;  %v84_v0 = vsel %vm71_vm1, %v81_v13, %v83_v34  ;;  %v178_v34 = vrot.slane %v3352_v24, 2 }
  0x38   :  { %459 = vrot.lane.b32.xlu1 %v426_v55, %s3042_s16  ;;  %113 = vrot.lane.b32.xlu0 %v80_v56, %s3039_s13  ;;  %v259_v55 = vrot.slane %v3283_v42, 3  ;;  %v3306_v56 = vld [vmem:[%s4339_s0 + $0x40] sm:$0xff] }
  0x39   :  { %2743 = vmatpush3.bf16.msra.mxu0 %v2742_v29  ;;  %v87_v60 = vrot.slane %v3306_v56, 1  ;;  %v174_v3 = vrot.slane %v3306_v56, 2  ;;  %v348_v8 = vrot.slane %v3306_v56, 4  ;;  %v435_v14 = vrot.slane %v3306_v56, 5 }
  0x3a   :  { %v260_v58 = vsel %vm245_vm0, %v257_v41, %v259_v55  ;;  %v91_v29 = vrot.slane %v3352_v24, 1  ;;  %v439_v41 = vrot.slane %v3352_v24, 5 }
  0x3b   :  { %v175_v7 = vsel %vm158_vm3, %v172_v51, %v174_v3  ;;  %v349_v12 = vsel %vm332_vm2, %v346_v54, %v348_v8  ;;  %v436_v16 = vsel %vm419_vm4, %v433_v59, %v435_v14  ;;  %v3400_v59 = vld [vmem:[%s4339_s0 + $0x60] sm:$0xff] }
  0x3c   :  { %546 = vrot.lane.b32.xlu1 %v513_v62, %s3043_s19  ;;  %200 = vrot.lane.b32.xlu0 %v167_v63, %s3041_s15  ;;  %v88_v62 = vsel %vm71_vm1, %v85_v47, %v87_v60  ;;  %v520_v63 = vrot.slane %v3283_v42, 6  ;;  %v526_v47 = vrot.slane %v3352_v24, 6 }
  0x3e   :  { %v521_v4 = vsel %vm506_vm5, %v518_v50, %v520_v63 }
  0x40   :  { %374 = vrot.lane.b32.xlu1 %v341_v9, %s3040_s14  ;;  %287 = vrot.lane.b32.xlu0 %v254_v10, %s3038_s12  ;;  %v261_v9 = vrot.slane %v3306_v56, 3  ;;  %v3329_v10 = vld [vmem:[%s4339_s0 + $0x48] sm:$0xff] }
  0x41   :  { %v89_v15 = vrot.slane %v3329_v10, 1  ;;  %v350_v22 = vrot.slane %v3329_v10, 4  ;;  %v263_v23 = vrot.slane %v3329_v10, 3  ;;  %v437_v27 = vrot.slane %v3329_v10, 5 }
  0x42   :  { %v262_v13 = vsel %vm245_vm0, %v259_v55, %v261_v9  ;;  %v524_v33 = vrot.slane %v3329_v10, 6 }
  0x43   :  { %v90_v17 = vsel %vm71_vm1, %v87_v60, %v89_v15  ;;  %v266_v40 = vsel %vm245_vm0, %v263_v23, %v265_v37 }
  0x44   :  { %461 = vrot.lane.b32.xlu1 %v428_v18, %s3042_s16  ;;  %115 = vrot.lane.b32.xlu0 %v82_v19, %s3039_s13  ;;  %v522_v18 = vrot.slane %v3306_v56, 6  ;;  %v176_v19 = vrot.slane %v3329_v10, 2  ;;  %v527_v51 = vsel %vm506_vm5, %v524_v33, %v526_v47 }
  0x46   :  { %v523_v20 = vsel %vm506_vm5, %v520_v63, %v522_v18  ;;  %v177_v21 = vsel %vm158_vm3, %v174_v3, %v176_v19  ;;  %v95_v3 = vrot.slane %v3400_v59, 1 }
  0x48   :  { %548 = vrot.lane.b32.xlu1 %v515_v25, %s3043_s19  ;;  %202 = vrot.lane.b32.xlu0 %v169_v26, %s3041_s15  ;;  %v351_v25 = vsel %vm332_vm2, %v348_v8, %v350_v22  ;;  %v264_v26 = vsel %vm245_vm0, %v261_v9, %v263_v23 }
  0x4c   :  { %376 = vrot.lane.b32.xlu1 %v343_v31, %s3040_s14  ;;  %289 = vrot.lane.b32.xlu0 %v256_v32, %s3038_s12  ;;  %v438_v31 = vsel %vm419_vm4, %v435_v14, %v437_v27  ;;  %v92_v32 = vsel %vm71_vm1, %v89_v15, %v91_v29  ;;  %v182_v14 = vrot.slane %v3400_v59, 2 }
  0x50   :  { %463 = vrot.lane.b32.xlu1 %v430_v35, %s3042_s16  ;;  %117 = vrot.lane.b32.xlu0 %v84_v0, %s3039_s13  ;;  %v525_v35 = vsel %vm506_vm5, %v522_v18, %v524_v33  ;;  %v179_v0 = vsel %vm158_vm3, %v176_v19, %v178_v34 }
  0x54   :  { %550 = vrot.lane.b32.xlu1 %v517_v38, %s3043_s19  ;;  %204 = vrot.lane.b32.xlu0 %v171_v39, %s3041_s15  ;;  %v3375_v38 = vld [vmem:[%s4339_s0 + $0x58] sm:$0xff]  ;;  %v353_v39 = vsel %vm332_vm2, %v350_v22, %v352_v36  ;;  %v269_v22 = vrot.slane %v3400_v59, 3 }
  0x55   :  { %v267_v54 = vrot.slane %v3375_v38, 3  ;;  %v441_v63 = vrot.slane %v3375_v38, 5 }
  0x57   :  { %v442_v9 = vsel %vm419_vm4, %v439_v41, %v441_v63  ;;  %v270_v33 = vsel %vm245_vm0, %v267_v54, %v269_v22 }
  0x58   :  { %378 = vrot.lane.b32.xlu1 %v345_v44, %s3040_s14  ;;  %291 = vrot.lane.b32.xlu0 %v258_v45, %s3038_s12  ;;  %v93_v44 = vrot.slane %v3375_v38, 1  ;;  %v440_v45 = vsel %vm419_vm4, %v437_v27, %v439_v41 }
  0x5a   :  { %v94_v46 = vsel %vm71_vm1, %v91_v29, %v93_v44  ;;  %v443_v29 = vrot.slane %v3400_v59, 5 }
  0x5c   :  { %465 = vrot.lane.b32.xlu1 %v432_v48, %s3042_s16  ;;  %119 = vrot.lane.b32.xlu0 %v86_v49, %s3039_s13  ;;  %v180_v48 = vrot.slane %v3375_v38, 2 }
  0x60   :  { %552 = vrot.lane.b32.xlu1 %v519_v52, %s3043_s19  ;;  %206 = vrot.lane.b32.xlu0 %v173_v53, %s3041_s15  ;;  %v181_v52 = vsel %vm158_vm3, %v178_v34, %v180_v48  ;;  %v354_v53 = vrot.slane %v3375_v38, 4 }
  0x64   :  { %380 = vrot.lane.b32.xlu1 %v347_v57, %s3040_s14  ;;  %293 = vrot.lane.b32.xlu0 %v260_v58, %s3038_s12 }
  0x68   :  { %467 = vrot.lane.b32.xlu1 %v434_v61, %s3042_s16  ;;  %121 = vrot.lane.b32.xlu0 %v88_v62, %s3039_s13  ;;  %v355_v62 = vsel %vm332_vm2, %v352_v36, %v354_v53 }
  0x6c   :  { %554 = vrot.lane.b32.xlu1 %v521_v4, %s3043_s19  ;;  %208 = vrot.lane.b32.xlu0 %v175_v7, %s3041_s15 }
  0x70   :  { %382 = vrot.lane.b32.xlu1 %v349_v12, %s3040_s14  ;;  %295 = vrot.lane.b32.xlu0 %v262_v13, %s3038_s12  ;;  %v96_v12 = vsel %vm71_vm1, %v93_v44, %v95_v3  ;;  %v528_v13 = vrot.slane %v3375_v38, 6 }
  0x72   :  { %v529_v19 = vsel %vm506_vm5, %v526_v47, %v528_v13 }
  0x74   :  { %469 = vrot.lane.b32.xlu1 %v436_v16, %s3042_s16  ;;  %123 = vrot.lane.b32.xlu0 %v90_v17, %s3039_s13 }
  0x78   :  { %556 = vrot.lane.b32.xlu1 %v523_v20, %s3043_s19  ;;  %210 = vrot.lane.b32.xlu0 %v177_v21, %s3041_s15  ;;  %v183_v20 = vsel %vm158_vm3, %v180_v48, %v182_v14  ;;  %v356_v21 = vrot.slane %v3400_v59, 4 }
  0x7c   :  { %384 = vrot.lane.b32.xlu1 %v351_v25, %s3040_s14  ;;  %297 = vrot.lane.b32.xlu0 %v264_v26, %s3038_s12  ;;  %v3431_v26 = vld [vmem:[%s4339_s0 + $0x68] sm:$0xff] }
  0x7d   :  { %v97_v34 = vrot.slane %v3431_v26, 1  ;;  %v184_v41 = vrot.slane %v3431_v26, 2 }
  0x80   :  { %471 = vrot.lane.b32.xlu1 %v438_v31, %s3042_s16  ;;  %125 = vrot.lane.b32.xlu0 %v92_v32, %s3039_s13  ;;  %v357_v32 = vsel %vm332_vm2, %v354_v53, %v356_v21 }
  0x84   :  { %558 = vrot.lane.b32.xlu1 %v525_v35, %s3043_s19  ;;  %212 = vrot.lane.b32.xlu0 %v179_v0, %s3041_s15 }
  0x88   :  { %386 = vrot.lane.b32.xlu1 %v353_v39, %s3040_s14  ;;  %299 = vrot.lane.b32.xlu0 %v266_v40, %s3038_s12  ;;  %v98_v39 = vsel %vm71_vm1, %v95_v3, %v97_v34  ;;  %v530_v40 = vrot.slane %v3400_v59, 6 }
  0x8a   :  { %v282_v49 = vpop.permute.xlu1 %281  ;;  %v108_v50 = vpop.permute.xlu0 %107  ;;  %v531_v48 = vsel %vm506_vm5, %v528_v13, %v530_v40 }
  0x8b   :  { %v594_v55 = vsel %vm593_vm7, %v3096_v1, %v108_v50  ;;  %v268_v1 = vsel %vm245_vm0, %v265_v37, %v267_v54  ;;  %v358_v50 = vrot.slane %v3431_v26, 4  ;;  %v3464_v54 = vld [vmem:[%s4339_s0 + $0x70] sm:$0xff] }
  0x8c   :  { %473 = vrot.lane.b32.xlu1 %v440_v45, %s3042_s16  ;;  %127 = vrot.lane.b32.xlu0 %v94_v46, %s3039_s13 }
  0x8e   :  { %v369_v57 = vpop.permute.xlu1 %368  ;;  %v195_v58 = vpop.permute.xlu0 %194 }
  0x8f   :  { %v612_v60 = vsel %vm611_vm8, %v594_v55, %v195_v58 }
  0x90   :  { %v630_v61 = vsel %vm629_vm9, %v612_v60, %v282_v49  ;;  %560 = vrot.lane.b32.xlu1 %v527_v51, %s3043_s19  ;;  %214 = vrot.lane.b32.xlu0 %v181_v52, %s3041_s15  ;;  %v185_v49 = vsel %vm158_vm3, %v182_v14, %v184_v41  ;;  %v271_v51 = vrot.slane %v3431_v26, 3  ;;  %v359_v60 = vsel %vm332_vm2, %v356_v21, %v358_v50 }
  0x91   :  { %v648_v8 = vsel %vm647_vm10, %v630_v61, %v369_v57  ;;  %v445_v57 = vrot.slane %v3431_v26, 5 }
  0x92   :  { %v456_v4 = vpop.permute.xlu1 %455  ;;  %v110_v7 = vpop.permute.xlu0 %109  ;;  %v272_v61 = vsel %vm245_vm0, %v269_v22, %v271_v51  ;;  %v3497_v22 = vld [vmem:[%s4339_s0 + $0x78] sm:$0xff] }
  0x93   :  { %v666_v15 = vsel %vm665_vm11, %v648_v8, %v456_v4  ;;  %v595_v27 = vsel %vm593_vm7, %v3101_v2, %v110_v7  ;;  %v444_v2 = vsel %vm419_vm4, %v441_v63, %v443_v29  ;;  %v446_v7 = vsel %vm419_vm4, %v443_v29, %v445_v57 }
  0x94   :  { %388 = vrot.lane.b32.xlu1 %v355_v62, %s3040_s14  ;;  %301 = vrot.lane.b32.xlu0 %v268_v1, %s3038_s12  ;;  %v99_v62 = vrot.slane %v3464_v54, 1 }
  0x96   :  { %v543_v16 = vpop.permute.xlu1 %542  ;;  %v197_v17 = vpop.permute.xlu0 %196  ;;  %v100_v8 = vsel %vm71_vm1, %v97_v34, %v99_v62 }
  0x97   :  { %v684_v18 = vsel %vm683_vm12, %v666_v15, %v543_v16  ;;  %v613_v31 = vsel %vm611_vm8, %v595_v27, %v197_v17 }
  0x98   :  { %475 = vrot.lane.b32.xlu1 %v442_v9, %s3042_s16  ;;  %129 = vrot.lane.b32.xlu0 %v96_v12, %s3039_s13  ;;  %v186_v9 = vrot.slane %v3464_v54, 2 }
  0x99   :  { %2629 = vmatmul.mubr.msk.f32.vlgmr.msra.gmra.mrb[0].mxu0 %vm722_vm13, %v684_v18  ;;  %v360_v18 = vrot.slane %v3464_v54, 4 }
  0x9a   :  { %v371_v23 = vpop.permute.xlu1 %370  ;;  %v284_v25 = vpop.permute.xlu0 %283  ;;  %2631 = vmatprep.mubr.msk.f32.mxu0 %vm3044_vm6, %v3045_v5  ;;  %v187_v17 = vsel %vm158_vm3, %v184_v41, %v186_v9 }
  0x9b   :  { %v631_v35 = vsel %vm629_vm9, %v613_v31, %v284_v25  ;;  %v447_v25 = vrot.slane %v3464_v54, 5  ;;  %v361_v29 = vsel %vm332_vm2, %v358_v50, %v360_v18 }
  0x9c   :  { %562 = vrot.lane.b32.xlu1 %v529_v19, %s3043_s19  ;;  %216 = vrot.lane.b32.xlu0 %v183_v20, %s3041_s15  ;;  %v649_v37 = vsel %vm647_vm10, %v631_v35, %v371_v23  ;;  %v273_v19 = vrot.slane %v3464_v54, 3 }
  0x9e   :  { %v458_v0 = vpop.permute.xlu1 %457  ;;  %v112_v36 = vpop.permute.xlu0 %111  ;;  %v274_v31 = vsel %vm245_vm0, %v271_v51, %v273_v19  ;;  %v3530_v51 = vld [vmem:[%s4339_s0 + $0x80] sm:$0xff] }
  0x9f   :  { %v667_v44 = vsel %vm665_vm11, %v649_v37, %v458_v0  ;;  %v596_v55 = vsel %vm593_vm7, %v3114_v11, %v112_v36  ;;  %v532_v11 = vrot.slane %v3431_v26, 6  ;;  %v448_v36 = vsel %vm419_vm4, %v445_v57, %v447_v25 }
  0xa0   :  { %390 = vrot.lane.b32.xlu1 %v357_v32, %s3040_s14  ;;  %303 = vrot.lane.b32.xlu0 %v270_v33, %s3038_s12  ;;  %v101_v32 = vrot.slane %v3497_v22, 1  ;;  %v188_v37 = vrot.slane %v3497_v22, 2 }
  0xa1   :  { %v533_v16 = vsel %vm506_vm5, %v530_v40, %v532_v11 }
  0xa2   :  { %v545_v45 = vpop.permute.xlu1 %544  ;;  %v199_v46 = vpop.permute.xlu0 %198 }
  0xa3   :  { %v685_v47 = vsel %vm683_vm12, %v667_v44, %v545_v45  ;;  %v614_v58 = vsel %vm611_vm8, %v596_v55, %v199_v46  ;;  %v189_v46 = vsel %vm158_vm3, %v186_v9, %v188_v37 }
  0xa4   :  { %477 = vrot.lane.b32.xlu1 %v444_v2, %s3042_s16  ;;  %131 = vrot.lane.b32.xlu0 %v98_v39, %s3039_s13  ;;  %v102_v2 = vsel %vm71_vm1, %v99_v62, %v101_v32 }
  0xa5   :  { %2632 = vmatmul.mubr.msk.f32.gmra.mrb[2].mxu0 %vm722_vm13, %v685_v47  ;;  %v362_v47 = vrot.slane %v3497_v22, 4 }
  0xa6   :  { %v373_v52 = vpop.permute.xlu1 %372  ;;  %v286_v53 = vpop.permute.xlu0 %285  ;;  %2634 = vmatprep.mubr.msk.f32.mxu0 %vm3044_vm6, %v3045_v5 }
  0xa7   :  { %v632_v1 = vsel %vm629_vm9, %v614_v58, %v286_v53  ;;  %v449_v53 = vrot.slane %v3497_v22, 5  ;;  %v363_v57 = vsel %vm332_vm2, %v360_v18, %v362_v47 }
  0xa8   :  { %564 = vrot.lane.b32.xlu1 %v531_v48, %s3043_s19  ;;  %218 = vrot.lane.b32.xlu0 %v185_v49, %s3041_s15  ;;  %v650_v4 = vsel %vm647_vm10, %v632_v1, %v373_v52  ;;  %v275_v48 = vrot.slane %v3497_v22, 3 }
  0xaa   :  { %v460_v63 = vpop.permute.xlu1 %459  ;;  %v114_v3 = vpop.permute.xlu0 %113  ;;  %v276_v58 = vsel %vm245_vm0, %v273_v19, %v275_v48 }
  0xab   :  { %v668_v12 = vsel %vm665_vm11, %v650_v4, %v460_v63  ;;  %v597_v23 = vsel %vm593_vm7, %v3141_v28, %v114_v3  ;;  %v534_v28 = vrot.slane %v3464_v54, 6  ;;  %v190_v4 = vrot.slane %v3530_v51, 2 }
  0xac   :  { %392 = vrot.lane.b32.xlu1 %v359_v60, %s3040_s14  ;;  %305 = vrot.lane.b32.xlu0 %v272_v61, %s3038_s12  ;;  %v103_v60 = vrot.slane %v3530_v51, 1 }
  0xad   :  { %v535_v45 = vsel %vm506_vm5, %v532_v11, %v534_v28  ;;  %v536_v11 = vrot.slane %v3497_v22, 6 }
  0xae   :  { %v547_v13 = vpop.permute.xlu1 %546  ;;  %v201_v14 = vpop.permute.xlu0 %200  ;;  %v104_v3 = vsel %vm71_vm1, %v101_v32, %v103_v60  ;;  %v538_v32 = vrot.slane %v3530_v51, 6 }
  0xaf   :  { %v686_v15 = vsel %vm683_vm12, %v668_v12, %v547_v13  ;;  %v615_v27 = vsel %vm611_vm8, %v597_v23, %v201_v14  ;;  %v537_v13 = vsel %vm506_vm5, %v534_v28, %v536_v11  ;;  %v191_v14 = vsel %vm158_vm3, %v188_v37, %v190_v4 }
  0xb0   :  { %479 = vrot.lane.b32.xlu1 %v446_v7, %s3042_s16  ;;  %133 = vrot.lane.b32.xlu0 %v100_v8, %s3039_s13 }
  0xb1   :  { %2635 = vmatmul.mubr.msk.f32.gmra.mrb[4].mxu0 %vm722_vm13, %v686_v15  ;;  %v277_v15 = vrot.slane %v3530_v51, 3 }
  0xb2   :  { %v375_v20 = vpop.permute.xlu1 %374  ;;  %v288_v21 = vpop.permute.xlu0 %287  ;;  %2637 = vmatprep.mubr.msk.f32.mxu0 %vm3044_vm6, %v3045_v5 }
  0xb3   :  { %v633_v33 = vsel %vm629_vm9, %v615_v27, %v288_v21  ;;  %v278_v21 = vsel %vm245_vm0, %v275_v48, %v277_v15 }
  0xb4   :  { %566 = vrot.lane.b32.xlu1 %v533_v16, %s3043_s19  ;;  %220 = vrot.lane.b32.xlu0 %v187_v17, %s3041_s15  ;;  %v651_v0 = vsel %vm647_vm10, %v633_v33, %v375_v20  ;;  %v364_v16 = vrot.slane %v3530_v51, 4 }
  0xb6   :  { %v462_v34 = vpop.permute.xlu1 %461  ;;  %v116_v35 = vpop.permute.xlu0 %115  ;;  %v365_v23 = vsel %vm332_vm2, %v362_v47, %v364_v16 }
  0xb7   :  { %v669_v39 = vsel %vm665_vm11, %v651_v0, %v462_v34  ;;  %v598_v52 = vsel %vm593_vm7, %v3170_v43, %v116_v35  ;;  %v450_v43 = vsel %vm419_vm4, %v447_v25, %v449_v53  ;;  %v451_v25 = vrot.slane %v3530_v51, 5 }
  0xb8   :  { %394 = vrot.lane.b32.xlu1 %v361_v29, %s3040_s14  ;;  %307 = vrot.lane.b32.xlu0 %v274_v31, %s3038_s12 }
  0xb9   :  { %v452_v34 = vsel %vm419_vm4, %v449_v53, %v451_v25 }
  0xba   :  { %v549_v40 = vpop.permute.xlu1 %548  ;;  %v203_v41 = vpop.permute.xlu0 %202 }
  0xbb   :  { %v687_v44 = vsel %vm683_vm12, %v669_v39, %v549_v40  ;;  %v616_v55 = vsel %vm611_vm8, %v598_v52, %v203_v41 }
  0xbc   :  { %481 = vrot.lane.b32.xlu1 %v448_v36, %s3042_s16  ;;  %135 = vrot.lane.b32.xlu0 %v102_v2, %s3039_s13  ;;  %v539_v2 = vsel %vm506_vm5, %v536_v11, %v538_v32 }
  0xbd   :  { %2638 = vmatmul.mubr.msk.f32.gmra.mrb[6].mxu0 %vm722_vm13, %v687_v44 }
  0xbe   :  { %v377_v49 = vpop.permute.xlu1 %376  ;;  %v290_v50 = vpop.permute.xlu0 %289  ;;  %2640 = vmatprep.mubr.msk.f32.mxu0 %vm3044_vm6, %v3045_v5 }
  0xbf   :  { %v634_v61 = vsel %vm629_vm9, %v616_v55, %v290_v50 }
  0xc0   :  { %568 = vrot.lane.b32.xlu1 %v535_v45, %s3043_s19  ;;  %222 = vrot.lane.b32.xlu0 %v189_v46, %s3041_s15  ;;  %v652_v63 = vsel %vm647_vm10, %v634_v61, %v377_v49 }
  0xc2   :  { %v464_v62 = vpop.permute.xlu1 %463  ;;  %v118_v1 = vpop.permute.xlu0 %117 }
  0xc3   :  { %v670_v7 = vsel %vm665_vm11, %v652_v63, %v464_v62  ;;  %v599_v19 = vsel %vm593_vm7, %v3215_v6, %v118_v1  ;;  %v52_v6 = vld [vmem:[%s4339_s0 + $0x88] sm:$0x3f] }
  0xc4   :  { %396 = vrot.lane.b32.xlu1 %v363_v57, %s3040_s14  ;;  %309 = vrot.lane.b32.xlu0 %v276_v58, %s3038_s12  ;;  %v105_v35 = vrot.slane %v52_v6, 1  ;;  %v192_v37 = vrot.slane %v52_v6, 2  ;;  %v279_v41 = vrot.slane %v52_v6, 3  ;;  %v366_v47 = vrot.slane %v52_v6, 4 }
  0xc5   :  { %v453_v52 = vrot.slane %v52_v6, 5 }
  0xc6   :  { %v551_v8 = vpop.permute.xlu1 %550  ;;  %v205_v9 = vpop.permute.xlu0 %204  ;;  %v106_v40 = vsel %vm71_vm1, %v103_v60, %v105_v35  ;;  %v193_v46 = vsel %vm158_vm3, %v190_v4, %v192_v37  ;;  %v280_v50 = vsel %vm245_vm0, %v277_v15, %v279_v41  ;;  %v367_v58 = vsel %vm332_vm2, %v364_v16, %v366_v47 }
  0xc7   :  { %v688_v12 = vsel %vm683_vm12, %v670_v7, %v551_v8  ;;  %v617_v20 = vsel %vm611_vm8, %v599_v19, %v205_v9  ;;  %v540_v60 = vrot.slane %v52_v6, 6  ;;  %v454_v61 = vsel %vm419_vm4, %v451_v25, %v453_v52 }
  0xc8   :  { %483 = vrot.lane.b32.xlu1 %v450_v43, %s3042_s16  ;;  %137 = vrot.lane.b32.xlu0 %v104_v3, %s3039_s13 }
  0xc9   :  { %2641 = vmatmul.mubr.msk.f32.gmra.mrb[8].mxu0 %vm722_vm13, %v688_v12  ;;  %v541_v63 = vsel %vm506_vm5, %v538_v32, %v540_v60  ;;  %v1595_v60 = vld [vmem:[#allocation3 + $0x88] sm:$0xff] }
  0xca   :  { %v379_v17 = vpop.permute.xlu1 %378  ;;  %v292_v18 = vpop.permute.xlu0 %291  ;;  %2643 = vmatprep.mubr.msk.f32.mxu0 %vm3044_vm6, %v3045_v5 }
  0xcb   :  { %v635_v27 = vsel %vm629_vm9, %v617_v20, %v292_v18 }
  0xcc   :  { %570 = vrot.lane.b32.xlu1 %v537_v13, %s3043_s19  ;;  %224 = vrot.lane.b32.xlu0 %v191_v14, %s3041_s15  ;;  %v653_v33 = vsel %vm647_vm10, %v635_v27, %v379_v17 }
  0xce   :  { %v466_v29 = vpop.permute.xlu1 %465  ;;  %v120_v31 = vpop.permute.xlu0 %119 }
  0xcf   :  { %v671_v28 = vsel %vm665_vm11, %v653_v33, %v466_v29  ;;  %v600_v48 = vsel %vm593_vm7, %v3259_v30, %v120_v31 }
  0xd0   :  { %311 = vrot.lane.b32.xlu0 %v278_v21, %s3038_s12  ;;  %398 = vrot.lane.b32.xlu1 %v365_v23, %s3040_s14 }
  0xd2   :  { %v553_v0 = vpop.permute.xlu1 %552  ;;  %v207_v36 = vpop.permute.xlu0 %206 }
  0xd3   :  { %v689_v39 = vsel %vm683_vm12, %v671_v28, %v553_v0  ;;  %v618_v49 = vsel %vm611_vm8, %v600_v48, %v207_v36 }
  0xd4   :  { %485 = vrot.lane.b32.xlu0 %v452_v34, %s3042_s16  ;;  %2644 = vmatmul.mubr.msk.f32.gmra.mrb[10].mxu0 %vm722_vm13, %v689_v39 }
  0xd5   :  { %572 = vrot.lane.b32.xlu1 %v539_v2, %s3043_s19  ;;  %2646 = vmatprep.mubr.msk.f32.mxu0 %vm3044_vm6, %v3045_v5 }
  0xd6   :  { %v381_v44 = vpop.permute.xlu1 %380  ;;  %v294_v45 = vpop.permute.xlu0 %293 }
  0xd7   :  { %v636_v53 = vsel %vm629_vm9, %v618_v49, %v294_v45 }
  0xd8   :  { %139 = vrot.lane.b32.xlu0 %v106_v40, %s3039_s13  ;;  %v654_v30 = vsel %vm647_vm10, %v636_v53, %v381_v44 }
  0xd9   :  { %226 = vrot.lane.b32.xlu1 %v193_v46, %s3041_s15 }
  0xda   :  { %v468_v55 = vpop.permute.xlu1 %467  ;;  %v122_v57 = vpop.permute.xlu0 %121 }
  0xdb   :  { %v672_v62 = vsel %vm665_vm11, %v654_v30, %v468_v55  ;;  %v601_v7 = vsel %vm593_vm7, %v3283_v42, %v122_v57 }
  0xdc   :  { %313 = vrot.lane.b32.xlu0 %v280_v50, %s3038_s12 }
  0xdd   :  { %400 = vrot.lane.b32.xlu1 %v367_v58, %s3040_s14 }
  0xde   :  { %v555_v1 = vpop.permute.xlu1 %554  ;;  %v209_v43 = vpop.permute.xlu0 %208 }
  0xdf   :  { %v690_v3 = vsel %vm683_vm12, %v672_v62, %v555_v1  ;;  %v619_v8 = vsel %vm611_vm8, %v601_v7, %v209_v43  ;;  %v1578_v1 = vld [vmem:[#allocation3] sm:$0xff]  ;;  %v1579_v43 = vld [vmem:[#allocation3 + $0x8] sm:$0xff]  ;;  %v1597_v7 = vld [vmem:[#allocation3 + $0x98] sm:$0xff] }
  0xe0   :  { %487 = vrot.lane.b32.xlu0 %v454_v61, %s3042_s16  ;;  %2647 = vmatmul.mubr.msk.f32.gmra.mrb[12].mxu0 %vm722_vm13, %v690_v3 }
  0xe1   :  { %574 = vrot.lane.b32.xlu1 %v541_v63, %s3043_s19  ;;  %2649 = vmatprep.mubr.msk.f32.mxu0 %vm3044_vm6, %v3045_v5  ;;  %v2746_v63 = vpack.c.bf16 %v1579_v43, %v1578_v1  ;;  %v1590_v43 = vld [vmem:[#allocation3 + $0x60] sm:$0xff] }
  0xe2   :  { %v383_v11 = vpop.permute.xlu1 %382  ;;  %v296_v4 = vpop.permute.xlu0 %295 }
  0xe3   :  { %v637_v9 = vsel %vm629_vm9, %v619_v8, %v296_v4  ;;  %v1596_v4 = vld [vmem:[#allocation3 + $0x90] sm:$0xff] }
  0xe4   :  { %v655_v14 = vsel %vm647_vm10, %v637_v9, %v383_v11 }
  0xe6   :  { %v470_v12 = vpop.permute.xlu1 %469  ;;  %v124_v13 = vpop.permute.xlu0 %123 }
  0xe7   :  { %v673_v15 = vsel %vm665_vm11, %v655_v14, %v470_v12  ;;  %v602_v20 = vsel %vm593_vm7, %v3306_v56, %v124_v13  ;;  %v2748_v13 = vpack.c.bf16 %v1597_v7, %v1596_v4  ;;  %v1580_v14 = vld [vmem:[#allocation3 + $0x10] sm:$0xff]  ;;  %v1658_v4 = vld [vmem:[#allocation3 + $0x280] sm:$0xff]  ;;  %v1659_v7 = vld [vmem:[#allocation3 + $0x288] sm:$0xff] }
  0xea   :  { %v557_v16 = vpop.permute.xlu1 %556  ;;  %v211_v17 = vpop.permute.xlu0 %210 }
  0xeb   :  { %v691_v18 = vsel %vm683_vm12, %v673_v15, %v557_v16  ;;  %v620_v21 = vsel %vm611_vm8, %v602_v20, %v211_v17  ;;  %v1581_v15 = vld [vmem:[#allocation3 + $0x18] sm:$0xff] }
  0xec   :  { %2650 = vmatmul.mubr.msk.f32.gmra.mrb[14].mxu0 %vm722_vm13, %v691_v18  ;;  %v2750_v16 = vpack.c.bf16 %v1581_v15, %v1580_v14  ;;  %v1598_v18 = vld [vmem:[#allocation3 + $0xa0] sm:$0xff] }
  0xed   :  { %2652 = vmatprep.mubr.msk.f32.mxu0 %vm3044_vm6, %v3045_v5  ;;  %v1642_v14 = vld [vmem:[#allocation3 + $0x200] sm:$0xff] }
  0xee   :  { %v385_v42 = vpop.permute.xlu1 %384  ;;  %v298_v19 = vpop.permute.xlu0 %297 }
  0xef   :  { %v638_v23 = vsel %vm629_vm9, %v620_v21, %v298_v19 }
  0xf0   :  { %v656_v29 = vsel %vm647_vm10, %v638_v23, %v385_v42  ;;  %v1582_v23 = vld [vmem:[#allocation3 + $0x20] sm:$0xff] }
  0xf2   :  { %v472_v25 = vpop.permute.xlu1 %471  ;;  %v126_v27 = vpop.permute.xlu0 %125 }
  0xf3   :  { %v674_v31 = vsel %vm665_vm11, %v656_v29, %v472_v25  ;;  %v603_v35 = vsel %vm593_vm7, %v3329_v10, %v126_v27  ;;  %v1583_v25 = vld [vmem:[#allocation3 + $0x28] sm:$0xff] }
  0xf4   :  { %v2754_v29 = vpack.c.bf16 %v1583_v25, %v1582_v23  ;;  %v1661_v23 = vld [vmem:[#allocation3 + $0x298] sm:$0xff] }
  0xf6   :  { %v559_v32 = vpop.permute.xlu1 %558  ;;  %v213_v6 = vpop.permute.xlu0 %212 }
  0xf7   :  { %v692_v33 = vsel %vm683_vm12, %v674_v31, %v559_v32  ;;  %v621_v28 = vsel %vm611_vm8, %v603_v35, %v213_v6  ;;  %v1600_v31 = vld [vmem:[#allocation3 + $0xb0] sm:$0xff]  ;;  %v1601_v32 = vld [vmem:[#allocation3 + $0xb8] sm:$0xff] }
  0xf8   :  { %2653 = vmatmul.mubr.msk.f32.gmra.mrb[16].mxu0 %vm722_vm13, %v692_v33  ;;  %v1585_v35 = vld [vmem:[#allocation3 + $0x38] sm:$0xff] }
  0xf9   :  { %2655 = vmatprep.mubr.msk.f32.mxu0 %vm3044_vm6, %v3045_v5 }
  0xfa   :  { %v387_v56 = vpop.permute.xlu1 %386  ;;  %v300_v34 = vpop.permute.xlu0 %299 }
  0xfb   :  { %v639_v0 = vsel %vm629_vm9, %v621_v28, %v300_v34  ;;  %v1584_v34 = vld [vmem:[#allocation3 + $0x30] sm:$0xff] }
  0xfc   :  { %v657_v37 = vsel %vm647_vm10, %v639_v0, %v387_v56  ;;  %v2756_v56 = vpack.c.bf16 %v1601_v32, %v1600_v31  ;;  %v2758_v28 = vpack.c.bf16 %v1585_v35, %v1584_v34 }
  0xfe   :  { %v474_v36 = vpop.permute.xlu1 %473  ;;  %v128_v2 = vpop.permute.xlu0 %127 }
  0xff   :  { %v675_v39 = vsel %vm665_vm11, %v657_v37, %v474_v36  ;;  %v604_v46 = vsel %vm593_vm7, %v3352_v24, %v128_v2  ;;  %v1594_v24 = vld [vmem:[#allocation3 + $0x80] sm:$0xff]  ;;  %v1603_v37 = vld [vmem:[#allocation3 + $0xc8] sm:$0xff] }
 0x100   :  { %v2744_v62 = vpack.c.bf16 %v1595_v60, %v1594_v24  ;;  %v1602_v2 = vld [vmem:[#allocation3 + $0xc0] sm:$0xff] }
 0x101   :  { %v1606_v60 = vld [vmem:[#allocation3 + $0xe0] sm:$0xff] }
 0x102   :  { %v561_v40 = vpop.permute.xlu1 %560  ;;  %v215_v41 = vpop.permute.xlu0 %214  ;;  %2745 = vmatprep.subr.bf16.mxu1 %v2744_v62 }
 0x103   :  { %v693_v44 = vsel %vm683_vm12, %v675_v39, %v561_v40  ;;  %v622_v47 = vsel %vm611_vm8, %v604_v46, %v215_v41  ;;  %2747 = vmatpush3.bf16.msra.mxu1 %v2746_v63  ;;  %v1591_v63 = vld [vmem:[#allocation3 + $0x68] sm:$0xff] }
 0x104   :  { %2656 = vmatmul.mubr.msk.f32.gmra.mrb[18].mxu0 %vm722_vm13, %v693_v44  ;;  %2749 = vmatprep.subr.bf16.mxu1 %v2748_v13  ;;  %v2760_v44 = vpack.c.bf16 %v1603_v37, %v1602_v2  ;;  %v1609_v13 = vld [vmem:[#allocation3 + $0xf8] sm:$0xff]  ;;  %v1646_v37 = vld [vmem:[#allocation3 + $0x220] sm:$0xff] }
 0x105   :  { %2658 = vmatprep.mubr.msk.f32.mxu0 %vm3044_vm6, %v3045_v5 }
 0x106   :  { %v389_v10 = vpop.permute.xlu1 %388  ;;  %v302_v45 = vpop.permute.xlu0 %301 }
 0x107   :  { %v640_v48 = vsel %vm629_vm9, %v622_v47, %v302_v45  ;;  %2751 = vmatpush3.bf16.msra.mxu1 %v2750_v16  ;;  %v1587_v45 = vld [vmem:[#allocation3 + $0x48] sm:$0xff] }
 0x108   :  { %v658_v52 = vsel %vm647_vm10, %v640_v48, %v389_v10  ;;  %v1586_v10 = vld [vmem:[#allocation3 + $0x40] sm:$0xff]  ;;  %v1604_v48 = vld [vmem:[#allocation3 + $0xd0] sm:$0xff] }
 0x109   :  { %v2762_v46 = vpack.c.bf16 %v1587_v45, %v1586_v10 }
 0x10a   :  { %v476_v49 = vpop.permute.xlu1 %475  ;;  %v130_v50 = vpop.permute.xlu0 %129 }
 0x10b   :  { %v676_v53 = vsel %vm665_vm11, %v658_v52, %v476_v49  ;;  %v605_v3 = vsel %vm593_vm7, %v3375_v38, %v130_v50  ;;  %v1599_v38 = vld [vmem:[#allocation3 + $0xa8] sm:$0xff] }
 0x10c   :  { %v2752_v21 = vpack.c.bf16 %v1599_v38, %v1598_v18  ;;  %v1643_v38 = vld [vmem:[#allocation3 + $0x208] sm:$0xff] }
 0x10e   :  { %v563_v55 = vpop.permute.xlu1 %562  ;;  %v217_v57 = vpop.permute.xlu0 %216  ;;  %2753 = vmatprep.subr.bf16.mxu1 %v2752_v21  ;;  %v1660_v21 = vld [vmem:[#allocation3 + $0x290] sm:$0xff] }
 0x10f   :  { %v694_v58 = vsel %vm683_vm12, %v676_v53, %v563_v55  ;;  %v623_v11 = vsel %vm611_vm8, %v605_v3, %v217_v57  ;;  %2755 = vmatpush3.bf16.msra.mxu1 %v2754_v29  ;;  %v1588_v55 = vld [vmem:[#allocation3 + $0x50] sm:$0xff]  ;;  %v1589_v57 = vld [vmem:[#allocation3 + $0x58] sm:$0xff]  ;;  %v2770_v3 = vpack.c.bf16 %v1591_v63, %v1590_v43 }
 0x110   :  { %2659 = vmatmul.mubr.msk.f32.gmra.mrb[20].mxu0 %vm722_vm13, %v694_v58  ;;  %2757 = vmatprep.subr.bf16.mxu1 %v2756_v56  ;;  %v2766_v24 = vpack.c.bf16 %v1589_v57, %v1588_v55  ;;  %v1645_v56 = vld [vmem:[#allocation3 + $0x218] sm:$0xff] }
 0x111   :  { %2661 = vmatprep.mubr.msk.f32.mxu0 %vm3044_vm6, %v3045_v5 }
 0x112   :  { %v391_v30 = vpop.permute.xlu1 %390  ;;  %v304_v61 = vpop.permute.xlu0 %303 }
 0x113   :  { %v641_v8 = vsel %vm629_vm9, %v623_v11, %v304_v61  ;;  %2759 = vmatpush3.bf16.msra.mxu1 %v2758_v28 }
 0x114   :  { %v659_v17 = vsel %vm647_vm10, %v641_v8, %v391_v30  ;;  %2761 = vmatprep.subr.bf16.mxu1 %v2760_v44  ;;  %v1607_v30 = vld [vmem:[#allocation3 + $0xe8] sm:$0xff] }
 0x115   :  { %v2768_v1 = vpack.c.bf16 %v1607_v30, %v1606_v60 }
 0x116   :  { %v478_v9 = vpop.permute.xlu1 %477  ;;  %v132_v12 = vpop.permute.xlu0 %131 }
 0x117   :  { %v677_v42 = vsel %vm665_vm11, %v659_v17, %v478_v9  ;;  %v606_v0 = vsel %vm593_vm7, %v3400_v59, %v132_v12  ;;  %2763 = vmatpush3.bf16.msra.mxu1 %v2762_v46  ;;  %v1605_v59 = vld [vmem:[#allocation3 + $0xd8] sm:$0xff]  ;;  %v2808_v9 = vpack.c.bf16 %v1659_v7, %v1658_v4  ;;  %v1608_v12 = vld [vmem:[#allocation3 + $0xf0] sm:$0xff] }
 0x118   :  { %v2764_v53 = vpack.c.bf16 %v1605_v59, %v1604_v48  ;;  %v2772_v18 = vpack.c.bf16 %v1609_v13, %v1608_v12  ;;  %v1665_v48 = vld [vmem:[#allocation3 + $0x2b8] sm:$0xff]  ;;  %v1668_v4 = vld [vmem:[#allocation3 + $0x2d0] sm:$0xff] }
 0x119   :  { %2809 = vmatprep.subr.bf16.mxu0 %v2808_v9  ;;  %v1669_v7 = vld [vmem:[#allocation3 + $0x2d8] sm:$0xff]  ;;  %v1652_v12 = vld [vmem:[#allocation3 + $0x250] sm:$0xff] }
 0x11a   :  { %v565_v19 = vpop.permute.xlu1 %564  ;;  %v219_v20 = vpop.permute.xlu0 %218  ;;  %2765 = vmatprep.subr.bf16.mxu1 %v2764_v53  ;;  %v2828_v9 = vpack.c.bf16 %v1669_v7, %v1668_v4  ;;  %v1653_v13 = vld [vmem:[#allocation3 + $0x258] sm:$0xff] }
 0x11b   :  { %v695_v27 = vsel %vm683_vm12, %v677_v42, %v565_v19  ;;  %v624_v36 = vsel %vm611_vm8, %v606_v0, %v219_v20  ;;  %2767 = vmatpush3.bf16.msra.mxu1 %v2766_v24  ;;  %v1592_v42 = vld [vmem:[#allocation3 + $0x70] sm:$0xff]  ;;  %v1593_v19 = vld [vmem:[#allocation3 + $0x78] sm:$0xff]  ;;  %v1662_v0 = vld [vmem:[#allocation3 + $0x2a0] sm:$0xff] }
 0x11c   :  { %2662 = vmatmul.mubr.msk.f32.gmra.mrb[22].mxu0 %vm722_vm13, %v695_v27  ;;  %2769 = vmatprep.subr.bf16.mxu1 %v2768_v1  ;;  %v2774_v20 = vpack.c.bf16 %v1593_v19, %v1592_v42  ;;  %v2812_v27 = vpack.c.bf16 %v1661_v23, %v1660_v21  ;;  %v1667_v24 = vld [vmem:[#allocation3 + $0x2c8] sm:$0xff]  ;;  %v1654_v19 = vld [vmem:[#allocation3 + $0x260] sm:$0xff] }
 0x11d   :  { %2664 = vmatprep.mubr.msk.f32.mxu0 %vm3044_vm6, %v3045_v5 }
 0x11e   :  { %v393_v6 = vpop.permute.xlu1 %392  ;;  %v306_v33 = vpop.permute.xlu0 %305 }
 0x11f   :  { %v642_v39 = vsel %vm629_vm9, %v624_v36, %v306_v33  ;;  %2771 = vmatpush3.bf16.msra.mxu1 %v2770_v3  ;;  %v1644_v33 = vld [vmem:[#allocation3 + $0x210] sm:$0xff]  ;;  %v1663_v36 = vld [vmem:[#allocation3 + $0x2a8] sm:$0xff] }
 0x120   :  { %v660_v47 = vsel %vm647_vm10, %v642_v39, %v393_v6  ;;  %2773 = vmatprep.subr.bf16.mxu1 %v2772_v18  ;;  %v2814_v34 = vpack.c.bf16 %v1645_v56, %v1644_v33  ;;  %v2816_v2 = vpack.c.bf16 %v1663_v36, %v1662_v0  ;;  %v1647_v39 = vld [vmem:[#allocation3 + $0x228] sm:$0xff]  ;;  %v1657_v33 = vld [vmem:[#allocation3 + $0x278] sm:$0xff] }
 0x122   :  { %v480_v40 = vpop.permute.xlu1 %479  ;;  %v134_v41 = vpop.permute.xlu0 %133 }
 0x123   :  { %v678_v49 = vsel %vm665_vm11, %v660_v47, %v480_v40  ;;  %v607_v11 = vsel %vm593_vm7, %v3431_v26, %v134_v41  ;;  %v2810_v26 = vpack.c.bf16 %v1643_v38, %v1642_v14  ;;  %2775 = vmatpush3.bf16.msra.mxu1 %v2774_v20  ;;  %v2818_v41 = vpack.c.bf16 %v1647_v39, %v1646_v37  ;;  %v1664_v47 = vld [vmem:[#allocation3 + $0x2b0] sm:$0xff]  ;;  %v3708_v39 = vld [vmem:[%s4341_s2] ss:$0 sm:$0xff] }
 0x124   :  { %v2820_v59 = vpack.c.bf16 %v1665_v48, %v1664_v47  ;;  %v2830_v14 = vpack.c.bf16 %v1653_v13, %v1652_v12 }
 0x125   :  { %2811 = vmatpush3.bf16.msra.mxu0 %v2810_v26  ;;  %v1655_v26 = vld [vmem:[#allocation3 + $0x268] sm:$0xff] }
 0x126   :  { %v567_v50 = vpop.permute.xlu1 %566  ;;  %v221_v52 = vpop.permute.xlu0 %220  ;;  %2813 = vmatprep.subr.bf16.mxu0 %v2812_v27  ;;  %v2834_v21 = vpack.c.bf16 %v1655_v26, %v1654_v19  ;;  %v1673_v27 = vld [vmem:[#allocation3 + $0x2f8] sm:$0xff] }
 0x127   :  { %v696_v58 = vsel %vm683_vm12, %v678_v49, %v567_v50  ;;  %v625_v8 = vsel %vm611_vm8, %v607_v11, %v221_v52  ;;  %v1648_v49 = vld [vmem:[#allocation3 + $0x230] sm:$0xff]  ;;  %v1649_v50 = vld [vmem:[#allocation3 + $0x238] sm:$0xff] }
 0x128   :  { %2665 = vmatmul.mubr.msk.f32.gmra.mrb[24].mxu0 %vm722_vm13, %v696_v58  ;;  %v2822_v52 = vpack.c.bf16 %v1649_v50, %v1648_v49  ;;  %v1666_v58 = vld [vmem:[#allocation3 + $0x2c0] sm:$0xff] }
 0x129   :  { %2667 = vmatprep.mubr.msk.f32.mxu0 %vm3044_vm6, %v3045_v5  ;;  %2815 = vmatpush3.bf16.msra.mxu0 %v2814_v34  ;;  %v2824_v30 = vpack.c.bf16 %v1667_v24, %v1666_v58 }
 0x12a   :  { %v395_v61 = vpop.permute.xlu1 %394  ;;  %v308_v62 = vpop.permute.xlu0 %307  ;;  %2817 = vmatprep.subr.bf16.mxu0 %v2816_v2 }
 0x12b   :  { %v643_v15 = vsel %vm629_vm9, %v625_v8, %v308_v62  ;;  %v1651_v62 = vld [vmem:[#allocation3 + $0x248] sm:$0xff] }
 0x12c   :  { %v661_v25 = vsel %vm647_vm10, %v643_v15, %v395_v61  ;;  %v1650_v61 = vld [vmem:[#allocation3 + $0x240] sm:$0xff] }
 0x12d   :  { %2819 = vmatpush3.bf16.msra.mxu0 %v2818_v41  ;;  %v2826_v1 = vpack.c.bf16 %v1651_v62, %v1650_v61 }
 0x12e   :  { %v482_v16 = vpop.permute.xlu1 %481  ;;  %v136_v17 = vpop.permute.xlu0 %135  ;;  %2821 = vmatprep.subr.bf16.mxu0 %v2820_v59 }
 0x12f   :  { %v679_v29 = vsel %vm665_vm11, %v661_v25, %v482_v16  ;;  %v608_v40 = vsel %vm593_vm7, %v3464_v54, %v136_v17  ;;  %v1670_v16 = vld [vmem:[#allocation3 + $0x2e0] sm:$0xff]  ;;  %v1671_v17 = vld [vmem:[#allocation3 + $0x2e8] sm:$0xff]  ;;  %v1672_v25 = vld [vmem:[#allocation3 + $0x2f0] sm:$0xff] }
 0x130   :  { %v2832_v42 = vpack.c.bf16 %v1671_v17, %v1670_v16 }
 0x131   :  { %2823 = vmatpush3.bf16.msra.mxu0 %v2822_v52 }
 0x132   :  { %v569_v31 = vpop.permute.xlu1 %568  ;;  %v223_v32 = vpop.permute.xlu0 %222  ;;  %2825 = vmatprep.subr.bf16.mxu0 %v2824_v30 }
 0x133   :  { %v697_v6 = vsel %vm683_vm12, %v679_v29, %v569_v31  ;;  %v626_v44 = vsel %vm611_vm8, %v608_v40, %v223_v32  ;;  %v2836_v32 = vpack.c.bf16 %v1673_v27, %v1672_v25 }
 0x134   :  { %2668 = vmatmul.mubr.msk.f32.gmra.mrb[26].mxu0 %vm722_vm13, %v697_v6  ;;  %v1656_v6 = vld [vmem:[#allocation3 + $0x270] sm:$0xff] }
 0x135   :  { %2670 = vmatprep.mubr.msk.f32.mxu0 %vm3044_vm6, %v3045_v5  ;;  %2827 = vmatpush3.bf16.msra.mxu0 %v2826_v1  ;;  %v2838_v34 = vpack.c.bf16 %v1657_v33, %v1656_v6 }
 0x136   :  { %v397_v35 = vpop.permute.xlu1 %396  ;;  %v310_v28 = vpop.permute.xlu0 %309  ;;  %2829 = vmatprep.subr.bf16.mxu0 %v2828_v9 }
 0x137   :  { %v644_v10 = vsel %vm629_vm9, %v626_v44, %v310_v28 }
 0x138   :  { %v662_v53 = vsel %vm647_vm10, %v644_v10, %v397_v35 }
 0x139   :  { %2831 = vmatpush3.bf16.msra.mxu0 %v2830_v14 }
 0x13a   :  { %v484_v45 = vpop.permute.xlu1 %483  ;;  %v138_v46 = vpop.permute.xlu0 %137  ;;  %2833 = vmatprep.subr.bf16.mxu0 %v2832_v42 }
 0x13b   :  { %v680_v54 = vsel %vm665_vm11, %v662_v53, %v484_v45  ;;  %v609_v43 = vsel %vm593_vm7, %v3497_v22, %v138_v46 }
 0x13d   :  { %2835 = vmatpush3.bf16.msra.mxu0 %v2834_v21 }
 0x13e   :  { %v571_v55 = vpop.permute.xlu1 %570  ;;  %v225_v57 = vpop.permute.xlu0 %224  ;;  %2837 = vmatprep.subr.bf16.mxu0 %v2836_v32 }
 0x13f   :  { %v698_v60 = vsel %vm683_vm12, %v680_v54, %v571_v55  ;;  %v627_v63 = vsel %vm611_vm8, %v609_v43, %v225_v57 }
 0x140   :  { %2671 = vmatmul.mubr.msk.f32.gmra.mrb[28].mxu0 %vm722_vm13, %v698_v60 }
 0x141   :  { %2673 = vmatprep.mubr.msk.f32.mxu0 %vm3044_vm6, %v3045_v5  ;;  %2839 = vmatpush3.bf16.msra.mxu0 %v2838_v34 }
 0x142   :  { %v312_v3 = vpop.permute.xlu0 %311  ;;  %v399_v11 = vpop.permute.xlu1 %398 }
 0x143   :  { %v645_v8 = vsel %vm629_vm9, %v627_v63, %v312_v3 }
 0x144   :  { %v663_v22 = vsel %vm647_vm10, %v645_v8, %v399_v11 }
 0x146   :  { %v486_v15 = vpop.permute.xlu0 %485 }
 0x147   :  { %v681_v18 = vsel %vm665_vm11, %v663_v22, %v486_v15  ;;  %v573_v38 = vpop.permute.xlu1 %572 }
 0x148   :  { %v699_v20 = vsel %vm683_vm12, %v681_v18, %v573_v38 }
 0x149   :  { %2674 = vmatmul.mubr.msk.f32.gmra.mrb[30].mxu0 %vm722_vm13, %v699_v20 }
 0x14a   :  { %v140_v23 = vpop.permute.xlu0 %139  ;;  %2676 = vmatprep.mubr.msk.f32.mxu0 %vm3044_vm6, %v3045_v5 }
 0x14b   :  { %v610_v29 = vsel %vm593_vm7, %v3530_v51, %v140_v23  ;;  %v227_v31 = vpop.permute.xlu1 %226 }
 0x14c   :  { %v628_v56 = vsel %vm611_vm8, %v610_v29, %v227_v31 }
 0x14e   :  { %v314_v35 = vpop.permute.xlu0 %313 }
 0x14f   :  { %v646_v28 = vsel %vm629_vm9, %v628_v56, %v314_v35  ;;  %v401_v0 = vpop.permute.xlu1 %400 }
 0x150   :  { %v664_v5 = vsel %vm647_vm10, %v646_v28, %v401_v0 }
 0x152   :  { %v488_v36 = vpop.permute.xlu0 %487 }
 0x153   :  { %v682_v2 = vsel %vm665_vm11, %v664_v5, %v488_v36  ;;  %v575_v37 = vpop.permute.xlu1 %574 }
 0x154   :  { %v700_v51 = vsel %vm683_vm12, %v682_v2, %v575_v37 }
 0x155   :  { %2677 = vmatmul.mubr.msk.f32.gmra.mrb[32].mxu0 %vm722_vm13, %v700_v51 }
 0x16c   :  { %v840_v40 = vpop.f32.mrb[0].mxu0 }
 0x16d   :  { %v3711_v41 = vadd.f32 %v3708_v39, %v840_v40  ;;  %v2630_v44 = vpop.f32.mrb[1].mxu0 }
 0x16f   :  { %v3714_v10 = vmul.f32 0.70710677, %v3711_v41  ;;  %v924_v37 = vmul.f32 0.5, %v3711_v41 }
 0x171   :  { %v958_v45 = vand.u32 2147483647, %v3714_v10  ;;  %vm1298_vm14 = vcmp.lt.f32.partialorder %v3714_v10, 0.0 }
 0x173   :  { %v975_v46 = vmul.f32 0.3275911, %v958_v45  ;;  %v1196_v52 = vmul.f32 %v958_v45, %v958_v45 }
 0x175   :  { %v992_v47 = vadd.f32 1.0, %v975_v46  ;;  %v1213_v57 = vsub.f32 0.0, %v1196_v52 }
 0x177   :  { %2885 = vrcp.f32 %v992_v47  ;;  %v1230_v61 = vmul.f32 1.442695, %v1213_v57 }
 0x178   :  { %v845_v48 = vpop.f32.mrb[2].mxu0 }
 0x179   :  { %v3718_v59 = vadd.f32 %v3708_v39, %v845_v48  ;;  %v2633_v49 = vpop.f32.mrb[3].mxu0 }
 0x17b   :  { %v3721_v50 = vmul.f32 0.70710677, %v3718_v59 }
 0x17d   :  { %v959_v53 = vand.u32 2147483647, %v3721_v50  ;;  %vm1299_vm15 = vcmp.lt.f32.partialorder %v3721_v50, 0.0 }
 0x17f   :  { %v976_v54 = vmul.f32 0.3275911, %v959_v53  ;;  %v1197_v11 = vmul.f32 %v959_v53, %v959_v53 }
 0x181   :  { %v2886_v55 = vpop.eup %2885  ;;  %v993_v58 = vadd.f32 1.0, %v976_v54  ;;  %v1214_v13 = vsub.f32 0.0, %v1197_v11 }
 0x182   :  { %v1043_v24 = vmul.f32 1.0614054, %v2886_v55 }
 0x183   :  { %2887 = vrcp.f32 %v993_v58  ;;  %v1232_v38 = vmul.f32 1.442695, %v1214_v13 }
 0x184   :  { %v1060_v60 = vadd.f32 -1.4531521, %v1043_v24  ;;  %v850_v30 = vpop.f32.mrb[4].mxu0  ;;  %2889 = vpow2.f32 %v1230_v61 }
 0x185   :  { %v3725_v62 = vadd.f32 %v3708_v39, %v850_v30  ;;  %v2636_v1 = vpop.f32.mrb[5].mxu0 }
 0x186   :  { %v1077_v43 = vmul.f32 %v2886_v55, %v1060_v60 }
 0x187   :  { %v3728_v63 = vmul.f32 0.70710677, %v3725_v62 }
 0x188   :  { %v1094_v3 = vadd.f32 1.4214138, %v1077_v43 }
 0x189   :  { %v960_v4 = vand.u32 2147483647, %v3728_v63  ;;  %vm1300_vm2 = vcmp.lt.f32.partialorder %v3728_v63, 0.0 }
 0x18a   :  { %v1111_v7 = vmul.f32 %v2886_v55, %v1094_v3 }
 0x18b   :  { %v977_v8 = vmul.f32 0.3275911, %v960_v4  ;;  %v1198_v29 = vmul.f32 %v960_v4, %v960_v4 }
 0x18c   :  { %v1128_v9 = vadd.f32 -0.28449672, %v1111_v7 }
 0x18d   :  { %v2888_v12 = vpop.eup %2887  ;;  %v994_v14 = vadd.f32 1.0, %v977_v8  ;;  %v1215_v28 = vsub.f32 0.0, %v1198_v29 }
 0x18e   :  { %v1145_v22 = vmul.f32 %v2886_v55, %v1128_v9  ;;  %v1044_v15 = vmul.f32 1.0614054, %v2888_v12  ;;  %v2890_v21 = vpop.eup %2889  ;;  %v925_v9 = vmul.f32 0.5, %v3718_v59 }
 0x18f   :  { %2891 = vrcp.f32 %v994_v14  ;;  %v1234_v47 = vmul.f32 1.442695, %v1215_v28 }
 0x190   :  { %v1162_v16 = vadd.f32 0.2548296, %v1145_v22  ;;  %v1061_v17 = vadd.f32 -1.4531521, %v1044_v15  ;;  %v855_v18 = vpop.f32.mrb[6].mxu0  ;;  %2893 = vpow2.f32 %v1232_v38 }
 0x191   :  { %v3732_v42 = vadd.f32 %v3708_v39, %v855_v18  ;;  %v2639_v19 = vpop.f32.mrb[7].mxu0 }
 0x192   :  { %v1179_v26 = vmul.f32 %v2886_v55, %v1162_v16  ;;  %v1078_v20 = vmul.f32 %v2888_v12, %v1061_v17 }
 0x193   :  { %v3735_v23 = vmul.f32 0.70710677, %v3732_v42 }
 0x194   :  { %v1264_v25 = vmul.f32 %v2890_v21, %v1179_v26  ;;  %v1095_v27 = vadd.f32 1.4214138, %v1078_v20 }
 0x195   :  { %v961_v31 = vand.u32 2147483647, %v3735_v23  ;;  %vm1301_vm4 = vcmp.lt.f32.partialorder %v3735_v23, 0.0 }
 0x196   :  { %v1281_v32 = vsub.f32 1.0, %v1264_v25  ;;  %v1112_v6 = vmul.f32 %v2888_v12, %v1095_v27 }
 0x197   :  { %v978_v33 = vmul.f32 0.3275911, %v961_v31  ;;  %v1199_v57 = vmul.f32 %v961_v31, %v961_v31 }
 0x198   :  { %v1315_v56 = vsub.f32 0.0, %v1281_v32  ;;  %v1129_v34 = vadd.f32 -0.28449672, %v1112_v6 }
 0x199   :  { %v2892_v35 = vpop.eup %2891  ;;  %v995_v0 = vadd.f32 1.0, %v978_v33  ;;  %v1216_v3 = vsub.f32 0.0, %v1199_v57 }
 0x19a   :  { %v1332_v5 = vsel %vm1298_vm14, %v1315_v56, %v1281_v32  ;;  %v1146_v36 = vmul.f32 %v2888_v12, %v1129_v34  ;;  %v1045_v2 = vmul.f32 1.0614054, %v2892_v35  ;;  %v2894_v53 = vpop.eup %2893 }
 0x19b   :  { %v1349_v51 = vadd.f32 1.0, %v1332_v5  ;;  %2895 = vrcp.f32 %v995_v0  ;;  %v1236_v18 = vmul.f32 1.442695, %v1216_v3 }
 0x19c   :  { %v1163_v40 = vadd.f32 0.2548296, %v1146_v36  ;;  %v1062_v44 = vadd.f32 -1.4531521, %v1045_v2  ;;  %v860_v45 = vpop.f32.mrb[8].mxu0  ;;  %2897 = vpow2.f32 %v1234_v47  ;;  %v926_v2 = vmul.f32 0.5, %v3725_v62 }
 0x19d   :  { %v1366_v46 = vmul.f32 %v1349_v51, %v924_v37  ;;  %v3741_v48 = vadd.f32 %v3708_v39, %v860_v45  ;;  %v2642_v49 = vpop.f32.mrb[9].mxu0 }
 0x19e   :  { %v1180_v52 = vmul.f32 %v2888_v12, %v1163_v40  ;;  %v1079_v10 = vmul.f32 %v2892_v35, %v1062_v44 }
 0x19f   :  { %1383 = vst [vmem:[#allocation2] sm:$0xff] %v1366_v46  ;;  %v3744_v54 = vmul.f32 0.70710677, %v3741_v48 }
 0x1a0   :  { %v1265_v55 = vmul.f32 %v2894_v53, %v1180_v52  ;;  %v1096_v41 = vadd.f32 1.4214138, %v1079_v10 }
 0x1a1   :  { %v962_v58 = vand.u32 2147483647, %v3744_v54  ;;  %vm1302_vm5 = vcmp.lt.f32.partialorder %v3744_v54, 0.0 }
 0x1a2   :  { %v1282_v24 = vsub.f32 1.0, %v1265_v55  ;;  %v1113_v60 = vmul.f32 %v2892_v35, %v1096_v41 }
 0x1a3   :  { %v979_v30 = vmul.f32 0.3275911, %v962_v58  ;;  %v1200_v25 = vmul.f32 %v962_v58, %v962_v58 }
 0x1a4   :  { %v1316_v61 = vsub.f32 0.0, %v1282_v24  ;;  %v1130_v1 = vadd.f32 -0.28449672, %v1113_v60 }
 0x1a5   :  { %v2896_v43 = vpop.eup %2895  ;;  %v996_v11 = vadd.f32 1.0, %v979_v30  ;;  %v1217_v34 = vsub.f32 0.0, %v1200_v25 }
 0x1a6   :  { %v1333_v4 = vsel %vm1299_vm15, %v1316_v61, %v1282_v24  ;;  %v1147_v7 = vmul.f32 %v2892_v35, %v1130_v1  ;;  %v1046_v8 = vmul.f32 1.0614054, %v2896_v43  ;;  %v2898_v26 = vpop.eup %2897  ;;  %v927_v1 = vmul.f32 0.5, %v3732_v42 }
 0x1a7   :  { %v1350_v12 = vadd.f32 1.0, %v1333_v4  ;;  %2899 = vrcp.f32 %v996_v11  ;;  %v865_v13 = vpop.f32.mrb[10].mxu0  ;;  %v1238_v47 = vmul.f32 1.442695, %v1217_v34  ;;  %v1626_v4 = vld [vmem:[#allocation3 + $0x180] sm:$0xff] }
 0x1a8   :  { %v1164_v14 = vadd.f32 0.2548296, %v1147_v7  ;;  %v1063_v22 = vadd.f32 -1.4531521, %v1046_v8  ;;  %v3750_v15 = vadd.f32 %v3708_v39, %v865_v13  ;;  %v2645_v16 = vpop.f32.mrb[11].mxu0  ;;  %2901 = vpow2.f32 %v1236_v18  ;;  %v1627_v8 = vld [vmem:[#allocation3 + $0x188] sm:$0xff] }
 0x1a9   :  { %v1367_v17 = vmul.f32 %v1350_v12, %v925_v9  ;;  %v1610_v9 = vld [vmem:[#allocation3 + $0x100] sm:$0xff]  ;;  %v1611_v12 = vld [vmem:[#allocation3 + $0x108] sm:$0xff]  ;;  %v2776_v42 = vpack.c.bf16 %v1627_v8, %v1626_v4  ;;  %v1616_v4 = vld [vmem:[#allocation3 + $0x130] sm:$0xff] }
 0x1aa   :  { %v1181_v38 = vmul.f32 %v2892_v35, %v1164_v14  ;;  %v1080_v50 = vmul.f32 %v2896_v43, %v1063_v22  ;;  %v3753_v19 = vmul.f32 0.70710677, %v3750_v15 }
 0x1ab   :  { %1384 = vst [vmem:[#allocation2 + $0x8] sm:$0xff] %v1367_v17  ;;  %2777 = vmatprep.subr.bf16.mxu1 %v2776_v42 }
 0x1ac   :  { %v1266_v20 = vmul.f32 %v2898_v26, %v1181_v38  ;;  %v1097_v59 = vadd.f32 1.4214138, %v1080_v50  ;;  %v963_v21 = vand.u32 2147483647, %v3753_v19  ;;  %v2778_v38 = vpack.c.bf16 %v1611_v12, %v1610_v9 }
 0x1ad   :  { %vm1303_vm6 = vcmp.lt.f32.partialorder %v3753_v19, 0.0 }
 0x1ae   :  { %v1283_v27 = vsub.f32 1.0, %v1266_v20  ;;  %v1114_v29 = vmul.f32 %v2896_v43, %v1097_v59  ;;  %v980_v31 = vmul.f32 0.3275911, %v963_v21  ;;  %v1201_v10 = vmul.f32 %v963_v21, %v963_v21  ;;  %v1628_v20 = vld [vmem:[#allocation3 + $0x190] sm:$0xff]  ;;  %v1629_v59 = vld [vmem:[#allocation3 + $0x198] sm:$0xff] }
 0x1b0   :  { %v1317_v32 = vsub.f32 0.0, %v1283_v27  ;;  %v1131_v6 = vadd.f32 -0.28449672, %v1114_v29  ;;  %v997_v33 = vadd.f32 1.0, %v980_v31  ;;  %v1218_v60 = vsub.f32 0.0, %v1201_v10  ;;  %v1612_v29 = vld [vmem:[#allocation3 + $0x110] sm:$0xff] }
 0x1b1   :  { %v3756_v56 = vpop.eup %2899  ;;  %v1613_v31 = vld [vmem:[#allocation3 + $0x118] sm:$0xff] }
 0x1b2   :  { %v1334_v35 = vsel %vm1300_vm2, %v1317_v32, %v1283_v27  ;;  %v1148_v28 = vmul.f32 %v2896_v43, %v1131_v6  ;;  %v1047_v0 = vmul.f32 1.0614054, %v3756_v56  ;;  %2903 = vrcp.f32 %v997_v33  ;;  %v3760_v5 = vld [vmem:[#allocation2 + $0x1] ss:$2 sm:$0xff]  ;;  %v3762_v36 = vld [vmem:[#allocation2] ss:$2 sm:$0xff]  ;;  %v2902_v53 = vpop.eup %2901 }
 0x1b3   :  { %v1351_v37 = vadd.f32 1.0, %v1334_v35  ;;  %1761 = vmatprep.mubr.f32.mxu1 %v3760_v5  ;;  %v870_v51 = vpop.f32.mrb[12].mxu0  ;;  %2905 = vpow2.f32 %v1238_v47  ;;  %v1240_v22 = vmul.f32 1.442695, %v1218_v60  ;;  %v2780_v27 = vpack.c.bf16 %v1629_v59, %v1628_v20 }
 0x1b4   :  { %v1165_v40 = vadd.f32 0.2548296, %v1148_v28  ;;  %v1064_v44 = vadd.f32 -1.4531521, %v1047_v0  ;;  %v3767_v63 = vadd.f32 %v3708_v39, %v870_v51  ;;  %1762 = vmatmul.mubr.f32.vlgmr.msra.gmra.mrb[0].mxu1 %v3762_v36  ;;  %v2648_v45 = vpop.f32.mrb[13].mxu0  ;;  %v2782_v34 = vpack.c.bf16 %v1613_v31, %v1612_v29  ;;  %v1631_v51 = vld [vmem:[#allocation3 + $0x1a8] sm:$0xff] }
 0x1b5   :  { %v1368_v46 = vmul.f32 %v1351_v37, %v926_v2  ;;  %2779 = vmatpush3.bf16.msra.mxu1 %v2778_v38  ;;  %v1630_v37 = vld [vmem:[#allocation3 + $0x1a0] sm:$0xff]  ;;  %v1619_v31 = vld [vmem:[#allocation3 + $0x148] sm:$0xff] }
 0x1b6   :  { %v1182_v49 = vmul.f32 %v2896_v43, %v1165_v40  ;;  %v1081_v52 = vmul.f32 %v3756_v56, %v1064_v44  ;;  %v3772_v62 = vmul.f32 0.70710677, %v3767_v63  ;;  %2781 = vmatprep.subr.bf16.mxu1 %v2780_v27  ;;  %v928_v40 = vmul.f32 0.5, %v3741_v48  ;;  %v1614_v45 = vld [vmem:[#allocation3 + $0x120] sm:$0xff] }
 0x1b7   :  { %1385 = vst [vmem:[#allocation2 + $0x10] sm:$0xff] %v1368_v46  ;;  %v2784_v44 = vpack.c.bf16 %v1631_v51, %v1630_v37  ;;  %v1615_v46 = vld [vmem:[#allocation3 + $0x128] sm:$0xff]  ;;  %v1618_v29 = vld [vmem:[#allocation3 + $0x140] sm:$0xff] }
 0x1b8   :  { %v1267_v55 = vmul.f32 %v2902_v53, %v1182_v49  ;;  %v1098_v41 = vadd.f32 1.4214138, %v1081_v52  ;;  %v964_v57 = vand.u32 2147483647, %v3772_v62  ;;  %v2786_v10 = vpack.c.bf16 %v1615_v46, %v1614_v45 }
 0x1b9   :  { %2783 = vmatpush3.bf16.msra.mxu1 %v2782_v34  ;;  %vm1304_vm7 = vcmp.lt.f32.partialorder %v3772_v62, 0.0 }
 0x1ba   :  { %v1284_v58 = vsub.f32 1.0, %v1267_v55  ;;  %v1115_v24 = vmul.f32 %v3756_v56, %v1098_v41  ;;  %v981_v30 = vmul.f32 0.3275911, %v964_v57  ;;  %v1202_v6 = vmul.f32 %v964_v57, %v964_v57  ;;  %2785 = vmatprep.subr.bf16.mxu1 %v2784_v44 }
 0x1bb   :  { %v1478_v55 = vrot.slane %v3760_v5, 1  ;;  %v1528_v41 = vrot.slane %v3760_v5, 2  ;;  %v1553_v5 = vrot.slane %v3762_v36, 3 }
 0x1bc   :  { %v3776_v61 = vpop.eup %2903  ;;  %v1318_v43 = vsub.f32 0.0, %v1284_v58  ;;  %v1132_v3 = vadd.f32 -0.28449672, %v1115_v24  ;;  %v998_v11 = vadd.f32 1.0, %v981_v30  ;;  %v1219_v49 = vsub.f32 0.0, %v1202_v6  ;;  %v1632_v30 = vld [vmem:[#allocation3 + $0x1b0] sm:$0xff] }
 0x1bd   :  { %v1048_v7 = vmul.f32 1.0614054, %v3776_v61  ;;  %v2906_v35 = vpop.eup %2905  ;;  %v1503_v24 = vrot.slane %v3762_v36, 2  ;;  %2787 = vmatpush3.bf16.msra.mxu1 %v2786_v10  ;;  %v1621_v10 = vld [vmem:[#allocation3 + $0x158] sm:$0xff] }
 0x1be   :  { %v1335_v13 = vsel %vm1301_vm4, %v1318_v43, %v1284_v58  ;;  %v1149_v14 = vmul.f32 %v3756_v56, %v1132_v3  ;;  %2907 = vrcp.f32 %v998_v11  ;;  %v1444_v58 = vrot.slane %v3762_v36, 1 }
 0x1bf   :  { %v1352_v16 = vadd.f32 1.0, %v1335_v13  ;;  %v1065_v17 = vadd.f32 -1.4531521, %v1048_v7  ;;  %v875_v18 = vpop.f32.mrb[14].mxu0  ;;  %2909 = vpow2.f32 %v1240_v22  ;;  %v1617_v7 = vld [vmem:[#allocation3 + $0x138] sm:$0xff] }
 0x1c0   :  { %v1166_v50 = vadd.f32 0.2548296, %v1149_v14  ;;  %v3783_v26 = vadd.f32 %v3708_v39, %v875_v18  ;;  %v2651_v23 = vpop.f32.mrb[15].mxu0  ;;  %v1242_v9 = vmul.f32 1.442695, %v1219_v49  ;;  %v2790_v14 = vpack.c.bf16 %v1617_v7, %v1616_v4 }
 0x1c1   :  { %v1369_v21 = vmul.f32 %v1352_v16, %v927_v1  ;;  %v1082_v25 = vmul.f32 %v3776_v61, %v1065_v17  ;;  %v1633_v1 = vld [vmem:[#allocation3 + $0x1b8] sm:$0xff]  ;;  %v1635_v23 = vld [vmem:[#allocation3 + $0x1c8] sm:$0xff] }
 0x1c2   :  { %v1183_v32 = vmul.f32 %v3756_v56, %v1166_v50  ;;  %v3788_v33 = vmul.f32 0.70710677, %v3783_v26  ;;  %v2788_v11 = vpack.c.bf16 %v1633_v1, %v1632_v30  ;;  %v1634_v50 = vld [vmem:[#allocation3 + $0x1c0] sm:$0xff] }
 0x1c3   :  { %1386 = vst [vmem:[#allocation2 + $0x18] sm:$0xff] %v1369_v21  ;;  %v1099_v28 = vadd.f32 1.4214138, %v1082_v25  ;;  %v1638_v1 = vld [vmem:[#allocation3 + $0x1e0] sm:$0xff] }
 0x1c4   :  { %v1268_v0 = vmul.f32 %v2906_v35, %v1183_v32  ;;  %v3791_v2 = vand.u32 2147483647, %v3788_v33  ;;  %2789 = vmatprep.subr.bf16.mxu1 %v2788_v11  ;;  %v2792_v35 = vpack.c.bf16 %v1635_v23, %v1634_v50  ;;  %vm1305_vm8 = vcmp.lt.f32.partialorder %v3788_v33, 0.0 }
 0x1c5   :  { %v1116_v56 = vmul.f32 %v3776_v61, %v1099_v28  ;;  %2791 = vmatpush3.bf16.msra.mxu1 %v2790_v14 }
 0x1c6   :  { %v1285_v47 = vsub.f32 1.0, %v1268_v0  ;;  %v982_v52 = vmul.f32 0.3275911, %v3791_v2  ;;  %v1203_v51 = vmul.f32 %v3791_v2, %v3791_v2  ;;  %2793 = vmatprep.subr.bf16.mxu1 %v2792_v35 }
 0x1c7   :  { %v1133_v53 = vadd.f32 -0.28449672, %v1116_v56  ;;  %v1637_v56 = vld [vmem:[#allocation3 + $0x1d8] sm:$0xff] }
 0x1c8   :  { %v3799_v48 = vpop.eup %2907  ;;  %v1319_v57 = vsub.f32 0.0, %v1285_v47  ;;  %v999_v60 = vadd.f32 1.0, %v982_v52  ;;  %v1620_v52 = vld [vmem:[#allocation3 + $0x150] sm:$0xff]  ;;  %v1220_v30 = vsub.f32 0.0, %v1203_v51 }
 0x1c9   :  { %v1150_v43 = vmul.f32 %v3776_v61, %v1133_v53  ;;  %v1049_v3 = vmul.f32 1.0614054, %v3799_v48  ;;  %v2910_v32 = vpop.eup %2909 }
 0x1ca   :  { %v1336_v8 = vsel %vm1302_vm5, %v1319_v57, %v1285_v47  ;;  %2911 = vrcp.f32 %v999_v60  ;;  %v3808_v12 = vld [vmem:[#allocation2 + $0x11] ss:$2 sm:$0xff]  ;;  %v3810_v13 = vld [vmem:[#allocation2 + $0x10] ss:$2 sm:$0xff]  ;;  %v1244_v23 = vmul.f32 1.442695, %v1220_v30 }
 0x1cb   :  { %v1353_v22 = vadd.f32 1.0, %v1336_v8  ;;  %v1167_v16 = vadd.f32 0.2548296, %v1150_v43  ;;  %v1066_v17 = vadd.f32 -1.4531521, %v1049_v3  ;;  %v1479_v18 = vrot.slane %v3808_v12, 1  ;;  %1766 = vmatprep.mubr.f32.mxu1 %v3808_v12 }
 0x1cc   :  { %v1529_v36 = vrot.slane %v3808_v12, 2  ;;  %v880_v54 = vpop.f32.mrb[16].mxu0  ;;  %v1445_v42 = vrot.slane %v3810_v13, 1  ;;  %v1504_v38 = vrot.slane %v3810_v13, 2  ;;  %1767 = vmatmul.mubr.f32.gmra.mrb[2].mxu1 %v3810_v13  ;;  %2913 = vpow2.f32 %v1242_v9  ;;  %v1639_v43 = vld [vmem:[#allocation3 + $0x1e8] sm:$0xff]  ;;  %v1622_v8 = vld [vmem:[#allocation3 + $0x160] sm:$0xff] }
 0x1cd   :  { %v1370_v20 = vmul.f32 %v1353_v22, %v928_v40  ;;  %v1184_v59 = vmul.f32 %v3776_v61, %v1167_v16  ;;  %v1083_v21 = vmul.f32 %v3799_v48, %v1066_v17  ;;  %v3821_v25 = vadd.f32 %v3708_v39, %v880_v54  ;;  %v2654_v27 = vpop.f32.mrb[17].mxu0  ;;  %v1636_v40 = vld [vmem:[#allocation3 + $0x1d0] sm:$0xff] }
 0x1ce   :  { %v1530_v6 = vsel %vm158_vm3, %v1528_v41, %v1529_v36  ;;  %v1505_v34 = vsel %vm158_vm3, %v1503_v24, %v1504_v38  ;;  %v2794_v61 = vpack.c.bf16 %v1619_v31, %v1618_v29  ;;  %v3837_v44 = vsel %vm71_vm1, %v1478_v55, %v1479_v18  ;;  %v1641_v27 = vld [vmem:[#allocation3 + $0x1f8] sm:$0xff] }
 0x1cf   :  { %1387 = vst [vmem:[#allocation2 + $0x20] sm:$0xff] %v1370_v20  ;;  %v1269_v28 = vmul.f32 %v2910_v32, %v1184_v59  ;;  %v1100_v0 = vadd.f32 1.4214138, %v1083_v21  ;;  %v3830_v37 = vmul.f32 0.70710677, %v3821_v25  ;;  %1971 = vmatprep.mubr.f32.mxu0 %v1530_v6  ;;  %v3842_v45 = vsel %vm71_vm1, %v1444_v58, %v1445_v42  ;;  %v1640_v21 = vld [vmem:[#allocation3 + $0x1f0] sm:$0xff] }
 0x1d0   :  { %1972 = vmatmul.mubr.f32.vlgmr.msra.gmra.mrb[34].mxu0 %v1505_v34  ;;  %v1554_v46 = vrot.slane %v3810_v13, 3  ;;  %2795 = vmatpush3.bf16.msra.mxu1 %v2794_v61  ;;  %v2796_v53 = vpack.c.bf16 %v1637_v56, %v1636_v40  ;;  %v2798_v41 = vpack.c.bf16 %v1621_v10, %v1620_v52  ;;  %v929_v9 = vmul.f32 0.5, %v3750_v15  ;;  %v1624_v6 = vld [vmem:[#allocation3 + $0x170] sm:$0xff]  ;;  %v1625_v34 = vld [vmem:[#allocation3 + $0x178] sm:$0xff]  ;;  %v1674_v56 = vld [vmem:[#allocation3 + $0x300] sm:$0xff] }
 0x1d1   :  { %v1286_v47 = vsub.f32 1.0, %v1269_v28  ;;  %v1117_v49 = vmul.f32 %v3799_v48, %v1100_v0  ;;  %v966_v2 = vand.u32 2147483647, %v3830_v37  ;;  %v2800_v22 = vpack.c.bf16 %v1639_v43, %v1638_v1 }
 0x1d2   :  { %v3850_v55 = vsel %vm245_vm0, %v1553_v5, %v1554_v46  ;;  %2797 = vmatprep.subr.bf16.mxu1 %v2796_v53  ;;  %v1623_v5 = vld [vmem:[#allocation3 + $0x168] sm:$0xff]  ;;  %v2804_v32 = vpack.c.bf16 %v1641_v27, %v1640_v21  ;;  %v2806_v61 = vpack.c.bf16 %v1625_v34, %v1624_v6  ;;  %vm1306_vm9 = vcmp.lt.f32.partialorder %v3830_v37, 0.0 }
 0x1d3   :  { %v1320_v57 = vsub.f32 0.0, %v1286_v47  ;;  %v1134_v58 = vadd.f32 -0.28449672, %v1117_v49  ;;  %v983_v24 = vmul.f32 0.3275911, %v966_v2  ;;  %v2802_v16 = vpack.c.bf16 %v1623_v5, %v1622_v8 }
 0x1d4   :  { %v3852_v60 = vpop.eup %2911  ;;  %2799 = vmatpush3.bf16.msra.mxu1 %v2798_v41  ;;  %v1204_v51 = vmul.f32 %v966_v2, %v966_v2 }
 0x1d5   :  { %v1337_v3 = vsel %vm1303_vm6, %v1320_v57, %v1286_v47  ;;  %v1151_v11 = vmul.f32 %v3799_v48, %v1134_v58  ;;  %v1050_v4 = vmul.f32 1.0614054, %v3852_v60  ;;  %v1000_v7 = vadd.f32 1.0, %v983_v24  ;;  %2801 = vmatprep.subr.bf16.mxu1 %v2800_v22 }
 0x1d6   :  { %v1354_v14 = vadd.f32 1.0, %v1337_v3  ;;  %v2914_v29 = vpop.eup %2913  ;;  %v1221_v57 = vsub.f32 0.0, %v1204_v51  ;;  %v930_v3 = vmul.f32 0.5, %v3767_v63 }
 0x1d7   :  { %v1168_v17 = vadd.f32 0.2548296, %v1151_v11  ;;  %v1067_v19 = vadd.f32 -1.4531521, %v1050_v4  ;;  %2915 = vrcp.f32 %v1000_v7  ;;  %v885_v54 = vpop.f32.mrb[18].mxu0 }
 0x1d8   :  { %v1371_v50 = vmul.f32 %v1354_v14, %v929_v9  ;;  %v3859_v20 = vadd.f32 %v3708_v39, %v885_v54  ;;  %v2657_v59 = vpop.f32.mrb[19].mxu0  ;;  %2803 = vmatpush3.bf16.msra.mxu1 %v2802_v16  ;;  %2917 = vpow2.f32 %v1244_v23  ;;  %v1246_v16 = vmul.f32 1.442695, %v1221_v57 }
 0x1d9   :  { %v1185_v15 = vmul.f32 %v3799_v48, %v1168_v17  ;;  %v1084_v31 = vmul.f32 %v3852_v60, %v1067_v19  ;;  %2805 = vmatprep.subr.bf16.mxu1 %v2804_v32  ;;  %v1675_v48 = vld [vmem:[#allocation3 + $0x308] sm:$0xff] }
 0x1da   :  { %1388 = vst [vmem:[#allocation2 + $0x28] sm:$0xff] %v1371_v50  ;;  %v3864_v35 = vmul.f32 0.70710677, %v3859_v20  ;;  %v3868_v52 = vpack.c.bf16 %v1675_v48, %v1674_v56  ;;  %v931_v48 = vmul.f32 0.5, %v3783_v26 }
 0x1db   :  { %v1270_v28 = vmul.f32 %v2914_v29, %v1185_v15  ;;  %v1101_v0 = vadd.f32 1.4214138, %v1084_v31 }
 0x1dc   :  { %v967_v40 = vand.u32 2147483647, %v3864_v35  ;;  %2807 = vmatpush3.bf16.msra.mxu1 %v2806_v61  ;;  %vm1307_vm10 = vcmp.lt.f32.partialorder %v3864_v35, 0.0 }
 0x1dd   :  { %v1287_v47 = vsub.f32 1.0, %v1270_v28  ;;  %v1118_v49 = vmul.f32 %v3852_v60, %v1101_v0  ;;  %2841 = vmatprep.subr.bf16.mxu1 %v3868_v52 }
 0x1de   :  { %v984_v10 = vmul.f32 0.3275911, %v967_v40  ;;  %v1205_v15 = vmul.f32 %v967_v40, %v967_v40 }
 0x1df   :  { %v1321_v53 = vsub.f32 0.0, %v1287_v47  ;;  %v1135_v41 = vadd.f32 -0.28449672, %v1118_v49 }
 0x1e0   :  { %v1001_v58 = vadd.f32 1.0, %v984_v10  ;;  %v1222_v0 = vsub.f32 0.0, %v1205_v15 }
 0x1e1   :  { %v3872_v2 = vpop.eup %2915  ;;  %v1338_v24 = vsel %vm1304_vm7, %v1321_v53, %v1287_v47  ;;  %v1152_v30 = vmul.f32 %v3852_v60, %v1135_v41  ;;  %v3875_v1 = vld [vmem:[#allocation2 + $0x21] ss:$2 sm:$0xff]  ;;  %v3877_v43 = vld [vmem:[#allocation2 + $0x20] ss:$2 sm:$0xff] }
 0x1e2   :  { %v1355_v11 = vadd.f32 1.0, %v1338_v24  ;;  %v1051_v4 = vmul.f32 1.0614054, %v3872_v2  ;;  %2919 = vrcp.f32 %v1001_v58  ;;  %1771 = vmatprep.mubr.f32.mxu1 %v3875_v1  ;;  %v1481_v7 = vrot.slane %v3875_v1, 1  ;;  %v2918_v59 = vpop.eup %2917 }
 0x1e3   :  { %v1169_v62 = vadd.f32 0.2548296, %v1152_v30  ;;  %v1531_v8 = vrot.slane %v3875_v1, 2  ;;  %v890_v5 = vpop.f32.mrb[20].mxu0  ;;  %v1556_v9 = vrot.slane %v3877_v43, 3  ;;  %1772 = vmatmul.mubr.f32.gmra.mrb[4].mxu1 %v3877_v43  ;;  %v1506_v50 = vrot.slane %v3877_v43, 2 }
 0x1e4   :  { %v1372_v14 = vmul.f32 %v1355_v11, %v930_v3  ;;  %v1068_v22 = vadd.f32 -1.4531521, %v1051_v4  ;;  %v3887_v63 = vadd.f32 %v3708_v39, %v890_v5  ;;  %v2660_v17 = vpop.f32.mrb[21].mxu0  ;;  %v3901_v23 = vsel %vm71_vm1, %v1479_v18, %v1481_v7 }
 0x1e5   :  { %v1186_v19 = vmul.f32 %v3852_v60, %v1169_v62  ;;  %v1532_v54 = vsel %vm158_vm3, %v1529_v36, %v1531_v8  ;;  %v1447_v27 = vrot.slane %v3877_v43, 1  ;;  %v1507_v12 = vsel %vm158_vm3, %v1504_v38, %v1506_v50 }
 0x1e6   :  { %1389 = vst [vmem:[#allocation2 + $0x30] sm:$0xff] %v1372_v14  ;;  %v1085_v21 = vmul.f32 %v3872_v2, %v1068_v22  ;;  %v3905_v60 = vmul.f32 0.70710677, %v3887_v63  ;;  %1976 = vmatprep.mubr.f32.mxu0 %v1532_v54  ;;  %v3918_v18 = vsel %vm245_vm0, %v1554_v46, %v1556_v9  ;;  %2921 = vpow2.f32 %v1246_v16 }
 0x1e7   :  { %v1271_v36 = vmul.f32 %v2918_v59, %v1186_v19  ;;  %1977 = vmatmul.mubr.f32.gmra.mrb[36].mxu0 %v1507_v12  ;;  %v3926_v32 = vsel %vm71_vm1, %v1445_v42, %v1447_v27  ;;  %v1248_v41 = vmul.f32 1.442695, %v1222_v0 }
 0x1e8   :  { %v1102_v29 = vadd.f32 1.4214138, %v1085_v21  ;;  %v968_v31 = vand.u32 2147483647, %v3905_v60  ;;  %vm1308_vm11 = vcmp.lt.f32.partialorder %v3905_v60, 0.0 }
 0x1e9   :  { %v1288_v38 = vsub.f32 1.0, %v1271_v36 }
 0x1ea   :  { %v1119_v6 = vmul.f32 %v3872_v2, %v1102_v29  ;;  %v985_v34 = vmul.f32 0.3275911, %v968_v31  ;;  %v1206_v4 = vmul.f32 %v968_v31, %v968_v31  ;;  %v932_v29 = vmul.f32 0.5, %v3821_v25 }
 0x1eb   :  { %v1322_v61 = vsub.f32 0.0, %v1288_v38 }
 0x1ec   :  { %v2920_v46 = vpop.eup %2919  ;;  %v1136_v28 = vadd.f32 -0.28449672, %v1119_v6  ;;  %v1002_v51 = vadd.f32 1.0, %v985_v34 }
 0x1ed   :  { %v1339_v40 = vsel %vm1305_vm8, %v1322_v61, %v1288_v38  ;;  %v1052_v56 = vmul.f32 1.0614054, %v2920_v46 }
 0x1ee   :  { %v1356_v13 = vadd.f32 1.0, %v1339_v40  ;;  %v1153_v42 = vmul.f32 %v3872_v2, %v1136_v28  ;;  %2923 = vrcp.f32 %v1002_v51 }
 0x1ef   :  { %v1069_v47 = vadd.f32 -1.4531521, %v1052_v56  ;;  %v895_v49 = vpop.f32.mrb[22].mxu0  ;;  %2925 = vpow2.f32 %v1248_v41 }
 0x1f0   :  { %v1373_v10 = vmul.f32 %v1356_v13, %v931_v48  ;;  %v1170_v53 = vadd.f32 0.2548296, %v1153_v42  ;;  %v3933_v57 = vadd.f32 %v3708_v39, %v895_v49  ;;  %v2663_v33 = vpop.f32.mrb[23].mxu0  ;;  %v2922_v26 = vpop.eup %2921 }
 0x1f1   :  { %v1086_v58 = vmul.f32 %v2920_v46, %v1069_v47 }
 0x1f2   :  { %1390 = vst [vmem:[#allocation2 + $0x38] sm:$0xff] %v1373_v10  ;;  %v1187_v24 = vmul.f32 %v3872_v2, %v1170_v53  ;;  %v3937_v30 = vmul.f32 0.70710677, %v3933_v57  ;;  %v1223_v2 = vsub.f32 0.0, %v1206_v4 }
 0x1f3   :  { %v1103_v3 = vadd.f32 1.4214138, %v1086_v58 }
 0x1f4   :  { %v1272_v11 = vmul.f32 %v2922_v26, %v1187_v24  ;;  %v969_v62 = vand.u32 2147483647, %v3937_v30  ;;  %v1250_v61 = vmul.f32 1.442695, %v1223_v2  ;;  %vm1309_vm12 = vcmp.lt.f32.partialorder %v3937_v30, 0.0 }
 0x1f5   :  { %v1120_v5 = vmul.f32 %v2920_v46, %v1103_v3 }
 0x1f6   :  { %v1289_v14 = vsub.f32 1.0, %v1272_v11  ;;  %v986_v22 = vmul.f32 0.3275911, %v969_v62  ;;  %v1207_v41 = vmul.f32 %v969_v62, %v969_v62 }
 0x1f7   :  { %v1137_v16 = vadd.f32 -0.28449672, %v1120_v5 }
 0x1f8   :  { %v3940_v17 = vpop.eup %2923  ;;  %v1323_v19 = vsub.f32 0.0, %v1289_v14  ;;  %v1003_v54 = vadd.f32 1.0, %v986_v22  ;;  %v1224_v4 = vsub.f32 0.0, %v1207_v41 }
 0x1f9   :  { %v1154_v59 = vmul.f32 %v2920_v46, %v1137_v16  ;;  %v1053_v21 = vmul.f32 1.0614054, %v3940_v17  ;;  %v3944_v36 = vld [vmem:[#allocation2 + $0x31] ss:$2 sm:$0xff]  ;;  %v3946_v12 = vld [vmem:[#allocation2 + $0x30] ss:$2 sm:$0xff]  ;;  %v2926_v47 = vpop.eup %2925 }
 0x1fa   :  { %v1340_v15 = vsel %vm1306_vm9, %v1323_v19, %v1289_v14  ;;  %2927 = vrcp.f32 %v1003_v54  ;;  %v1483_v31 = vrot.slane %v3944_v36, 1  ;;  %1776 = vmatprep.mubr.f32.mxu1 %v3944_v36  ;;  %v1533_v34 = vrot.slane %v3944_v36, 2 }
 0x1fb   :  { %v1357_v38 = vadd.f32 1.0, %v1340_v15  ;;  %v1171_v37 = vadd.f32 0.2548296, %v1154_v59  ;;  %v1070_v6 = vadd.f32 -1.4531521, %v1053_v21  ;;  %1777 = vmatmul.mubr.f32.gmra.mrb[6].mxu1 %v3946_v12  ;;  %v900_v28 = vpop.f32.mrb[24].mxu0  ;;  %2929 = vpow2.f32 %v1250_v61 }
 0x1fc   :  { %v1508_v0 = vrot.slane %v3946_v12, 2  ;;  %v3959_v25 = vsel %vm71_vm1, %v1481_v7, %v1483_v31  ;;  %v1449_v51 = vrot.slane %v3946_v12, 1  ;;  %v3964_v13 = vadd.f32 %v3708_v39, %v900_v28  ;;  %v2666_v42 = vpop.f32.mrb[25].mxu0 }
 0x1fd   :  { %v1374_v40 = vmul.f32 %v1357_v38, %v932_v29  ;;  %v1188_v56 = vmul.f32 %v2920_v46, %v1171_v37  ;;  %v1087_v48 = vmul.f32 %v3940_v17, %v1070_v6  ;;  %v1534_v49 = vsel %vm158_vm3, %v1531_v8, %v1533_v34 }
 0x1fe   :  { %v1509_v7 = vsel %vm158_vm3, %v1506_v50, %v1508_v0  ;;  %v3981_v46 = vsel %vm71_vm1, %v1447_v27, %v1449_v51  ;;  %v1558_v10 = vrot.slane %v3946_v12, 3  ;;  %v3985_v8 = vmul.f32 0.70710677, %v3964_v13  ;;  %1981 = vmatprep.mubr.f32.mxu0 %v1534_v49 }
 0x1ff   :  { %1391 = vst [vmem:[#allocation2 + $0x40] sm:$0xff] %v1374_v40  ;;  %v1273_v53 = vmul.f32 %v2926_v47, %v1188_v56  ;;  %v1104_v1 = vadd.f32 1.4214138, %v1087_v48  ;;  %1982 = vmatmul.mubr.f32.gmra.mrb[38].mxu0 %v1509_v7  ;;  %v1252_v59 = vmul.f32 1.442695, %v1224_v4 }
 0x200   :  { %v3992_v50 = vsel %vm245_vm0, %v1556_v9, %v1558_v10  ;;  %v970_v58 = vand.u32 2147483647, %v3985_v8  ;;  %v933_v9 = vmul.f32 0.5, %v3859_v20  ;;  %vm1310_vm13 = vcmp.lt.f32.partialorder %v3985_v8, 0.0 }
 0x201   :  { %v1290_v27 = vsub.f32 1.0, %v1273_v53  ;;  %v1121_v33 = vmul.f32 %v3940_v17, %v1104_v1 }
 0x202   :  { %v987_v3 = vmul.f32 0.3275911, %v970_v58  ;;  %v1208_v61 = vmul.f32 %v970_v58, %v970_v58 }
 0x203   :  { %v1324_v24 = vsub.f32 0.0, %v1290_v27  ;;  %v1138_v26 = vadd.f32 -0.28449672, %v1121_v33 }
 0x204   :  { %v2928_v11 = vpop.eup %2927  ;;  %v1004_v43 = vadd.f32 1.0, %v987_v3 }
 0x205   :  { %v1341_v62 = vsel %vm1307_vm10, %v1324_v24, %v1290_v27  ;;  %v1155_v5 = vmul.f32 %v3940_v17, %v1138_v26  ;;  %v1054_v14 = vmul.f32 1.0614054, %v2928_v11  ;;  %v2930_v38 = vpop.eup %2929  ;;  %v934_v27 = vmul.f32 0.5, %v3887_v63  ;;  %v4024_v63 = vld [vmem:[%s4341_s2] ss:$0 sm:$0xff] }
 0x206   :  { %v1358_v22 = vadd.f32 1.0, %v1341_v62  ;;  %2931 = vrcp.f32 %v1004_v43 }
 0x207   :  { %v1172_v16 = vadd.f32 0.2548296, %v1155_v5  ;;  %v1071_v19 = vadd.f32 -1.4531521, %v1054_v14  ;;  %v905_v2 = vpop.f32.mrb[26].mxu0  ;;  %2933 = vpow2.f32 %v1252_v59 }
 0x208   :  { %v1375_v54 = vmul.f32 %v1358_v22, %v933_v9  ;;  %v4000_v21 = vadd.f32 %v3708_v39, %v905_v2  ;;  %v2669_v29 = vpop.f32.mrb[27].mxu0 }
 0x209   :  { %v1189_v35 = vmul.f32 %v3940_v17, %v1172_v16  ;;  %v1088_v15 = vmul.f32 %v2928_v11, %v1071_v19  ;;  %v1225_v17 = vsub.f32 0.0, %v1208_v61 }
 0x20a   :  { %1392 = vst [vmem:[#allocation2 + $0x48] sm:$0xff] %v1375_v54  ;;  %v4004_v37 = vmul.f32 0.70710677, %v4000_v21 }
 0x20b   :  { %v1274_v20 = vmul.f32 %v2930_v38, %v1189_v35  ;;  %v1105_v6 = vadd.f32 1.4214138, %v1088_v15  ;;  %v1254_v14 = vmul.f32 1.442695, %v1225_v17 }
 0x20c   :  { %v971_v28 = vand.u32 2147483647, %v4004_v37  ;;  %vm1311_vm14 = vcmp.lt.f32.partialorder %v4004_v37, 0.0 }
 0x20d   :  { %v1291_v40 = vsub.f32 1.0, %v1274_v20  ;;  %v1122_v56 = vmul.f32 %v2928_v11, %v1105_v6 }
 0x20e   :  { %v988_v48 = vmul.f32 0.3275911, %v971_v28  ;;  %v1209_v15 = vmul.f32 %v971_v28, %v971_v28 }
 0x20f   :  { %v1325_v39 = vsub.f32 0.0, %v1291_v40  ;;  %v1139_v42 = vadd.f32 -0.28449672, %v1122_v56 }
 0x210   :  { %v1005_v47 = vadd.f32 1.0, %v988_v48  ;;  %v4008_v49 = vpop.eup %2931  ;;  %v1226_v48 = vsub.f32 0.0, %v1209_v15 }
 0x211   :  { %v1342_v7 = vsel %vm1308_vm11, %v1325_v39, %v1291_v40  ;;  %v1156_v53 = vmul.f32 %v2928_v11, %v1139_v42  ;;  %v4010_v1 = vld [vmem:[#allocation2 + $0x41] ss:$2 sm:$0xff]  ;;  %v4012_v41 = vld [vmem:[#allocation2 + $0x40] ss:$2 sm:$0xff]  ;;  %v1055_v58 = vmul.f32 1.0614054, %v4008_v49 }
 0x212   :  { %v1359_v33 = vadd.f32 1.0, %v1342_v7  ;;  %2935 = vrcp.f32 %v1005_v47  ;;  %1781 = vmatprep.mubr.f32.mxu1 %v4010_v1  ;;  %v1485_v60 = vrot.slane %v4010_v1, 1  ;;  %v1535_v26 = vrot.slane %v4010_v1, 2 }
 0x213   :  { %v1173_v24 = vadd.f32 0.2548296, %v1156_v53  ;;  %v910_v3 = vpop.f32.mrb[28].mxu0  ;;  %1782 = vmatmul.mubr.f32.gmra.mrb[8].mxu1 %v4012_v41  ;;  %v1510_v4 = vrot.slane %v4012_v41, 2  ;;  %v1072_v5 = vadd.f32 -1.4531521, %v1055_v58  ;;  %2937 = vpow2.f32 %v1254_v14 }
 0x214   :  { %v1376_v62 = vmul.f32 %v1359_v33, %v934_v27  ;;  %v4027_v43 = vadd.f32 %v4024_v63, %v910_v3  ;;  %v2672_v9 = vpop.f32.mrb[29].mxu0  ;;  %v1536_v16 = vsel %vm158_vm3, %v1533_v34, %v1535_v26  ;;  %v4044_v2 = vsel %vm71_vm1, %v1483_v31, %v1485_v60 }
 0x215   :  { %v1190_v22 = vmul.f32 %v2928_v11, %v1173_v24  ;;  %v1511_v19 = vsel %vm158_vm3, %v1508_v0, %v1510_v4  ;;  %v2934_v11 = vpop.eup %2933  ;;  %v1089_v54 = vmul.f32 %v4008_v49, %v1072_v5  ;;  %1986 = vmatprep.mubr.f32.mxu0 %v1536_v16  ;;  %v1451_v34 = vrot.slane %v4012_v41, 1 }
 0x216   :  { %1393 = vst [vmem:[#allocation2 + $0x50] sm:$0xff] %v1376_v62  ;;  %v4048_v59 = vmul.f32 0.70710677, %v4027_v43  ;;  %1987 = vmatmul.mubr.f32.gmra.mrb[40].mxu0 %v1511_v19  ;;  %v1560_v0 = vrot.slane %v4012_v41, 3  ;;  %v1256_v24 = vmul.f32 1.442695, %v1226_v48 }
 0x217   :  { %v1275_v29 = vmul.f32 %v2934_v11, %v1190_v22  ;;  %v1106_v35 = vadd.f32 1.4214138, %v1089_v54  ;;  %v4058_v31 = vsel %vm71_vm1, %v1449_v51, %v1451_v34  ;;  %v1688_v41 = vld [vmem:[#allocation3 + $0x370] sm:$0xff] }
 0x218   :  { %v972_v36 = vand.u32 2147483647, %v4048_v59  ;;  %v4065_v20 = vsel %vm245_vm0, %v1558_v10, %v1560_v0  ;;  %v935_v10 = vmul.f32 0.5, %v3933_v57  ;;  %vm1312_vm15 = vcmp.lt.f32.partialorder %v4048_v59, 0.0 }
 0x219   :  { %v1292_v38 = vsub.f32 1.0, %v1275_v29  ;;  %v1123_v6 = vmul.f32 %v4008_v49, %v1106_v35 }
 0x21a   :  { %v989_v61 = vmul.f32 0.3275911, %v972_v36  ;;  %v1210_v16 = vmul.f32 %v972_v36, %v972_v36 }
 0x21b   :  { %v1326_v28 = vsub.f32 0.0, %v1292_v38  ;;  %v1140_v56 = vadd.f32 -0.28449672, %v1123_v6 }
 0x21c   :  { %v2936_v40 = vpop.eup %2935  ;;  %v1006_v51 = vadd.f32 1.0, %v989_v61  ;;  %v915_v39 = vpop.f32.mrb[30].mxu0 }
 0x21d   :  { %v1343_v42 = vsel %vm1309_vm12, %v1326_v28, %v1292_v38  ;;  %v1056_v17 = vmul.f32 1.0614054, %v2936_v40  ;;  %v4070_v47 = vadd.f32 %v4024_v63, %v915_v39  ;;  %v2675_v12 = vpop.f32.mrb[31].mxu0  ;;  %v1157_v53 = vmul.f32 %v4008_v49, %v1140_v56  ;;  %v2938_v14 = vpop.eup %2937 }
 0x21e   :  { %v1360_v7 = vadd.f32 1.0, %v1343_v42  ;;  %2939 = vrcp.f32 %v1006_v51  ;;  %v1227_v38 = vsub.f32 0.0, %v1210_v16  ;;  %v936_v42 = vmul.f32 0.5, %v3964_v13 }
 0x21f   :  { %v1073_v27 = vadd.f32 -1.4531521, %v1056_v17  ;;  %v4075_v33 = vmul.f32 0.70710677, %v4070_v47  ;;  %v1174_v58 = vadd.f32 0.2548296, %v1157_v53  ;;  %2941 = vpow2.f32 %v1256_v24 }
 0x220   :  { %v1377_v30 = vmul.f32 %v1360_v7, %v935_v10 }
 0x221   :  { %v1090_v3 = vmul.f32 %v2936_v40, %v1073_v27  ;;  %v973_v62 = vand.u32 2147483647, %v4075_v33  ;;  %v1191_v5 = vmul.f32 %v4008_v49, %v1174_v58  ;;  %vm1313_vm2 = vcmp.lt.f32.partialorder %v4075_v33, 0.0 }
 0x222   :  { %1394 = vst [vmem:[#allocation2 + $0x58] sm:$0xff] %v1377_v30 }
 0x223   :  { %v1107_v9 = vadd.f32 1.4214138, %v1090_v3  ;;  %v990_v57 = vmul.f32 0.3275911, %v973_v62  ;;  %v1276_v22 = vmul.f32 %v2938_v14, %v1191_v5  ;;  %v1211_v24 = vmul.f32 %v973_v62, %v973_v62 }
 0x225   :  { %v1124_v19 = vmul.f32 %v2936_v40, %v1107_v9  ;;  %v1007_v11 = vadd.f32 1.0, %v990_v57  ;;  %v1293_v54 = vsub.f32 1.0, %v1276_v22  ;;  %v1228_v16 = vsub.f32 0.0, %v1211_v24 }
 0x227   :  { %v1141_v29 = vadd.f32 -0.28449672, %v1124_v19  ;;  %2943 = vrcp.f32 %v1007_v11  ;;  %v1327_v15 = vsub.f32 0.0, %v1293_v54 }
 0x228   :  { %v2940_v35 = vpop.eup %2939  ;;  %v920_v6 = vpop.f32.mrb[32].mxu0 }
 0x229   :  { %v1158_v61 = vmul.f32 %v2936_v40, %v1141_v29  ;;  %v1057_v28 = vmul.f32 1.0614054, %v2940_v35  ;;  %v4081_v49 = vadd.f32 %v4024_v63, %v920_v6  ;;  %v4083_v56 = vld [vmem:[#allocation2 + $0x51] ss:$2 sm:$0xff]  ;;  %v4085_v48 = vld [vmem:[#allocation2 + $0x50] ss:$2 sm:$0xff]  ;;  %v1344_v36 = vsel %vm1310_vm13, %v1327_v15, %v1293_v54  ;;  %v2942_v3 = vpop.eup %2941 }
 0x22a   :  { %v1537_v51 = vrot.slane %v4083_v56, 2  ;;  %1786 = vmatprep.mubr.f32.mxu1 %v4083_v56  ;;  %v1512_v39 = vrot.slane %v4085_v48, 2  ;;  %v2678_v8 = vpop.f32.mrb[33].mxu0  ;;  %v1361_v17 = vadd.f32 1.0, %v1344_v36  ;;  %v1258_v63 = vmul.f32 1.442695, %v1227_v38 }
 0x22b   :  { %v1175_v12 = vadd.f32 0.2548296, %v1158_v61  ;;  %v1074_v10 = vadd.f32 -1.4531521, %v1057_v28  ;;  %1787 = vmatmul.mubr.f32.gmra.mrb[10].mxu1 %v4085_v48  ;;  %v4093_v7 = vmul.f32 0.70710677, %v4081_v49 }
 0x22c   :  { %v1538_v53 = vsel %vm158_vm3, %v1535_v26, %v1537_v51  ;;  %v1513_v13 = vsel %vm158_vm3, %v1510_v4, %v1512_v39  ;;  %v1378_v27 = vmul.f32 %v1361_v17, %v936_v42  ;;  %v1562_v14 = vrot.slane %v4085_v48, 3 }
 0x22d   :  { %v1192_v30 = vmul.f32 %v2936_v40, %v1175_v12  ;;  %v1091_v58 = vmul.f32 %v2940_v35, %v1074_v10  ;;  %1991 = vmatprep.mubr.f32.mxu0 %v1538_v53  ;;  %v974_v5 = vand.u32 2147483647, %v4093_v7  ;;  %2945 = vpow2.f32 %v1258_v63 }
 0x22e   :  { %1992 = vmatmul.mubr.f32.gmra.mrb[42].mxu0 %v1513_v13  ;;  %1395 = vst [vmem:[#allocation2 + $0x60] sm:$0xff] %v1378_v27  ;;  %v4112_v4 = vsel %vm245_vm0, %v1560_v0, %v1562_v14  ;;  %v1260_v61 = vmul.f32 1.442695, %v1228_v16  ;;  %v937_v28 = vmul.f32 0.5, %v4000_v21  ;;  %v938_v21 = vmul.f32 0.5, %v4027_v43 }
 0x22f   :  { %v1277_v9 = vmul.f32 %v2942_v3, %v1192_v30  ;;  %v1108_v26 = vadd.f32 1.4214138, %v1091_v58  ;;  %v991_v57 = vmul.f32 0.3275911, %v974_v5  ;;  %v1212_v53 = vmul.f32 %v974_v5, %v974_v5 }
 0x230   :  { %vm1314_vm4 = vcmp.lt.f32.partialorder %v4093_v7, 0.0 }
 0x231   :  { %v2944_v40 = vpop.eup %2943  ;;  %v1294_v62 = vsub.f32 1.0, %v1277_v9  ;;  %v1125_v22 = vmul.f32 %v2940_v35, %v1108_v26  ;;  %v1008_v11 = vadd.f32 1.0, %v991_v57  ;;  %v1229_v24 = vsub.f32 0.0, %v1212_v53 }
 0x232   :  { %v1058_v19 = vmul.f32 1.0614054, %v2944_v40 }
 0x233   :  { %v1328_v54 = vsub.f32 0.0, %v1294_v62  ;;  %v1142_v29 = vadd.f32 -0.28449672, %v1125_v22  ;;  %2947 = vrcp.f32 %v1008_v11 }
 0x234   :  { %v1075_v15 = vadd.f32 -1.4531521, %v1058_v19  ;;  %2949 = vpow2.f32 %v1260_v61  ;;  %v1262_v19 = vmul.f32 1.442695, %v1229_v24 }
 0x235   :  { %v1345_v38 = vsel %vm1311_vm14, %v1328_v54, %v1294_v62  ;;  %v1159_v6 = vmul.f32 %v2940_v35, %v1142_v29 }
 0x236   :  { %v1362_v36 = vadd.f32 1.0, %v1345_v38  ;;  %v1092_v0 = vmul.f32 %v2944_v40, %v1075_v15  ;;  %2951 = vpow2.f32 %v1262_v19  ;;  %v1681_v19 = vld [vmem:[#allocation3 + $0x338] sm:$0xff] }
 0x237   :  { %v1176_v8 = vadd.f32 0.2548296, %v1159_v6  ;;  %v2946_v10 = vpop.eup %2945 }
 0x238   :  { %v1379_v42 = vmul.f32 %v1362_v36, %v937_v28  ;;  %v1109_v17 = vadd.f32 1.4214138, %v1092_v0 }
 0x239   :  { %v1193_v12 = vmul.f32 %v2940_v35, %v1176_v8 }
 0x23a   :  { %1396 = vst [vmem:[#allocation2 + $0x68] sm:$0xff] %v1379_v42  ;;  %v1126_v63 = vmul.f32 %v2944_v40, %v1109_v17  ;;  %v939_v42 = vmul.f32 0.5, %v4070_v47 }
 0x23b   :  { %v1278_v13 = vmul.f32 %v2946_v10, %v1193_v12 }
 0x23c   :  { %v1143_v37 = vadd.f32 -0.28449672, %v1126_v63 }
 0x23d   :  { %v1295_v27 = vsub.f32 1.0, %v1278_v13  ;;  %v2948_v30 = vpop.eup %2947 }
 0x23e   :  { %v1160_v58 = vmul.f32 %v2944_v40, %v1143_v37  ;;  %v1059_v9 = vmul.f32 1.0614054, %v2948_v30  ;;  %v2950_v54 = vpop.eup %2949 }
 0x23f   :  { %v1329_v3 = vsub.f32 0.0, %v1295_v27 }
 0x240   :  { %v1177_v26 = vadd.f32 0.2548296, %v1160_v58  ;;  %v1076_v35 = vadd.f32 -1.4531521, %v1059_v9  ;;  %v2952_v53 = vpop.eup %2951  ;;  %v1677_v9 = vld [vmem:[#allocation3 + $0x318] sm:$0xff] }
 0x241   :  { %v1346_v57 = vsel %vm1312_vm15, %v1329_v3, %v1295_v27  ;;  %v4118_v62 = vld [vmem:[#allocation2 + $0x61] ss:$2 sm:$0xff]  ;;  %v4120_v22 = vld [vmem:[#allocation2 + $0x60] ss:$2 sm:$0xff]  ;;  %v1676_v3 = vld [vmem:[#allocation3 + $0x310] sm:$0xff] }
 0x242   :  { %v1363_v5 = vadd.f32 1.0, %v1346_v57  ;;  %v1194_v16 = vmul.f32 %v2944_v40, %v1177_v26  ;;  %v1539_v11 = vrot.slane %v4118_v62, 2  ;;  %1791 = vmatprep.mubr.f32.mxu1 %v4118_v62  ;;  %v1093_v29 = vmul.f32 %v2948_v30, %v1076_v35 }
 0x243   :  { %1792 = vmatmul.mubr.f32.gmra.mrb[12].mxu1 %v4120_v22  ;;  %v1514_v43 = vrot.slane %v4120_v22, 2  ;;  %v2844_v35 = vpack.c.bf16 %v1677_v9, %v1676_v3 }
 0x244   :  { %v1380_v59 = vmul.f32 %v1363_v5, %v938_v21  ;;  %v1279_v15 = vmul.f32 %v2950_v54, %v1194_v16  ;;  %v1540_v38 = vsel %vm158_vm3, %v1537_v51, %v1539_v11  ;;  %v1110_v6 = vadd.f32 1.4214138, %v1093_v29  ;;  %v1678_v5 = vld [vmem:[#allocation3 + $0x320] sm:$0xff]  ;;  %v1679_v16 = vld [vmem:[#allocation3 + $0x328] sm:$0xff] }
 0x245   :  { %1996 = vmatprep.mubr.f32.mxu0 %v1540_v38  ;;  %v1515_v40 = vsel %vm158_vm3, %v1512_v39, %v1514_v43  ;;  %v1682_v54 = vld [vmem:[#allocation3 + $0x340] sm:$0xff]  ;;  %v1683_v29 = vld [vmem:[#allocation3 + $0x348] sm:$0xff]  ;;  %v1453_v38 = vrot.slane %v4085_v48, 1 }
 0x246   :  { %1397 = vst [vmem:[#allocation2 + $0x70] sm:$0xff] %v1380_v59  ;;  %v1296_v61 = vsub.f32 1.0, %v1279_v15  ;;  %1997 = vmatmul.mubr.f32.gmra.mrb[44].mxu0 %v1515_v40  ;;  %v1127_v28 = vmul.f32 %v2948_v30, %v1110_v6  ;;  %v2856_v15 = vpack.c.bf16 %v1683_v29, %v1682_v54  ;;  %v1684_v6 = vld [vmem:[#allocation3 + $0x350] sm:$0xff]  ;;  %v1685_v40 = vld [vmem:[#allocation3 + $0x358] sm:$0xff] }
 0x248   :  { %v1330_v36 = vsub.f32 0.0, %v1296_v61  ;;  %v1144_v0 = vadd.f32 -0.28449672, %v1127_v28  ;;  %v1455_v28 = vrot.slane %v4120_v22, 1 }
 0x24a   :  { %v1347_v8 = vsel %vm1313_vm2, %v1330_v36, %v1296_v61  ;;  %v1161_v51 = vmul.f32 %v2948_v30, %v1144_v0  ;;  %v1454_v61 = vsel %vm71_vm1, %v1451_v34, %v1453_v38  ;;  %v1686_v36 = vld [vmem:[#allocation3 + $0x360] sm:$0xff]  ;;  %v1687_v0 = vld [vmem:[#allocation3 + $0x368] sm:$0xff] }
 0x24b   :  { %v1364_v17 = vadd.f32 1.0, %v1347_v8  ;;  %v2864_v1 = vpack.c.bf16 %v1687_v0, %v1686_v36  ;;  %v2376_v36 = vld [vmem:[%s4343_s4] ss:$0 sm:$0xff]  ;;  %s3046_s4 = smov [#allocation6]  }
 0x24c   :  { %v1178_v10 = vadd.f32 0.2548296, %v1161_v51  ;;  %s2346_s16 = sshll.u32 %s3046_s4, 4  ;;  %s2347_s16 = int_to_ptr.vmem [resolvable:$true] %s2346_s16 }
 0x24d   :  { %v1381_v12 = vmul.f32 %v1364_v17, %v939_v42  ;;  %v1689_v42 = vld [vmem:[#allocation3 + $0x378] sm:$0xff]  ;;  %s3008_s19 = scalar_lea.vmem %s2347_s16, 1024  ;;  %p3013_p9 = scmp.lt.s32.totalorder %s2347_s16, %s2347_s16 }
 0x24e   :  { %v1195_v63 = vmul.f32 %v2948_v30, %v1178_v10  ;;  %v940_v30 = vmul.f32 0.5, %v4081_v49  ;;  %v2848_v49 = vpack.c.bf16 %v1679_v16, %v1678_v5  ;;  %v2868_v51 = vpack.c.bf16 %v1689_v42, %v1688_v41  ;;  %p3009_p8 = scmp.ne.s32.totalorder %s2347_s16, %s3008_s19  ;;  %p3014_p10 = scmp.lt.s32.totalorder %s3008_s19, %s3008_s19 }
 0x24f   :  { %1398 = vst [vmem:[#allocation2 + $0x78] sm:$0xff] %v1381_v12 }
 0x250   :  { %v1280_v39 = vmul.f32 %v2952_v53, %v1195_v63  ;;  %p3015_p11 = por %p3014_p10, %p3013_p9 }
 0x252   :  { %v1297_v13 = vsub.f32 1.0, %v1280_v39  ;;  %v1564_v39 = vrot.slane %v4120_v22, 3  ;;  %p3016_p12 = pnand %p3015_p11, %p3009_p8 }
 0x254   :  { %v1331_v37 = vsub.f32 0.0, %v1297_v13 }
 0x256   :  { %v4135_v27 = vld [vmem:[#allocation2 + $0x71] ss:$2 sm:$0xff]  ;;  %v4137_v58 = vld [vmem:[#allocation2 + $0x70] ss:$2 sm:$0xff]  ;;  %v1348_v33 = vsel %vm1314_vm4, %v1331_v37, %v1297_v13  ;;  %v1565_v37 = vsel %vm245_vm0, %v1562_v14, %v1564_v39 }
 0x257   :  { %v1541_v24 = vrot.slane %v4135_v27, 2  ;;  %1796 = vmatprep.mubr.f32.mxu1 %v4135_v27  ;;  %v1516_v47 = vrot.slane %v4137_v58, 2  ;;  %v1365_v21 = vadd.f32 1.0, %v1348_v33  ;;  %v1457_v8 = vrot.slane %v4137_v58, 1 }
 0x258   :  { %1797 = vmatmul.mubr.f32.gmra.mrb[14].mxu1 %v4137_v58  ;;  %v1566_v13 = vrot.slane %v4137_v58, 3 }
 0x259   :  { %1866 = vmatprep.mubr.f32.mxu1 %v3837_v44  ;;  %v1542_v7 = vsel %vm158_vm3, %v1539_v11, %v1541_v24  ;;  %v1517_v26 = vsel %vm158_vm3, %v1514_v43, %v1516_v47  ;;  %v1382_v57 = vmul.f32 %v1365_v21, %v940_v30  ;;  %v1680_v44 = vld [vmem:[#allocation3 + $0x330] sm:$0xff]  ;;  %v1458_v12 = vsel %vm71_vm1, %v1455_v28, %v1457_v8 }
 0x25a   :  { %2001 = vmatprep.mubr.f32.mxu0 %v1542_v7  ;;  %v2852_v11 = vpack.c.bf16 %v1681_v19, %v1680_v44 }
 0x25b   :  { %2002 = vmatmul.mubr.f32.gmra.mrb[46].mxu0 %v1517_v26  ;;  %1399 = vst [vmem:[#allocation2 + $0x80] sm:$0xff] %v1382_v57 }
 0x25c   :  { %1867 = vmatmul.mubr.f32.vlgmr.msra.gmra.mrb[16].mxu1 %v3842_v45  ;;  %v1487_v45 = vrot.slane %v4083_v56, 1  ;;  %v1489_v56 = vrot.slane %v4118_v62, 1  ;;  %v1491_v62 = vrot.slane %v4135_v27, 1 }
 0x25d   :  { %2843 = vmatpush3.bf16.msra.mxu1 %v3868_v52  ;;  %1871 = vmatprep.mubr.f32.mxu1 %v3901_v23 }
 0x25e   :  { %2845 = vmatprep.subr.bf16.mxu1 %v2844_v35  ;;  %v1492_v34 = vsel %vm71_vm1, %v1489_v56, %v1491_v62 }
 0x260   :  { %1872 = vmatmul.mubr.f32.gmra.mrb[18].mxu1 %v3926_v32 }
 0x261   :  { %2847 = vmatpush3.bf16.msra.mxu1 %v2844_v35  ;;  %1876 = vmatprep.mubr.f32.mxu1 %v3959_v25 }
 0x262   :  { %2849 = vmatprep.subr.bf16.mxu1 %v2848_v49  ;;  %v1434_v43 = vld [vmem:[#allocation2 + $0x81] ss:$2 sm:$0x7]  ;;  %v4152_v59 = vld [vmem:[#allocation2 + $0x80] ss:$2 sm:$0x7] }
 0x263   :  { %v1543_v52 = vrot.slane %v1434_v43, 2  ;;  %v1518_v23 = vrot.slane %v4152_v59, 2  ;;  %v1493_v17 = vrot.slane %v1434_v43, 1  ;;  %v1459_v10 = vrot.slane %v4152_v59, 1 }
 0x264   :  { %1877 = vmatmul.mubr.f32.gmra.mrb[20].mxu1 %v3981_v46  ;;  %v1488_v46 = vsel %vm71_vm1, %v1485_v60, %v1487_v45  ;;  %v1456_v60 = vsel %vm71_vm1, %v1453_v38, %v1455_v28  ;;  %v1568_v27 = vrot.slane %v4152_v59, 3 }
 0x265   :  { %2851 = vmatpush3.bf16.msra.mxu1 %v2848_v49  ;;  %1881 = vmatprep.mubr.f32.mxu1 %v4044_v2  ;;  %v1544_v32 = vsel %vm158_vm3, %v1541_v24, %v1543_v52  ;;  %v1519_v25 = vsel %vm158_vm3, %v1516_v47, %v1518_v23  ;;  %v2860_v2 = vpack.c.bf16 %v1685_v40, %v1684_v6 }
 0x266   :  { %2853 = vmatprep.subr.bf16.mxu1 %v2852_v11  ;;  %2006 = vmatprep.mubr.f32.mxu0 %v1544_v32  ;;  %v1494_v63 = vsel %vm71_vm1, %v1491_v62, %v1493_v17  ;;  %v1460_v53 = vsel %vm71_vm1, %v1457_v8, %v1459_v10 }
 0x267   :  { %2007 = vmatmul.mubr.f32.gmra.mrb[48].mxu0 %v1519_v25 }
 0x268   :  { %1882 = vmatmul.mubr.f32.gmra.mrb[22].mxu1 %v4058_v31  ;;  %v1490_v31 = vsel %vm71_vm1, %v1487_v45, %v1489_v56 }
 0x269   :  { %2855 = vmatpush3.bf16.msra.mxu1 %v2852_v11  ;;  %1886 = vmatprep.mubr.f32.mxu1 %v1488_v46 }
 0x26a   :  { %2857 = vmatprep.subr.bf16.mxu1 %v2856_v15 }
 0x26c   :  { %1887 = vmatmul.mubr.f32.gmra.mrb[24].mxu1 %v1454_v61 }
 0x26d   :  { %2859 = vmatpush3.bf16.msra.mxu1 %v2856_v15  ;;  %1891 = vmatprep.mubr.f32.mxu1 %v1490_v31 }
 0x26e   :  { %2861 = vmatprep.subr.bf16.mxu1 %v2860_v2 }
 0x270   :  { %1892 = vmatmul.mubr.f32.gmra.mrb[26].mxu1 %v1456_v60 }
 0x271   :  { %2863 = vmatpush3.bf16.msra.mxu1 %v2860_v2  ;;  %1896 = vmatprep.mubr.f32.mxu1 %v1492_v34 }
 0x272   :  { %2865 = vmatprep.subr.bf16.mxu1 %v2864_v1 }
 0x274   :  { %1897 = vmatmul.mubr.f32.gmra.mrb[28].mxu1 %v1458_v12 }
 0x275   :  { %2867 = vmatpush3.bf16.msra.mxu1 %v2864_v1  ;;  %1901 = vmatprep.mubr.f32.mxu1 %v1494_v63 }
 0x276   :  { %2869 = vmatprep.subr.bf16.mxu1 %v2868_v51 }
 0x278   :  { %1902 = vmatmul.mubr.f32.gmra.mrb[30].mxu1 %v1460_v53 }
 0x279   :  { %2871 = vmatpush3.bf16.msra.mxu1 %v2868_v51  ;;  %2711 = vmatprep.mubr.f32.mxu1 %v3850_v55  ;;  %v1567_v55 = vsel %vm245_vm0, %v1564_v39, %v1566_v13 }
 0x27c   :  { %2712 = vmatmul.mubr.f32.vlgmr.msra.gmra.mrb[32].mxu1 %v3918_v18 }
 0x27d   :  { %2714 = vmatprep.mubr.f32.mxu1 %v3992_v50  ;;  %v1569_v50 = vsel %vm245_vm0, %v1566_v13, %v1568_v27 }
 0x280   :  { %2715 = vmatmul.mubr.f32.gmra.mrb[34].mxu1 %v4065_v20 }
 0x281   :  { %2717 = vmatprep.mubr.f32.mxu1 %v4112_v4 }
 0x284   :  { %2718 = vmatmul.mubr.f32.gmra.mrb[36].mxu1 %v1565_v37 }
 0x285   :  { %2720 = vmatprep.mubr.f32.mxu1 %v1567_v55 }
 0x287   :  { %v2440_v18 = vpop.f32.mrb[0].mxu1 }
 0x288   :  { %v2441_v22 = vpop.f32.mrb[1].mxu1  ;;  %2721 = vmatmul.mubr.f32.gmra.mrb[38].mxu1 %v1569_v50 }
 0x289   :  { %v2442_v20 = vadd.f32 %v2441_v22, %v2440_v18 }
 0x28b   :  { %v1764_v8 = vadd.f32 %v2442_v20, %v2376_v36 }
 0x29f   :  { %v2443_v33 = vpop.f32.mrb[2].mxu1 }
 0x2a0   :  { %v2444_v58 = vpop.f32.mrb[3].mxu1 }
 0x2a1   :  { %v2445_v24 = vadd.f32 %v2444_v58, %v2443_v33 }
 0x2a3   :  { %v2552_v4 = vpop.f32.mrb[34].mxu0  ;;  %v1769_v51 = vadd.f32 %v2445_v24, %v2376_v36 }
 0x2a4   :  { %v2553_v47 = vpop.f32.mrb[35].mxu0 }
 0x2a5   :  { %v2554_v48 = vadd.f32 %v2553_v47, %v2552_v4 }
 0x2b6   :  { %v2446_v3 = vpop.f32.mrb[4].mxu1 }
 0x2b7   :  { %v2447_v14 = vpop.f32.mrb[5].mxu1 }
 0x2b8   :  { %v2448_v9 = vadd.f32 %v2447_v14, %v2446_v3 }
 0x2ba   :  { %v2555_v30 = vpop.f32.mrb[36].mxu0  ;;  %v1774_v13 = vadd.f32 %v2448_v9, %v2376_v36 }
 0x2bb   :  { %v2556_v21 = vpop.f32.mrb[37].mxu0 }
 0x2bc   :  { %v2557_v7 = vadd.f32 %v2556_v21, %v2555_v30 }
 0x2ce   :  { %v2449_v26 = vpop.f32.mrb[6].mxu1 }
 0x2cf   :  { %v2450_v57 = vpop.f32.mrb[7].mxu1 }
 0x2d0   :  { %v2451_v35 = vadd.f32 %v2450_v57, %v2449_v26 }
 0x2d2   :  { %v2558_v5 = vpop.f32.mrb[38].mxu0  ;;  %v1779_v58 = vadd.f32 %v2451_v35, %v2376_v36 }
 0x2d3   :  { %v2559_v16 = vpop.f32.mrb[39].mxu0 }
 0x2d4   :  { %v2560_v49 = vadd.f32 %v2559_v16, %v2558_v5 }
 0x2e6   :  { %v2452_v44 = vpop.f32.mrb[8].mxu1 }
 0x2e7   :  { %v2453_v19 = vpop.f32.mrb[9].mxu1 }
 0x2e8   :  { %v2454_v11 = vadd.f32 %v2453_v19, %v2452_v44 }
 0x2e9   :  { %v2561_v54 = vpop.f32.mrb[40].mxu0 }
 0x2ea   :  { %v2562_v29 = vpop.f32.mrb[41].mxu0  ;;  %v1784_v30 = vadd.f32 %v2454_v11, %v2376_v36 }
 0x2eb   :  { %v2563_v43 = vadd.f32 %v2562_v29, %v2561_v54 }
 0x2fe   :  { %v2455_v59 = vpop.f32.mrb[10].mxu1 }
 0x2ff   :  { %v2456_v45 = vpop.f32.mrb[11].mxu1 }
 0x300   :  { %v2457_v52 = vadd.f32 %v2456_v45, %v2455_v59 }
 0x301   :  { %v2564_v23 = vpop.f32.mrb[42].mxu0 }
 0x302   :  { %v2565_v32 = vpop.f32.mrb[43].mxu0  ;;  %v1789_v5 = vadd.f32 %v2457_v52, %v2376_v36 }
 0x303   :  { %v2566_v25 = vadd.f32 %v2565_v32, %v2564_v23 }
 0x316   :  { %v2458_v15 = vpop.f32.mrb[12].mxu1 }
 0x317   :  { %v2459_v38 = vpop.f32.mrb[13].mxu1 }
 0x318   :  { %v2460_v6 = vadd.f32 %v2459_v38, %v2458_v15 }
 0x319   :  { %v2567_v40 = vpop.f32.mrb[44].mxu0 }
 0x31a   :  { %v2568_v56 = vpop.f32.mrb[45].mxu0  ;;  %v1794_v29 = vadd.f32 %v2460_v6, %v2376_v36 }
 0x31b   :  { %v2569_v46 = vadd.f32 %v2568_v56, %v2567_v40 }
 0x32b   :  { %v2461_v2 = vpop.f32.mrb[14].mxu1 }
 0x32c   :  { %v2462_v61 = vpop.f32.mrb[15].mxu1 }
 0x32d   :  { %v2463_v28 = vadd.f32 %v2462_v61, %v2461_v2 }
 0x32e   :  { %v2570_v0 = vpop.f32.mrb[46].mxu0 }
 0x32f   :  { %v2496_v62 = vpop.f32.mrb[16].mxu1  ;;  %v2571_v31 = vpop.f32.mrb[47].mxu0  ;;  %v1799_v32 = vadd.f32 %v2463_v28, %v2376_v36 }
 0x330   :  { %v2572_v1 = vadd.f32 %v2571_v31, %v2570_v0  ;;  %v2497_v60 = vpop.f32.mrb[17].mxu1 }
 0x331   :  { %v2498_v41 = vadd.f32 %v2497_v60, %v2496_v62 }
 0x333   :  { %v1869_v42 = vadd.f32 %v2498_v41, %v1764_v8  ;;  %v2499_v34 = vpop.f32.mrb[18].mxu1 }
 0x334   :  { %v2500_v17 = vpop.f32.mrb[19].mxu1 }
 0x335   :  { %v2501_v12 = vadd.f32 %v2500_v17, %v2499_v34  ;;  %v1974_v10 = vadd.f32 %v2554_v48, %v1869_v42 }
 0x337   :  { %v1874_v63 = vadd.f32 %v2501_v12, %v1769_v51  ;;  %v2502_v53 = vpop.f32.mrb[20].mxu1 }
 0x338   :  { %v2503_v39 = vpop.f32.mrb[21].mxu1 }
 0x339   :  { %v2504_v37 = vadd.f32 %v2503_v39, %v2502_v53  ;;  %v1979_v27 = vadd.f32 %v2557_v7, %v1874_v63 }
 0x33a   :  { %v2573_v18 = vpop.f32.mrb[48].mxu0 }
 0x33b   :  { %v1879_v55 = vadd.f32 %v2504_v37, %v1774_v13  ;;  %v2505_v50 = vpop.f32.mrb[22].mxu1  ;;  %v2574_v22 = vpop.f32.mrb[49].mxu0 }
 0x33c   :  { %v2506_v33 = vpop.f32.mrb[23].mxu1  ;;  %v2575_v20 = vadd.f32 %v2574_v22, %v2573_v18 }
 0x33d   :  { %v2507_v4 = vadd.f32 %v2506_v33, %v2505_v50  ;;  %v1984_v47 = vadd.f32 %v2560_v49, %v1879_v55 }
 0x33f   :  { %v1884_v3 = vadd.f32 %v2507_v4, %v1779_v58  ;;  %v2508_v14 = vpop.f32.mrb[24].mxu1 }
 0x340   :  { %v2509_v24 = vpop.f32.mrb[25].mxu1 }
 0x341   :  { %v2510_v48 = vadd.f32 %v2509_v24, %v2508_v14  ;;  %v1989_v21 = vadd.f32 %v2563_v43, %v1884_v3 }
 0x343   :  { %v1889_v26 = vadd.f32 %v2510_v48, %v1784_v30  ;;  %v2511_v57 = vpop.f32.mrb[26].mxu1 }
 0x344   :  { %v2512_v9 = vpop.f32.mrb[27].mxu1 }
 0x345   :  { %v2513_v7 = vadd.f32 %v2512_v9, %v2511_v57  ;;  %v1994_v16 = vadd.f32 %v2566_v25, %v1889_v26 }
 0x347   :  { %v1894_v44 = vadd.f32 %v2513_v7, %v1789_v5  ;;  %v2514_v19 = vpop.f32.mrb[28].mxu1 }
 0x348   :  { %v2515_v54 = vpop.f32.mrb[29].mxu1 }
 0x349   :  { %v2516_v35 = vadd.f32 %v2515_v54, %v2514_v19  ;;  %v1999_v59 = vadd.f32 %v2569_v46, %v1894_v44 }
 0x34b   :  { %v1899_v45 = vadd.f32 %v2516_v35, %v1794_v29  ;;  %v2517_v49 = vpop.f32.mrb[30].mxu1 }
 0x34c   :  { %v2518_v23 = vpop.f32.mrb[31].mxu1 }
 0x34d   :  { %v2519_v15 = vadd.f32 %v2518_v23, %v2517_v49  ;;  %v2004_v11 = vadd.f32 %v2572_v1, %v1899_v45 }
 0x34f   :  { %v1904_v38 = vadd.f32 %v2519_v15, %v1799_v32  ;;  %v2713_v43 = vpop.f32.mrb[32].mxu1 }
 0x350   :  { %v2084_v40 = vadd.f32 %v2713_v43, %v1979_v27  ;;  %v2078_v56 = vpop.f32.mrb[33].mxu1 }
 0x351   :  { %v2079_v2 = vadd.f32 %v2078_v56, %v1974_v10  ;;  %v2009_v52 = vadd.f32 %v2575_v20, %v1904_v38 }
 0x352   :  { %v4195_v61 = vmul.f32 0.70710677, %v2084_v40  ;;  %v4229_v48 = vmul.f32 0.5, %v2084_v40 }
 0x353   :  { %v4197_v25 = vmul.f32 0.70710677, %v2079_v2  ;;  %v2716_v0 = vpop.f32.mrb[34].mxu1  ;;  %v4234_v9 = vmul.f32 0.5, %v2079_v2 }
 0x354   :  { %v2134_v6 = vand.u32 2147483647, %v4195_v61  ;;  %v4200_v46 = vadd.f32 %v2716_v0, %v1989_v21  ;;  %v2088_v62 = vpop.f32.mrb[35].mxu1  ;;  %vm2294_vm0 = vcmp.lt.f32.partialorder %v4195_v61, 0.0 }
 0x355   :  { %v2133_v28 = vand.u32 2147483647, %v4197_v25  ;;  %v4203_v36 = vadd.f32 %v2088_v62, %v1984_v47  ;;  %vm2293_vm1 = vcmp.lt.f32.partialorder %v4197_v25, 0.0 }
 0x356   :  { %v2142_v31 = vmul.f32 0.3275911, %v2134_v6  ;;  %v4206_v1 = vmul.f32 0.70710677, %v4200_v46  ;;  %v2246_v34 = vmul.f32 %v2134_v6, %v2134_v6 }
 0x357   :  { %v2141_v60 = vmul.f32 0.3275911, %v2133_v28  ;;  %v4209_v8 = vmul.f32 0.70710677, %v4203_v36  ;;  %v2719_v41 = vpop.f32.mrb[36].mxu1  ;;  %v2245_v22 = vmul.f32 %v2133_v28, %v2133_v28 }
 0x358   :  { %v2150_v42 = vadd.f32 1.0, %v2142_v31  ;;  %v2136_v17 = vand.u32 2147483647, %v4206_v1  ;;  %v2098_v51 = vpop.f32.mrb[37].mxu1  ;;  %v2254_v13 = vsub.f32 0.0, %v2246_v34  ;;  %v4213_v27 = vadd.f32 %v2719_v41, %v1999_v59 }
 0x359   :  { %v2149_v12 = vadd.f32 1.0, %v2141_v60  ;;  %v2135_v10 = vand.u32 2147483647, %v4209_v8  ;;  %v4215_v50 = vadd.f32 %v2098_v51, %v1994_v16  ;;  %v2253_v21 = vsub.f32 0.0, %v2245_v22 }
 0x35a   :  { %2953 = vrcp.f32 %v2150_v42  ;;  %v2144_v63 = vmul.f32 0.3275911, %v2136_v17  ;;  %v4218_v33 = vmul.f32 0.70710677, %v4213_v27  ;;  %v2248_v58 = vmul.f32 %v2136_v17, %v2136_v17 }
 0x35b   :  { %2955 = vrcp.f32 %v2149_v12  ;;  %v2143_v53 = vmul.f32 0.3275911, %v2135_v10  ;;  %v2722_v39 = vpop.f32.mrb[38].mxu1  ;;  %v4221_v20 = vmul.f32 0.70710677, %v4215_v50  ;;  %v2247_v47 = vmul.f32 %v2135_v10, %v2135_v10 }
 0x35c   :  { %v2152_v37 = vadd.f32 1.0, %v2144_v63  ;;  %v2108_v55 = vpop.f32.mrb[39].mxu1  ;;  %v2263_v4 = vmul.f32 1.442695, %v2254_v13  ;;  %v2138_v3 = vand.u32 2147483647, %v4218_v33  ;;  %v4224_v14 = vadd.f32 %v2722_v39, %v2009_v52 }
 0x35d   :  { %v2151_v18 = vadd.f32 1.0, %v2143_v53  ;;  %v2137_v24 = vand.u32 2147483647, %v4221_v20  ;;  %v4227_v30 = vadd.f32 %v2108_v55, %v2004_v11  ;;  %v2256_v5 = vsub.f32 0.0, %v2248_v58 }
 0x35e   :  { %2957 = vrcp.f32 %v2152_v37  ;;  %v2146_v26 = vmul.f32 0.3275911, %v2138_v3  ;;  %v4232_v57 = vmul.f32 0.70710677, %v4224_v14  ;;  %v2255_v19 = vsub.f32 0.0, %v2247_v47 }
 0x35f   :  { %2959 = vrcp.f32 %v2151_v18  ;;  %v2145_v7 = vmul.f32 0.3275911, %v2137_v24  ;;  %v4237_v16 = vmul.f32 0.70710677, %v4227_v30  ;;  %v2250_v45 = vmul.f32 %v2138_v3, %v2138_v3 }
 0x360   :  { %2961 = vpow2.f32 %v2263_v4  ;;  %v2154_v54 = vadd.f32 1.0, %v2146_v26  ;;  %v2140_v29 = vand.u32 2147483647, %v4232_v57  ;;  %v2261_v15 = vmul.f32 1.442695, %v2253_v21 }
 0x361   :  { %v2153_v49 = vadd.f32 1.0, %v2145_v7  ;;  %v2139_v23 = vand.u32 2147483647, %v4237_v16  ;;  %v2267_v43 = vmul.f32 1.442695, %v2256_v5  ;;  %v2249_v40 = vmul.f32 %v2137_v24, %v2137_v24 }
 0x362   :  { %2963 = vrcp.f32 %v2154_v54  ;;  %v2148_v11 = vmul.f32 0.3275911, %v2140_v29  ;;  %v2252_v0 = vmul.f32 %v2140_v29, %v2140_v29  ;;  %v2265_v60 = vmul.f32 1.442695, %v2255_v19 }
 0x363   :  { %2965 = vrcp.f32 %v2153_v49  ;;  %v2147_v6 = vmul.f32 0.3275911, %v2139_v23  ;;  %v2258_v41 = vsub.f32 0.0, %v2250_v45  ;;  %v2257_v10 = vsub.f32 0.0, %v2249_v40 }
 0x364   :  { %v4239_v44 = vpop.eup %2953  ;;  %v2156_v52 = vadd.f32 1.0, %v2148_v11  ;;  %v2251_v63 = vmul.f32 %v2139_v23, %v2139_v23  ;;  %v2260_v13 = vsub.f32 0.0, %v2252_v0  ;;  %v4259_v4 = vmul.f32 0.5, %v4200_v46 }
 0x365   :  { %v4242_v35 = vpop.eup %2955  ;;  %v2174_v59 = vmul.f32 1.0614054, %v4239_v44  ;;  %v2155_v17 = vadd.f32 1.0, %v2147_v6  ;;  %v2271_v18 = vmul.f32 1.442695, %v2258_v41  ;;  %vm2296_vm3 = vcmp.lt.f32.partialorder %v4206_v1, 0.0 }
 0x366   :  { %v2173_v32 = vmul.f32 1.0614054, %v4242_v35  ;;  %2967 = vrcp.f32 %v2156_v52  ;;  %v2259_v3 = vsub.f32 0.0, %v2251_v63  ;;  %v2269_v26 = vmul.f32 1.442695, %v2257_v10 }
 0x367   :  { %v2182_v38 = vadd.f32 -1.4531521, %v2174_v59  ;;  %2969 = vrcp.f32 %v2155_v17  ;;  %v2275_v54 = vmul.f32 1.442695, %v2260_v13  ;;  %vm2295_vm5 = vcmp.lt.f32.partialorder %v4209_v8, 0.0 }
 0x368   :  { %v4247_v56 = vpop.eup %2957  ;;  %v2181_v2 = vadd.f32 -1.4531521, %v2173_v32  ;;  %2971 = vpow2.f32 %v2261_v15  ;;  %v2273_v15 = vmul.f32 1.442695, %v2259_v3  ;;  %vm2298_vm6 = vcmp.lt.f32.partialorder %v4218_v33, 0.0 }
 0x369   :  { %v4249_v62 = vpop.eup %2959  ;;  %v2190_v28 = vmul.f32 %v4239_v44, %v2182_v38  ;;  %v2176_v31 = vmul.f32 1.0614054, %v4247_v56  ;;  %2973 = vpow2.f32 %v2267_v43  ;;  %vm2297_vm7 = vcmp.lt.f32.partialorder %v4221_v20, 0.0 }
 0x36a   :  { %v2189_v42 = vmul.f32 %v4242_v35, %v2181_v2  ;;  %v2175_v34 = vmul.f32 1.0614054, %v4249_v62  ;;  %v2962_v22 = vpop.eup %2961  ;;  %2975 = vpow2.f32 %v2265_v60  ;;  %vm2300_vm8 = vcmp.lt.f32.partialorder %v4232_v57, 0.0 }
 0x36b   :  { %v2198_v51 = vadd.f32 1.4214138, %v2190_v28  ;;  %v2184_v12 = vadd.f32 -1.4531521, %v2176_v31  ;;  %2977 = vpow2.f32 %v2271_v18  ;;  %v2124_v20 = vmul.f32 0.5, %v4224_v14 }
 0x36c   :  { %v2197_v53 = vadd.f32 1.4214138, %v2189_v42  ;;  %v2183_v39 = vadd.f32 -1.4531521, %v2175_v34  ;;  %v4262_v5 = vpop.eup %2963  ;;  %2979 = vpow2.f32 %v2269_v26  ;;  %vm2299_vm9 = vcmp.lt.f32.partialorder %v4237_v16, 0.0 }
 0x36d   :  { %v2206_v37 = vmul.f32 %v4239_v44, %v2198_v51  ;;  %v2192_v55 = vmul.f32 %v4247_v56, %v2184_v12  ;;  %v4264_v29 = vpop.eup %2965  ;;  %v2178_v45 = vmul.f32 1.0614054, %v4262_v5  ;;  %2981 = vpow2.f32 %v2275_v54 }
 0x36e   :  { %v2205_v58 = vmul.f32 %v4242_v35, %v2197_v53  ;;  %v2191_v47 = vmul.f32 %v4249_v62, %v2183_v39  ;;  %v2177_v32 = vmul.f32 1.0614054, %v4264_v29  ;;  %2983 = vpow2.f32 %v2273_v15 }
 0x36f   :  { %v2214_v24 = vadd.f32 -0.28449672, %v2206_v37  ;;  %v2200_v21 = vadd.f32 1.4214138, %v2192_v55  ;;  %v2186_v43 = vadd.f32 -1.4531521, %v2178_v45 }
 0x370   :  { %v2213_v7 = vadd.f32 -0.28449672, %v2205_v58  ;;  %v2199_v19 = vadd.f32 1.4214138, %v2191_v47  ;;  %v4272_v40 = vpop.eup %2967  ;;  %v2185_v0 = vadd.f32 -1.4531521, %v2177_v32 }
 0x371   :  { %v2222_v59 = vmul.f32 %v4239_v44, %v2214_v24  ;;  %v2208_v46 = vmul.f32 %v4247_v56, %v2200_v21  ;;  %v2194_v31 = vmul.f32 %v4262_v5, %v2186_v43  ;;  %v2180_v60 = vmul.f32 1.0614054, %v4272_v40  ;;  %v4280_v41 = vpop.eup %2969 }
 0x372   :  { %v2221_v49 = vmul.f32 %v4242_v35, %v2213_v7  ;;  %v2207_v23 = vmul.f32 %v4249_v62, %v2199_v19  ;;  %v2193_v17 = vmul.f32 %v4264_v29, %v2185_v0  ;;  %v2972_v51 = vpop.eup %2971  ;;  %v2179_v37 = vmul.f32 1.0614054, %v4280_v41 }
 0x373   :  { %v2230_v11 = vadd.f32 0.2548296, %v2222_v59  ;;  %v2216_v38 = vadd.f32 -0.28449672, %v2208_v46  ;;  %v2202_v10 = vadd.f32 1.4214138, %v2194_v31  ;;  %v2974_v55 = vpop.eup %2973 }
 0x374   :  { %v2229_v2 = vadd.f32 0.2548296, %v2221_v49  ;;  %v2215_v52 = vadd.f32 -0.28449672, %v2207_v23  ;;  %v2188_v63 = vadd.f32 -1.4531521, %v2180_v60  ;;  %v2976_v47 = vpop.eup %2975 }
 0x375   :  { %v2238_v6 = vmul.f32 %v4239_v44, %v2230_v11  ;;  %v2224_v28 = vmul.f32 %v4247_v56, %v2216_v38  ;;  %v2201_v13 = vadd.f32 1.4214138, %v2193_v17  ;;  %v2210_v58 = vmul.f32 %v4262_v5, %v2202_v10  ;;  %v2978_v7 = vpop.eup %2977 }
 0x376   :  { %v2237_v42 = vmul.f32 %v4242_v35, %v2229_v2  ;;  %v2223_v34 = vmul.f32 %v4249_v62, %v2215_v52  ;;  %v2187_v26 = vadd.f32 -1.4531521, %v2179_v37  ;;  %v2980_v32 = vpop.eup %2979  ;;  %v2119_v37 = vmul.f32 0.5, %v4203_v36 }
 0x377   :  { %v2278_v12 = vmul.f32 %v2962_v22, %v2238_v6  ;;  %v2232_v44 = vadd.f32 0.2548296, %v2224_v28  ;;  %v2196_v22 = vmul.f32 %v4272_v40, %v2188_v63  ;;  %v2209_v21 = vmul.f32 %v4264_v29, %v2201_v13  ;;  %v2982_v43 = vpop.eup %2981 }
 0x378   :  { %v2277_v53 = vmul.f32 %v2972_v51, %v2237_v42  ;;  %v2231_v39 = vadd.f32 0.2548296, %v2223_v34  ;;  %v2218_v59 = vadd.f32 -0.28449672, %v2210_v58  ;;  %v2195_v23 = vmul.f32 %v4280_v41, %v2187_v26  ;;  %v2984_v34 = vpop.eup %2983 }
 0x379   :  { %v2286_v18 = vsub.f32 1.0, %v2278_v12  ;;  %v2240_v35 = vmul.f32 %v4247_v56, %v2232_v44  ;;  %v2204_v46 = vadd.f32 1.4214138, %v2196_v22  ;;  %v2217_v49 = vadd.f32 -0.28449672, %v2209_v21 }
 0x37a   :  { %v2285_v3 = vsub.f32 1.0, %v2277_v53  ;;  %v2239_v24 = vmul.f32 %v4249_v62, %v2231_v39  ;;  %v2226_v62 = vmul.f32 %v4262_v5, %v2218_v59  ;;  %v2203_v12 = vadd.f32 1.4214138, %v2195_v23 }
 0x37b   :  { %v2302_v19 = vsub.f32 0.0, %v2286_v18  ;;  %v2280_v54 = vmul.f32 %v2974_v55, %v2240_v35  ;;  %v2212_v38 = vmul.f32 %v4272_v40, %v2204_v46  ;;  %v2225_v6 = vmul.f32 %v4264_v29, %v2217_v49 }
 0x37c   :  { %v2301_v45 = vsub.f32 0.0, %v2285_v3  ;;  %v2279_v56 = vmul.f32 %v2976_v47, %v2239_v24  ;;  %v2234_v60 = vadd.f32 0.2548296, %v2226_v62  ;;  %v2121_v59 = vmul.f32 0.5, %v4215_v50 }
 0x37d   :  { %v2310_v15 = vsel %vm2294_vm0, %v2302_v19, %v2286_v18  ;;  %v2288_v11 = vsub.f32 1.0, %v2280_v54  ;;  %v2220_v42 = vadd.f32 -0.28449672, %v2212_v38  ;;  %v2233_v51 = vadd.f32 0.2548296, %v2225_v6 }
 0x37e   :  { %v2318_v2 = vadd.f32 1.0, %v2310_v15  ;;  %v2309_v52 = vsel %vm2293_vm1, %v2301_v45, %v2285_v3  ;;  %v2287_v0 = vsub.f32 1.0, %v2279_v56  ;;  %v2242_v25 = vmul.f32 %v4262_v5, %v2234_v60 }
 0x37f   :  { %v2317_v28 = vadd.f32 1.0, %v2309_v52  ;;  %v2304_v31 = vsub.f32 0.0, %v2288_v11  ;;  %v2228_v63 = vmul.f32 %v4272_v40, %v2220_v42  ;;  %v2241_v13 = vmul.f32 %v4264_v29, %v2233_v51 }
 0x380   :  { %v2326_v61 = vmul.f32 %v2318_v2, %v4229_v48  ;;  %v2303_v17 = vsub.f32 0.0, %v2287_v0  ;;  %v2211_v48 = vmul.f32 %v4280_v41, %v2203_v12  ;;  %v2282_v55 = vmul.f32 %v2978_v7, %v2242_v25 }
 0x381   :  { %v2325_v44 = vmul.f32 %v2317_v28, %v4234_v9  ;;  %v2312_v10 = vsel %vm2296_vm3, %v2304_v31, %v2288_v11  ;;  %v2236_v1 = vadd.f32 0.2548296, %v2228_v63  ;;  %v2281_v5 = vmul.f32 %v2980_v32, %v2241_v13 }
 0x382   :  { %2334 = vst [vmem:[#allocation6 + $0x8] sm:$0xff] %v2326_v61  ;;  %v2320_v53 = vadd.f32 1.0, %v2312_v10  ;;  %v2311_v39 = vsel %vm2295_vm5, %v2303_v17, %v2287_v0  ;;  %v2219_v35 = vadd.f32 -0.28449672, %v2211_v48  ;;  %v2290_v22 = vsub.f32 1.0, %v2282_v55 }
 0x383   :  { %2333 = vst [vmem:[#allocation6] sm:$0xff] %v2325_v44  ;;  %v2319_v9 = vadd.f32 1.0, %v2311_v39  ;;  %v2244_v47 = vmul.f32 %v4272_v40, %v2236_v1  ;;  %v2289_v8 = vsub.f32 1.0, %v2281_v5  ;;  %v2122_v7 = vmul.f32 0.5, %v4213_v27 }
 0x384   :  { %v2328_v18 = vmul.f32 %v2320_v53, %v4259_v4  ;;  %v2227_v29 = vmul.f32 %v4280_v41, %v2219_v35  ;;  %v2306_v3 = vsub.f32 0.0, %v2290_v22 }
 0x385   :  { %v2327_v58 = vmul.f32 %v2319_v9, %v2119_v37  ;;  %v2284_v24 = vmul.f32 %v2982_v43, %v2244_v47  ;;  %v2305_v36 = vsub.f32 0.0, %v2289_v8 }
 0x386   :  { %2336 = vst [vmem:[#allocation6 + $0x18] sm:$0xff] %v2328_v18  ;;  %v2235_v21 = vadd.f32 0.2548296, %v2227_v29  ;;  %v2314_v26 = vsel %vm2298_vm6, %v2306_v3, %v2290_v22 }
 0x387   :  { %2335 = vst [vmem:[#allocation6 + $0x10] sm:$0xff] %v2327_v58  ;;  %v2292_v4 = vsub.f32 1.0, %v2284_v24  ;;  %v2322_v19 = vadd.f32 1.0, %v2314_v26  ;;  %v2313_v54 = vsel %vm2297_vm7, %v2305_v36, %v2289_v8 }
 0x388   :  { %v2243_v40 = vmul.f32 %v4280_v41, %v2235_v21  ;;  %v2321_v46 = vadd.f32 1.0, %v2313_v54  ;;  %v2123_v41 = vmul.f32 0.5, %v4227_v30 }
 0x389   :  { %v2308_v45 = vsub.f32 0.0, %v2292_v4  ;;  %v2330_v56 = vmul.f32 %v2322_v19, %v2122_v7 }
 0x38a   :  { %v2283_v33 = vmul.f32 %v2984_v34, %v2243_v40  ;;  %v2329_v49 = vmul.f32 %v2321_v46, %v2121_v59 }
 0x38b   :  { %v2316_v23 = vsel %vm2300_vm8, %v2308_v45, %v2292_v4  ;;  %2338 = vst [vmem:[#allocation6 + $0x28] sm:$0xff] %v2330_v56 }
 0x38c   :  { %v2324_v32 = vadd.f32 1.0, %v2316_v23  ;;  %v2291_v15 = vsub.f32 1.0, %v2283_v33  ;;  %2337 = vst [vmem:[#allocation6 + $0x20] sm:$0xff] %v2329_v49 }
 0x38e   :  { %v2332_v27 = vmul.f32 %v2324_v32, %v2124_v20  ;;  %v2307_v11 = vsub.f32 0.0, %v2291_v15 }
 0x390   :  { %2340 = vst [vmem:[#allocation6 + $0x38] sm:$0xff] %v2332_v27  ;;  %v2315_v50 = vsel %vm2299_vm9, %v2307_v11, %v2291_v15 }
 0x391   :  { %v2323_v57 = vadd.f32 1.0, %v2315_v50 }
 0x393   :  { %v2331_v62 = vmul.f32 %v2323_v57, %v2123_v41 }
 0x395   :  { %2339 = vst [vmem:[#allocation6 + $0x30] sm:$0xff] %v2331_v62 }
 0x396   :  { %3019 = shalt.err (!%p3016_p12)
}
 0x397   :  { %s3020_s22 = scalar_lea.hbm %s4344_s5, 1024 }
 0x398   :  { %p3021_p13 = scmp.ne.s32.totalorder %s4344_s5, %s3020_s22  ;;  %p3024_p0 = scmp.lt.u32.totalorder %s3020_s22, %s4344_s5 }
 0x39a   :  { %p3026_p1 = pnand %p3024_p0, %p3021_p13 }
 0x39c   :  { %3029 = shalt.err (!%p3026_p1)
}
 0x39d   :  { %2352 = dma.vmem_to_hbm [thread:$0]  %s2347_s16, 1024, %s4344_s5, [#allocation5], %s3035_s28, %s3035_s28, %s3036_s29  }
 0x39e   :  { %3032 = dma.done.wait [#allocation5], 1024  }
 0x39f   :  { %3033 = vsyncadd [#allocation5], 4294966272 }
 0x3a0   :  { %2356 = vsyncpa [#allocation4], 1 }
 0x3a1   :  { %2357 = vsyncpa [#allocation5], 1 }

</bundles_post_ra>
